<compile_context>
chip_gen: v7x
topology: tpu7x:2x2x1
jax: 0.10.0
libtpu: 0.0.40
codegen_flags: <defaults>
</compile_context>

<pallas_src>
import math

import jax
import jax.numpy as jnp
from jax import lax
from jax.experimental import pallas as pl
from jax.experimental.pallas import tpu as pltpu


# ------------------------------ Pallas kernel -------------------------------

def _pick_row_tile(hs):
    """Output-row tile: multiple of 8 that divides Hs (or the whole Hs)."""
    if hs <= 32:
        return hs
    for th in (32, 16, 8):
        if hs % th == 0:
            return th
    return hs


def _make_kernel(k, pad, th, ws):
    def kernel(x_hbm, w_ref, b_ref, o_ref, xbuf, sem):
        b = pl.program_id(0)
        i = pl.program_id(1)

        # Manual DMA of the halo'd row window [i*th, i*th + th + 2*pad) of the
        # padded activation (contiguous in the (B, Hp, 4C, Wp) layout).
        # TODO(synk): double-buffer this copy across grid steps to hide the
        #             remaining DMA latency (needs an "arbitrary" row axis).
        cp = pltpu.make_async_copy(
            x_hbm.at[b, pl.ds(i * th, th + 2 * pad), :, :], xbuf, sem)
        cp.start()
        cp.wait()

        w = w_ref[...]            # (Cout, K) bf16, K = k*k*4C, BN scale folded in
        bias = b_ref[...]         # (Cout, 1)  f32, folded BN bias

        for h in range(th):       # static loop over this tile's output rows
            rows = [xbuf[h + di] for di in range(k)]               # k x (4C, Wp)
            patches = jnp.concatenate(
                [rows[di][:, dj:dj + ws] for di in range(k) for dj in range(k)],
                axis=0)                                            # (K, Ws)  K-fused taps
            y = jnp.dot(w, patches,
                        preferred_element_type=jnp.float32)        # (Cout, Ws) on MXU
            y = y + bias                                           # folded BatchNorm
            y = y * jax.nn.sigmoid(y)                              # SiLU in f32
            o_ref[0, :, h, :] = y.astype(o_ref.dtype)              # lane-dense bf16 store

    return kernel


def focus_conv(xp, w2, bias2, ksize):
    """Fused Conv(k, s=1) + BN + SiLU on a pre-padded (B, Hp, 4C, Wp) bf16 tensor.

    Returns NCHW bf16 of shape (B, Cout, Hs, Ws)."""
    pad = (ksize - 1) // 2
    B, Hp, C4, Wp = xp.shape
    Cout, K = w2.shape
    Hs, Ws = Hp - 2 * pad, Wp - 2 * pad
    th = _pick_row_tile(Hs)
    n_t = Hs // th
    grid = (B, n_t)

    kernel = _make_kernel(ksize, pad, th, Ws)

    # VMEM budget from lane-padded block sizes, capped well under v7x's 64 MiB.
    lane = lambda n: -(-n // 128) * 128
    sub = lambda n: -(-n // 16) * 16
    out_blk = Cout * sub(th) * lane(Ws) * 2
    w_blk = sub(Cout) * lane(K) * 2
    b_blk = sub(Cout) * lane(1) * 4
    xbuf_blk = (th + 2 * pad) * sub(C4) * lane(Wp) * 2
    vmem_limit = int(min(48 << 20,
                         max(8 << 20,
                             2 * (out_blk + w_blk + b_blk) + xbuf_blk + (4 << 20))))

    cost = pl.CostEstimate(
        flops=2 * B * Hs * Ws * K * Cout,
        transcendentals=B * Hs * Ws * Cout,
        bytes_accessed=(xp.size * 2 + w2.size * 2 + bias2.size * 4
                        + B * Cout * Hs * Ws * 2),
    )

    return pl.pallas_call(
        kernel,
        grid=grid,
        in_specs=[
            pl.BlockSpec(memory_space=pl.ANY),                  # activation stays in HBM
            pl.BlockSpec((Cout, K), lambda b, i: (0, 0)),       # folded weights (full)
            pl.BlockSpec((Cout, 1), lambda b, i: (0, 0)),       # folded bias (full)
        ],
        out_specs=pl.BlockSpec((1, Cout, th, Ws), lambda b, i: (b, 0, i, 0)),
        out_shape=jax.ShapeDtypeStruct((B, Cout, Hs, Ws), jnp.bfloat16),
        scratch_shapes=[
            pltpu.VMEM((th + 2 * pad, C4, Wp), jnp.bfloat16),   # halo'd row tile
            pltpu.SemaphoreType.DMA,
        ],
        compiler_params=pltpu.CompilerParams(
            dimension_semantics=("parallel", "parallel"),
            vmem_limit_bytes=vmem_limit,
        ),
        cost_estimate=cost,
    )(xp, w2, bias2)


# --------------------------- parameters (synthetic) --------------------------

def init_focus(key, in_channels, out_channels, ksize=3):
    """Deterministic BaseConv params; BatchNorm (eval mode) folded in at init."""
    c4 = in_channels * 4
    kw_, kg, kb, km, kv = jax.random.split(key, 5)
    fan_in = c4 * ksize * ksize
    w = jax.random.normal(kw_, (ksize, ksize, c4, out_channels), jnp.float32)
    w = w / math.sqrt(fan_in)
    gamma = 1.0 + 0.1 * jax.random.normal(kg, (out_channels,), jnp.float32)
    beta = 0.1 * jax.random.normal(kb, (out_channels,), jnp.float32)
    mean = 0.1 * jax.random.normal(km, (out_channels,), jnp.float32)
    var = 1.0 + 0.1 * jnp.abs(jax.random.normal(kv, (out_channels,), jnp.float32))
    eps = 1e-3                                            # nn.BatchNorm2d(eps=0.001)
    scale = gamma / jnp.sqrt(var + eps)
    bias = beta - mean * scale
    w_folded = w * scale[None, None, None, :]             # fold BN scale into conv W
    # Kernel layout: (Cout, K) with K = (kh, kw, c4) flattened -> matches the
    # in-kernel tap concatenation order.
    w2 = jnp.transpose(w_folded, (3, 0, 1, 2)).reshape(out_channels, -1)
    return {
        "ksize": ksize,
        "w2": w2.astype(jnp.bfloat16),
        "bias2": bias.reshape(out_channels, 1).astype(jnp.float32),
        "w_hwio_f32": w_folded,                           # f32 copies for the ref check
        "bias_f32": bias,
    }


# -------------------------------- forward pass --------------------------------

def _space_to_depth_rows_major(x_nchw):
    """NCHW (B,C,H,W) -> (B, H/2, 4C, W/2) with the PyTorch Focus channel order
    [top-left C, bottom-left C, top-right C, bottom-right C] on the 4C axis."""
    B, C, H, W = x_nchw.shape
    x = x_nchw.reshape(B, C, H // 2, 2, W // 2, 2)        # (B, c, h, di, w, dj)
    x = x.transpose(0, 2, 5, 3, 1, 4)                     # (B, h, dj, di, c, w)
    return x.reshape(B, H // 2, 4 * C, W // 2)


def _space_to_depth_nchw(x_nchw):
    """Same 2x2 patch rearrangement, plain NCHW output (for the reference)."""
    B, C, H, W = x_nchw.shape
    x = x_nchw.reshape(B, C, H // 2, 2, W // 2, 2)        # (B, c, h, di, w, dj)
    x = x.transpose(0, 5, 3, 1, 2, 4)                     # (B, dj, di, c, h, w)
    return x.reshape(B, 4 * C, H // 2, W // 2)


def focus_forward(x_nchw, params):
    """Focus.forward: space-to-depth + fused Conv+BN+SiLU.  NCHW in, NCHW out.

    Output is bf16 (mem-bound layer; bias+SiLU computed in f32 in-kernel)."""
    k = params["ksize"]
    pad = (k - 1) // 2
    y = _space_to_depth_rows_major(x_nchw).astype(jnp.bfloat16)   # (B, Hs, 4C, Ws)
    if pad:
        y = jnp.pad(y, ((0, 0), (pad, pad), (0, 0), (pad, pad)))
    return focus_conv(y, params["w2"], params["bias2"], k)


def _reference(x_nchw, params):
    """Pure-JAX f32 reference of the same math, for a correctness check."""
    k = params["ksize"]
    pad = (k - 1) // 2
    y = _space_to_depth_nchw(x_nchw)
    o = lax.conv_general_dilated(
        y, params["w_hwio_f32"], window_strides=(1, 1),
        padding=[(pad, pad), (pad, pad)],
        dimension_numbers=("NCHW", "HWIO", "NCHW"))
    o = o + params["bias_f32"][None, :, None, None]
    return o * jax.nn.sigmoid(o)


# ------------------------------------ main ------------------------------------

if __name__ == "__main__":
    B, Cin, H, W = 2, 4, 16, 16
    Cout, ksize = 32, 3                                   # YOLOX stem uses ksize=3

    kx, kp = jax.random.split(jax.random.PRNGKey(0))
    x = jax.random.normal(kx, (B, Cin, H, W), jnp.float32)  # NCHW, like PyTorch
    params = init_focus(kp, Cin, Cout, ksize)

    fwd = jax.jit(lambda inp: focus_forward(inp, params))
    out = jax.block_until_ready(fwd(x))

    assert out.shape == (B, Cout, H // 2, W // 2), out.shape
    out_f32 = out.astype(jnp.float32)
    assert bool(jnp.all(jnp.isfinite(out_f32)))

    ref = _reference(x, params)
    max_err = float(jnp.max(jnp.abs(out_f32 - ref)))
    assert max_err < 1e-1, f"mismatch vs f32 reference: {max_err}"

    print("KERNEL_OK")
</pallas_src>

<mosaic_0001>
module attributes {stable_mosaic.version = 11 : i64} {
  func.func @kernel(%arg0: i32, %arg1: i32, %arg2: memref<2x10x16x10xbf16, #tpu.memory_space<any>>, %arg3: memref<32x144xbf16, #tpu.memory_space<vmem>>, %arg4: memref<32x1xf32, #tpu.memory_space<vmem>>, %arg5: memref<1x32x8x8xbf16, #tpu.memory_space<vmem>>, %arg6: memref<10x16x10xbf16, #tpu.memory_space<vmem>>, %arg7: memref<!tpu.dma_semaphore, #tpu.memory_space<semaphore_mem>>) attributes {dimension_semantics = [#tpu.dimension_semantics<parallel>, #tpu.dimension_semantics<parallel>], iteration_bounds = array<i64: 2, 1>, scalar_prefetch = 0 : i64, scratch_operands = 2 : i64, tpu.core_type = #tpu.core_type<tc>, window_params = [{}, {pipeline_mode = #tpu.pipeline_mode<synchronous>, transform_indices = @transform_1, window_bounds = array<i64: 32, 144>}, {pipeline_mode = #tpu.pipeline_mode<synchronous>, transform_indices = @transform_2, window_bounds = array<i64: 32, 1>}, {transform_indices = @transform_3, window_bounds = array<i64: 1, 32, 8, 8>}]} {
    %c8_i32 = arith.constant 8 : i32
    %0 = arith.muli %arg1, %c8_i32 : i32
    %c0_i32 = arith.constant 0 : i32
    %c0_i32_0 = arith.constant 0 : i32
    %1 = tpu.memref_slice %arg2[%arg0, %0, %c0_i32, %c0_i32_0] : memref<2x10x16x10xbf16, #tpu.memory_space<any>> -> memref<1x10x16x10xbf16, #tpu.memory_space<any>>
    %2 = tpu.memref_squeeze %1 : memref<1x10x16x10xbf16, #tpu.memory_space<any>> -> memref<10x16x10xbf16, #tpu.memory_space<any>>
    tpu.enqueue_dma source(%2 : memref<10x16x10xbf16, #tpu.memory_space<any>>) target(%arg6 : memref<10x16x10xbf16, #tpu.memory_space<vmem>>) target_semaphore(%arg7 : memref<!tpu.dma_semaphore, #tpu.memory_space<semaphore_mem>>)
    %c0_i32_1 = arith.constant 0 : i32
    %c0_i32_2 = arith.constant 0 : i32
    %3 = tpu.memref_slice %arg2[%arg0, %0, %c0_i32_1, %c0_i32_2] : memref<2x10x16x10xbf16, #tpu.memory_space<any>> -> memref<1x10x16x10xbf16, #tpu.memory_space<any>>
    %4 = tpu.memref_squeeze %3 : memref<1x10x16x10xbf16, #tpu.memory_space<any>> -> memref<10x16x10xbf16, #tpu.memory_space<any>>
    tpu.wait_dma2 semaphore(%arg7 : memref<!tpu.dma_semaphore, #tpu.memory_space<semaphore_mem>>) src(%4 : memref<10x16x10xbf16, #tpu.memory_space<any>>) dst(%arg6 : memref<10x16x10xbf16, #tpu.memory_space<vmem>>)
    %c0 = arith.constant 0 : index
    %c0_3 = arith.constant 0 : index
    %5 = vector.load %arg3[%c0, %c0_3] : memref<32x144xbf16, #tpu.memory_space<vmem>>, vector<32x144xbf16>
    %c0_4 = arith.constant 0 : index
    %c0_5 = arith.constant 0 : index
    %6 = vector.load %arg4[%c0_4, %c0_5] : memref<32x1xf32, #tpu.memory_space<vmem>>, vector<32x1xf32>
    %c0_6 = arith.constant 0 : index
    %c0_7 = arith.constant 0 : index
    %c0_8 = arith.constant 0 : index
    %7 = vector.load %arg6[%c0_6, %c0_7, %c0_8] : memref<10x16x10xbf16, #tpu.memory_space<vmem>>, vector<1x16x10xbf16>
    %8 = vector.shape_cast %7 : vector<1x16x10xbf16> to vector<16x10xbf16>
    %c1 = arith.constant 1 : index
    %c0_9 = arith.constant 0 : index
    %c0_10 = arith.constant 0 : index
    %9 = vector.load %arg6[%c1, %c0_9, %c0_10] : memref<10x16x10xbf16, #tpu.memory_space<vmem>>, vector<1x16x10xbf16>
    %10 = vector.shape_cast %9 : vector<1x16x10xbf16> to vector<16x10xbf16>
    %c2 = arith.constant 2 : index
    %c0_11 = arith.constant 0 : index
    %c0_12 = arith.constant 0 : index
    %11 = vector.load %arg6[%c2, %c0_11, %c0_12] : memref<10x16x10xbf16, #tpu.memory_space<vmem>>, vector<1x16x10xbf16>
    %12 = vector.shape_cast %11 : vector<1x16x10xbf16> to vector<16x10xbf16>
    %13 = vector.extract_strided_slice %8 {offsets = [0, 0], sizes = [16, 8], strides = [1, 1]} : vector<16x10xbf16> to vector<16x8xbf16>
    %14 = vector.extract_strided_slice %8 {offsets = [0, 1], sizes = [16, 8], strides = [1, 1]} : vector<16x10xbf16> to vector<16x8xbf16>
    %15 = vector.extract_strided_slice %8 {offsets = [0, 2], sizes = [16, 8], strides = [1, 1]} : vector<16x10xbf16> to vector<16x8xbf16>
    %16 = vector.extract_strided_slice %10 {offsets = [0, 0], sizes = [16, 8], strides = [1, 1]} : vector<16x10xbf16> to vector<16x8xbf16>
    %17 = vector.extract_strided_slice %10 {offsets = [0, 1], sizes = [16, 8], strides = [1, 1]} : vector<16x10xbf16> to vector<16x8xbf16>
    %18 = vector.extract_strided_slice %10 {offsets = [0, 2], sizes = [16, 8], strides = [1, 1]} : vector<16x10xbf16> to vector<16x8xbf16>
    %19 = vector.extract_strided_slice %12 {offsets = [0, 0], sizes = [16, 8], strides = [1, 1]} : vector<16x10xbf16> to vector<16x8xbf16>
    %20 = vector.extract_strided_slice %12 {offsets = [0, 1], sizes = [16, 8], strides = [1, 1]} : vector<16x10xbf16> to vector<16x8xbf16>
    %21 = vector.extract_strided_slice %12 {offsets = [0, 2], sizes = [16, 8], strides = [1, 1]} : vector<16x10xbf16> to vector<16x8xbf16>
    %22 = tpu.concatenate %13, %14, %15, %16, %17, %18, %19, %20, %21 in 0 : vector<16x8xbf16>, vector<16x8xbf16>, vector<16x8xbf16>, vector<16x8xbf16>, vector<16x8xbf16>, vector<16x8xbf16>, vector<16x8xbf16>, vector<16x8xbf16>, vector<16x8xbf16> -> vector<144x8xbf16>
    %cst = arith.constant dense<0.000000e+00> : vector<32x8xf32>
    %23 = tpu.matmul %5, %22, %cst {dimension_numbers = #tpu.dot_dimension_numbers<[1], [0], [0], [1], [0, 0, 1, 1], [], []>} : vector<32x144xbf16>, vector<144x8xbf16>, vector<32x8xf32> -> vector<32x8xf32>
    %24 = vector.broadcast %6 : vector<32x1xf32> to vector<32x8xf32>
    %25 = arith.addf %23, %24 : vector<32x8xf32>
    %26 = arith.negf %25 : vector<32x8xf32>
    %27 = math.exp %26 : vector<32x8xf32>
    %cst_13 = arith.constant 1.000000e+00 : f32
    %28 = vector.broadcast %cst_13 : f32 to vector<32x8xf32>
    %29 = arith.addf %28, %27 : vector<32x8xf32>
    %30 = arith.divf %28, %29 : vector<32x8xf32>
    %31 = arith.mulf %25, %30 : vector<32x8xf32>
    %32 = arith.truncf %31 : vector<32x8xf32> to vector<32x8xbf16>
    %c0_14 = arith.constant 0 : index
    %c0_15 = arith.constant 0 : index
    %c0_16 = arith.constant 0 : index
    %c0_17 = arith.constant 0 : index
    %33 = vector.load %arg5[%c0_14, %c0_15, %c0_16, %c0_17] : memref<1x32x8x8xbf16, #tpu.memory_space<vmem>>, vector<1x32x1x8xbf16>
    %34 = vector.shape_cast %33 : vector<1x32x1x8xbf16> to vector<32x8xbf16>
    %35 = vector.shape_cast %32 : vector<32x8xbf16> to vector<1x32x1x8xbf16>
    tpu.vector_store %arg5[%c0_14, %c0_15, %c0_16, %c0_17], %35 {strides = array<i32>} : memref<1x32x8x8xbf16, #tpu.memory_space<vmem>>, vector<1x32x1x8xbf16>,
    %c1_18 = arith.constant 1 : index
    %c0_19 = arith.constant 0 : index
    %c0_20 = arith.constant 0 : index
    %36 = vector.load %arg6[%c1_18, %c0_19, %c0_20] : memref<10x16x10xbf16, #tpu.memory_space<vmem>>, vector<1x16x10xbf16>
    %37 = vector.shape_cast %36 : vector<1x16x10xbf16> to vector<16x10xbf16>
    %c2_21 = arith.constant 2 : index
    %c0_22 = arith.constant 0 : index
    %c0_23 = arith.constant 0 : index
    %38 = vector.load %arg6[%c2_21, %c0_22, %c0_23] : memref<10x16x10xbf16, #tpu.memory_space<vmem>>, vector<1x16x10xbf16>
    %39 = vector.shape_cast %38 : vector<1x16x10xbf16> to vector<16x10xbf16>
    %c3 = arith.constant 3 : index
    %c0_24 = arith.constant 0 : index
    %c0_25 = arith.constant 0 : index
    %40 = vector.load %arg6[%c3, %c0_24, %c0_25] : memref<10x16x10xbf16, #tpu.memory_space<vmem>>, vector<1x16x10xbf16>
    %41 = vector.shape_cast %40 : vector<1x16x10xbf16> to vector<16x10xbf16>
    %42 = vector.extract_strided_slice %37 {offsets = [0, 0], sizes = [16, 8], strides = [1, 1]} : vector<16x10xbf16> to vector<16x8xbf16>
    %43 = vector.extract_strided_slice %37 {offsets = [0, 1], sizes = [16, 8], strides = [1, 1]} : vector<16x10xbf16> to vector<16x8xbf16>
    %44 = vector.extract_strided_slice %37 {offsets = [0, 2], sizes = [16, 8], strides = [1, 1]} : vector<16x10xbf16> to vector<16x8xbf16>
    %45 = vector.extract_strided_slice %39 {offsets = [0, 0], sizes = [16, 8], strides = [1, 1]} : vector<16x10xbf16> to vector<16x8xbf16>
    %46 = vector.extract_strided_slice %39 {offsets = [0, 1], sizes = [16, 8], strides = [1, 1]} : vector<16x10xbf16> to vector<16x8xbf16>
    %47 = vector.extract_strided_slice %39 {offsets = [0, 2], sizes = [16, 8], strides = [1, 1]} : vector<16x10xbf16> to vector<16x8xbf16>
    %48 = vector.extract_strided_slice %41 {offsets = [0, 0], sizes = [16, 8], strides = [1, 1]} : vector<16x10xbf16> to vector<16x8xbf16>
    %49 = vector.extract_strided_slice %41 {offsets = [0, 1], sizes = [16, 8], strides = [1, 1]} : vector<16x10xbf16> to vector<16x8xbf16>
    %50 = vector.extract_strided_slice %41 {offsets = [0, 2], sizes = [16, 8], strides = [1, 1]} : vector<16x10xbf16> to vector<16x8xbf16>
    %51 = tpu.concatenate %42, %43, %44, %45, %46, %47, %48, %49, %50 in 0 : vector<16x8xbf16>, vector<16x8xbf16>, vector<16x8xbf16>, vector<16x8xbf16>, vector<16x8xbf16>, vector<16x8xbf16>, vector<16x8xbf16>, vector<16x8xbf16>, vector<16x8xbf16> -> vector<144x8xbf16>
    %cst_26 = arith.constant dense<0.000000e+00> : vector<32x8xf32>
    %52 = tpu.matmul %5, %51, %cst_26 {dimension_numbers = #tpu.dot_dimension_numbers<[1], [0], [0], [1], [0, 0, 1, 1], [], []>} : vector<32x144xbf16>, vector<144x8xbf16>, vector<32x8xf32> -> vector<32x8xf32>
    %53 = vector.broadcast %6 : vector<32x1xf32> to vector<32x8xf32>
    %54 = arith.addf %52, %53 : vector<32x8xf32>
    %55 = arith.negf %54 : vector<32x8xf32>
    %56 = math.exp %55 : vector<32x8xf32>
    %cst_27 = arith.constant 1.000000e+00 : f32
    %57 = vector.broadcast %cst_27 : f32 to vector<32x8xf32>
    %58 = arith.addf %57, %56 : vector<32x8xf32>
    %59 = arith.divf %57, %58 : vector<32x8xf32>
    %60 = arith.mulf %54, %59 : vector<32x8xf32>
    %61 = arith.truncf %60 : vector<32x8xf32> to vector<32x8xbf16>
    %c0_28 = arith.constant 0 : index
    %c0_29 = arith.constant 0 : index
    %c1_30 = arith.constant 1 : index
    %c0_31 = arith.constant 0 : index
    %62 = vector.load %arg5[%c0_28, %c0_29, %c1_30, %c0_31] : memref<1x32x8x8xbf16, #tpu.memory_space<vmem>>, vector<1x32x1x8xbf16>
    %63 = vector.shape_cast %62 : vector<1x32x1x8xbf16> to vector<32x8xbf16>
    %64 = vector.shape_cast %61 : vector<32x8xbf16> to vector<1x32x1x8xbf16>
    tpu.vector_store %arg5[%c0_28, %c0_29, %c1_30, %c0_31], %64 {strides = array<i32>} : memref<1x32x8x8xbf16, #tpu.memory_space<vmem>>, vector<1x32x1x8xbf16>,
    %c2_32 = arith.constant 2 : index
    %c0_33 = arith.constant 0 : index
    %c0_34 = arith.constant 0 : index
    %65 = vector.load %arg6[%c2_32, %c0_33, %c0_34] : memref<10x16x10xbf16, #tpu.memory_space<vmem>>, vector<1x16x10xbf16>
    %66 = vector.shape_cast %65 : vector<1x16x10xbf16> to vector<16x10xbf16>
    %c3_35 = arith.constant 3 : index
    %c0_36 = arith.constant 0 : index
    %c0_37 = arith.constant 0 : index
    %67 = vector.load %arg6[%c3_35, %c0_36, %c0_37] : memref<10x16x10xbf16, #tpu.memory_space<vmem>>, vector<1x16x10xbf16>
    %68 = vector.shape_cast %67 : vector<1x16x10xbf16> to vector<16x10xbf16>
    %c4 = arith.constant 4 : index
    %c0_38 = arith.constant 0 : index
    %c0_39 = arith.constant 0 : index
    %69 = vector.load %arg6[%c4, %c0_38, %c0_39] : memref<10x16x10xbf16, #tpu.memory_space<vmem>>, vector<1x16x10xbf16>
    %70 = vector.shape_cast %69 : vector<1x16x10xbf16> to vector<16x10xbf16>
    %71 = vector.extract_strided_slice %66 {offsets = [0, 0], sizes = [16, 8], strides = [1, 1]} : vector<16x10xbf16> to vector<16x8xbf16>
    %72 = vector.extract_strided_slice %66 {offsets = [0, 1], sizes = [16, 8], strides = [1, 1]} : vector<16x10xbf16> to vector<16x8xbf16>
    %73 = vector.extract_strided_slice %66 {offsets = [0, 2], sizes = [16, 8], strides = [1, 1]} : vector<16x10xbf16> to vector<16x8xbf16>
    %74 = vector.extract_strided_slice %68 {offsets = [0, 0], sizes = [16, 8], strides = [1, 1]} : vector<16x10xbf16> to vector<16x8xbf16>
    %75 = vector.extract_strided_slice %68 {offsets = [0, 1], sizes = [16, 8], strides = [1, 1]} : vector<16x10xbf16> to vector<16x8xbf16>
    %76 = vector.extract_strided_slice %68 {offsets = [0, 2], sizes = [16, 8], strides = [1, 1]} : vector<16x10xbf16> to vector<16x8xbf16>
    %77 = vector.extract_strided_slice %70 {offsets = [0, 0], sizes = [16, 8], strides = [1, 1]} : vector<16x10xbf16> to vector<16x8xbf16>
    %78 = vector.extract_strided_slice %70 {offsets = [0, 1], sizes = [16, 8], strides = [1, 1]} : vector<16x10xbf16> to vector<16x8xbf16>
    %79 = vector.extract_strided_slice %70 {offsets = [0, 2], sizes = [16, 8], strides = [1, 1]} : vector<16x10xbf16> to vector<16x8xbf16>
    %80 = tpu.concatenate %71, %72, %73, %74, %75, %76, %77, %78, %79 in 0 : vector<16x8xbf16>, vector<16x8xbf16>, vector<16x8xbf16>, vector<16x8xbf16>, vector<16x8xbf16>, vector<16x8xbf16>, vector<16x8xbf16>, vector<16x8xbf16>, vector<16x8xbf16> -> vector<144x8xbf16>
    %cst_40 = arith.constant dense<0.000000e+00> : vector<32x8xf32>
    %81 = tpu.matmul %5, %80, %cst_40 {dimension_numbers = #tpu.dot_dimension_numbers<[1], [0], [0], [1], [0, 0, 1, 1], [], []>} : vector<32x144xbf16>, vector<144x8xbf16>, vector<32x8xf32> -> vector<32x8xf32>
    %82 = vector.broadcast %6 : vector<32x1xf32> to vector<32x8xf32>
    %83 = arith.addf %81, %82 : vector<32x8xf32>
    %84 = arith.negf %83 : vector<32x8xf32>
    %85 = math.exp %84 : vector<32x8xf32>
    %cst_41 = arith.constant 1.000000e+00 : f32
    %86 = vector.broadcast %cst_41 : f32 to vector<32x8xf32>
    %87 = arith.addf %86, %85 : vector<32x8xf32>
    %88 = arith.divf %86, %87 : vector<32x8xf32>
    %89 = arith.mulf %83, %88 : vector<32x8xf32>
    %90 = arith.truncf %89 : vector<32x8xf32> to vector<32x8xbf16>
    %c0_42 = arith.constant 0 : index
    %c0_43 = arith.constant 0 : index
    %c2_44 = arith.constant 2 : index
    %c0_45 = arith.constant 0 : index
    %91 = vector.load %arg5[%c0_42, %c0_43, %c2_44, %c0_45] : memref<1x32x8x8xbf16, #tpu.memory_space<vmem>>, vector<1x32x1x8xbf16>
    %92 = vector.shape_cast %91 : vector<1x32x1x8xbf16> to vector<32x8xbf16>
    %93 = vector.shape_cast %90 : vector<32x8xbf16> to vector<1x32x1x8xbf16>
    tpu.vector_store %arg5[%c0_42, %c0_43, %c2_44, %c0_45], %93 {strides = array<i32>} : memref<1x32x8x8xbf16, #tpu.memory_space<vmem>>, vector<1x32x1x8xbf16>,
    %c3_46 = arith.constant 3 : index
    %c0_47 = arith.constant 0 : index
    %c0_48 = arith.constant 0 : index
    %94 = vector.load %arg6[%c3_46, %c0_47, %c0_48] : memref<10x16x10xbf16, #tpu.memory_space<vmem>>, vector<1x16x10xbf16>
    %95 = vector.shape_cast %94 : vector<1x16x10xbf16> to vector<16x10xbf16>
    %c4_49 = arith.constant 4 : index
    %c0_50 = arith.constant 0 : index
    %c0_51 = arith.constant 0 : index
    %96 = vector.load %arg6[%c4_49, %c0_50, %c0_51] : memref<10x16x10xbf16, #tpu.memory_space<vmem>>, vector<1x16x10xbf16>
    %97 = vector.shape_cast %96 : vector<1x16x10xbf16> to vector<16x10xbf16>
    %c5 = arith.constant 5 : index
    %c0_52 = arith.constant 0 : index
    %c0_53 = arith.constant 0 : index
    %98 = vector.load %arg6[%c5, %c0_52, %c0_53] : memref<10x16x10xbf16, #tpu.memory_space<vmem>>, vector<1x16x10xbf16>
    %99 = vector.shape_cast %98 : vector<1x16x10xbf16> to vector<16x10xbf16>
    %100 = vector.extract_strided_slice %95 {offsets = [0, 0], sizes = [16, 8], strides = [1, 1]} : vector<16x10xbf16> to vector<16x8xbf16>
    %101 = vector.extract_strided_slice %95 {offsets = [0, 1], sizes = [16, 8], strides = [1, 1]} : vector<16x10xbf16> to vector<16x8xbf16>
    %102 = vector.extract_strided_slice %95 {offsets = [0, 2], sizes = [16, 8], strides = [1, 1]} : vector<16x10xbf16> to vector<16x8xbf16>
    %103 = vector.extract_strided_slice %97 {offsets = [0, 0], sizes = [16, 8], strides = [1, 1]} : vector<16x10xbf16> to vector<16x8xbf16>
    %104 = vector.extract_strided_slice %97 {offsets = [0, 1], sizes = [16, 8], strides = [1, 1]} : vector<16x10xbf16> to vector<16x8xbf16>
    %105 = vector.extract_strided_slice %97 {offsets = [0, 2], sizes = [16, 8], strides = [1, 1]} : vector<16x10xbf16> to vector<16x8xbf16>
    %106 = vector.extract_strided_slice %99 {offsets = [0, 0], sizes = [16, 8], strides = [1, 1]} : vector<16x10xbf16> to vector<16x8xbf16>
    %107 = vector.extract_strided_slice %99 {offsets = [0, 1], sizes = [16, 8], strides = [1, 1]} : vector<16x10xbf16> to vector<16x8xbf16>
    %108 = vector.extract_strided_slice %99 {offsets = [0, 2], sizes = [16, 8], strides = [1, 1]} : vector<16x10xbf16> to vector<16x8xbf16>
    %109 = tpu.concatenate %100, %101, %102, %103, %104, %105, %106, %107, %108 in 0 : vector<16x8xbf16>, vector<16x8xbf16>, vector<16x8xbf16>, vector<16x8xbf16>, vector<16x8xbf16>, vector<16x8xbf16>, vector<16x8xbf16>, vector<16x8xbf16>, vector<16x8xbf16> -> vector<144x8xbf16>
    %cst_54 = arith.constant dense<0.000000e+00> : vector<32x8xf32>
    %110 = tpu.matmul %5, %109, %cst_54 {dimension_numbers = #tpu.dot_dimension_numbers<[1], [0], [0], [1], [0, 0, 1, 1], [], []>} : vector<32x144xbf16>, vector<144x8xbf16>, vector<32x8xf32> -> vector<32x8xf32>
    %111 = vector.broadcast %6 : vector<32x1xf32> to vector<32x8xf32>
    %112 = arith.addf %110, %111 : vector<32x8xf32>
    %113 = arith.negf %112 : vector<32x8xf32>
    %114 = math.exp %113 : vector<32x8xf32>
    %cst_55 = arith.constant 1.000000e+00 : f32
    %115 = vector.broadcast %cst_55 : f32 to vector<32x8xf32>
    %116 = arith.addf %115, %114 : vector<32x8xf32>
    %117 = arith.divf %115, %116 : vector<32x8xf32>
    %118 = arith.mulf %112, %117 : vector<32x8xf32>
    %119 = arith.truncf %118 : vector<32x8xf32> to vector<32x8xbf16>
    %c0_56 = arith.constant 0 : index
    %c0_57 = arith.constant 0 : index
    %c3_58 = arith.constant 3 : index
    %c0_59 = arith.constant 0 : index
    %120 = vector.load %arg5[%c0_56, %c0_57, %c3_58, %c0_59] : memref<1x32x8x8xbf16, #tpu.memory_space<vmem>>, vector<1x32x1x8xbf16>
    %121 = vector.shape_cast %120 : vector<1x32x1x8xbf16> to vector<32x8xbf16>
    %122 = vector.shape_cast %119 : vector<32x8xbf16> to vector<1x32x1x8xbf16>
    tpu.vector_store %arg5[%c0_56, %c0_57, %c3_58, %c0_59], %122 {strides = array<i32>} : memref<1x32x8x8xbf16, #tpu.memory_space<vmem>>, vector<1x32x1x8xbf16>,
    %c4_60 = arith.constant 4 : index
    %c0_61 = arith.constant 0 : index
    %c0_62 = arith.constant 0 : index
    %123 = vector.load %arg6[%c4_60, %c0_61, %c0_62] : memref<10x16x10xbf16, #tpu.memory_space<vmem>>, vector<1x16x10xbf16>
    %124 = vector.shape_cast %123 : vector<1x16x10xbf16> to vector<16x10xbf16>
    %c5_63 = arith.constant 5 : index
    %c0_64 = arith.constant 0 : index
    %c0_65 = arith.constant 0 : index
    %125 = vector.load %arg6[%c5_63, %c0_64, %c0_65] : memref<10x16x10xbf16, #tpu.memory_space<vmem>>, vector<1x16x10xbf16>
    %126 = vector.shape_cast %125 : vector<1x16x10xbf16> to vector<16x10xbf16>
    %c6 = arith.constant 6 : index
    %c0_66 = arith.constant 0 : index
    %c0_67 = arith.constant 0 : index
    %127 = vector.load %arg6[%c6, %c0_66, %c0_67] : memref<10x16x10xbf16, #tpu.memory_space<vmem>>, vector<1x16x10xbf16>
    %128 = vector.shape_cast %127 : vector<1x16x10xbf16> to vector<16x10xbf16>
    %129 = vector.extract_strided_slice %124 {offsets = [0, 0], sizes = [16, 8], strides = [1, 1]} : vector<16x10xbf16> to vector<16x8xbf16>
    %130 = vector.extract_strided_slice %124 {offsets = [0, 1], sizes = [16, 8], strides = [1, 1]} : vector<16x10xbf16> to vector<16x8xbf16>
    %131 = vector.extract_strided_slice %124 {offsets = [0, 2], sizes = [16, 8], strides = [1, 1]} : vector<16x10xbf16> to vector<16x8xbf16>
    %132 = vector.extract_strided_slice %126 {offsets = [0, 0], sizes = [16, 8], strides = [1, 1]} : vector<16x10xbf16> to vector<16x8xbf16>
    %133 = vector.extract_strided_slice %126 {offsets = [0, 1], sizes = [16, 8], strides = [1, 1]} : vector<16x10xbf16> to vector<16x8xbf16>
    %134 = vector.extract_strided_slice %126 {offsets = [0, 2], sizes = [16, 8], strides = [1, 1]} : vector<16x10xbf16> to vector<16x8xbf16>
    %135 = vector.extract_strided_slice %128 {offsets = [0, 0], sizes = [16, 8], strides = [1, 1]} : vector<16x10xbf16> to vector<16x8xbf16>
    %136 = vector.extract_strided_slice %128 {offsets = [0, 1], sizes = [16, 8], strides = [1, 1]} : vector<16x10xbf16> to vector<16x8xbf16>
    %137 = vector.extract_strided_slice %128 {offsets = [0, 2], sizes = [16, 8], strides = [1, 1]} : vector<16x10xbf16> to vector<16x8xbf16>
    %138 = tpu.concatenate %129, %130, %131, %132, %133, %134, %135, %136, %137 in 0 : vector<16x8xbf16>, vector<16x8xbf16>, vector<16x8xbf16>, vector<16x8xbf16>, vector<16x8xbf16>, vector<16x8xbf16>, vector<16x8xbf16>, vector<16x8xbf16>, vector<16x8xbf16> -> vector<144x8xbf16>
    %cst_68 = arith.constant dense<0.000000e+00> : vector<32x8xf32>
    %139 = tpu.matmul %5, %138, %cst_68 {dimension_numbers = #tpu.dot_dimension_numbers<[1], [0], [0], [1], [0, 0, 1, 1], [], []>} : vector<32x144xbf16>, vector<144x8xbf16>, vector<32x8xf32> -> vector<32x8xf32>
    %140 = vector.broadcast %6 : vector<32x1xf32> to vector<32x8xf32>
    %141 = arith.addf %139, %140 : vector<32x8xf32>
    %142 = arith.negf %141 : vector<32x8xf32>
    %143 = math.exp %142 : vector<32x8xf32>
    %cst_69 = arith.constant 1.000000e+00 : f32
    %144 = vector.broadcast %cst_69 : f32 to vector<32x8xf32>
    %145 = arith.addf %144, %143 : vector<32x8xf32>
    %146 = arith.divf %144, %145 : vector<32x8xf32>
    %147 = arith.mulf %141, %146 : vector<32x8xf32>
    %148 = arith.truncf %147 : vector<32x8xf32> to vector<32x8xbf16>
    %c0_70 = arith.constant 0 : index
    %c0_71 = arith.constant 0 : index
    %c4_72 = arith.constant 4 : index
    %c0_73 = arith.constant 0 : index
    %149 = vector.load %arg5[%c0_70, %c0_71, %c4_72, %c0_73] : memref<1x32x8x8xbf16, #tpu.memory_space<vmem>>, vector<1x32x1x8xbf16>
    %150 = vector.shape_cast %149 : vector<1x32x1x8xbf16> to vector<32x8xbf16>
    %151 = vector.shape_cast %148 : vector<32x8xbf16> to vector<1x32x1x8xbf16>
    tpu.vector_store %arg5[%c0_70, %c0_71, %c4_72, %c0_73], %151 {strides = array<i32>} : memref<1x32x8x8xbf16, #tpu.memory_space<vmem>>, vector<1x32x1x8xbf16>,
    %c5_74 = arith.constant 5 : index
    %c0_75 = arith.constant 0 : index
    %c0_76 = arith.constant 0 : index
    %152 = vector.load %arg6[%c5_74, %c0_75, %c0_76] : memref<10x16x10xbf16, #tpu.memory_space<vmem>>, vector<1x16x10xbf16>
    %153 = vector.shape_cast %152 : vector<1x16x10xbf16> to vector<16x10xbf16>
    %c6_77 = arith.constant 6 : index
    %c0_78 = arith.constant 0 : index
    %c0_79 = arith.constant 0 : index
    %154 = vector.load %arg6[%c6_77, %c0_78, %c0_79] : memref<10x16x10xbf16, #tpu.memory_space<vmem>>, vector<1x16x10xbf16>
    %155 = vector.shape_cast %154 : vector<1x16x10xbf16> to vector<16x10xbf16>
    %c7 = arith.constant 7 : index
    %c0_80 = arith.constant 0 : index
    %c0_81 = arith.constant 0 : index
    %156 = vector.load %arg6[%c7, %c0_80, %c0_81] : memref<10x16x10xbf16, #tpu.memory_space<vmem>>, vector<1x16x10xbf16>
    %157 = vector.shape_cast %156 : vector<1x16x10xbf16> to vector<16x10xbf16>
    %158 = vector.extract_strided_slice %153 {offsets = [0, 0], sizes = [16, 8], strides = [1, 1]} : vector<16x10xbf16> to vector<16x8xbf16>
    %159 = vector.extract_strided_slice %153 {offsets = [0, 1], sizes = [16, 8], strides = [1, 1]} : vector<16x10xbf16> to vector<16x8xbf16>
    %160 = vector.extract_strided_slice %153 {offsets = [0, 2], sizes = [16, 8], strides = [1, 1]} : vector<16x10xbf16> to vector<16x8xbf16>
    %161 = vector.extract_strided_slice %155 {offsets = [0, 0], sizes = [16, 8], strides = [1, 1]} : vector<16x10xbf16> to vector<16x8xbf16>
    %162 = vector.extract_strided_slice %155 {offsets = [0, 1], sizes = [16, 8], strides = [1, 1]} : vector<16x10xbf16> to vector<16x8xbf16>
    %163 = vector.extract_strided_slice %155 {offsets = [0, 2], sizes = [16, 8], strides = [1, 1]} : vector<16x10xbf16> to vector<16x8xbf16>
    %164 = vector.extract_strided_slice %157 {offsets = [0, 0], sizes = [16, 8], strides = [1, 1]} : vector<16x10xbf16> to vector<16x8xbf16>
    %165 = vector.extract_strided_slice %157 {offsets = [0, 1], sizes = [16, 8], strides = [1, 1]} : vector<16x10xbf16> to vector<16x8xbf16>
    %166 = vector.extract_strided_slice %157 {offsets = [0, 2], sizes = [16, 8], strides = [1, 1]} : vector<16x10xbf16> to vector<16x8xbf16>
    %167 = tpu.concatenate %158, %159, %160, %161, %162, %163, %164, %165, %166 in 0 : vector<16x8xbf16>, vector<16x8xbf16>, vector<16x8xbf16>, vector<16x8xbf16>, vector<16x8xbf16>, vector<16x8xbf16>, vector<16x8xbf16>, vector<16x8xbf16>, vector<16x8xbf16> -> vector<144x8xbf16>
    %cst_82 = arith.constant dense<0.000000e+00> : vector<32x8xf32>
    %168 = tpu.matmul %5, %167, %cst_82 {dimension_numbers = #tpu.dot_dimension_numbers<[1], [0], [0], [1], [0, 0, 1, 1], [], []>} : vector<32x144xbf16>, vector<144x8xbf16>, vector<32x8xf32> -> vector<32x8xf32>
    %169 = vector.broadcast %6 : vector<32x1xf32> to vector<32x8xf32>
    %170 = arith.addf %168, %169 : vector<32x8xf32>
    %171 = arith.negf %170 : vector<32x8xf32>
    %172 = math.exp %171 : vector<32x8xf32>
    %cst_83 = arith.constant 1.000000e+00 : f32
    %173 = vector.broadcast %cst_83 : f32 to vector<32x8xf32>
    %174 = arith.addf %173, %172 : vector<32x8xf32>
    %175 = arith.divf %173, %174 : vector<32x8xf32>
    %176 = arith.mulf %170, %175 : vector<32x8xf32>
    %177 = arith.truncf %176 : vector<32x8xf32> to vector<32x8xbf16>
    %c0_84 = arith.constant 0 : index
    %c0_85 = arith.constant 0 : index
    %c5_86 = arith.constant 5 : index
    %c0_87 = arith.constant 0 : index
    %178 = vector.load %arg5[%c0_84, %c0_85, %c5_86, %c0_87] : memref<1x32x8x8xbf16, #tpu.memory_space<vmem>>, vector<1x32x1x8xbf16>
    %179 = vector.shape_cast %178 : vector<1x32x1x8xbf16> to vector<32x8xbf16>
    %180 = vector.shape_cast %177 : vector<32x8xbf16> to vector<1x32x1x8xbf16>
    tpu.vector_store %arg5[%c0_84, %c0_85, %c5_86, %c0_87], %180 {strides = array<i32>} : memref<1x32x8x8xbf16, #tpu.memory_space<vmem>>, vector<1x32x1x8xbf16>,
    %c6_88 = arith.constant 6 : index
    %c0_89 = arith.constant 0 : index
    %c0_90 = arith.constant 0 : index
    %181 = vector.load %arg6[%c6_88, %c0_89, %c0_90] : memref<10x16x10xbf16, #tpu.memory_space<vmem>>, vector<1x16x10xbf16>
    %182 = vector.shape_cast %181 : vector<1x16x10xbf16> to vector<16x10xbf16>
    %c7_91 = arith.constant 7 : index
    %c0_92 = arith.constant 0 : index
    %c0_93 = arith.constant 0 : index
    %183 = vector.load %arg6[%c7_91, %c0_92, %c0_93] : memref<10x16x10xbf16, #tpu.memory_space<vmem>>, vector<1x16x10xbf16>
    %184 = vector.shape_cast %183 : vector<1x16x10xbf16> to vector<16x10xbf16>
    %c8 = arith.constant 8 : index
    %c0_94 = arith.constant 0 : index
    %c0_95 = arith.constant 0 : index
    %185 = vector.load %arg6[%c8, %c0_94, %c0_95] : memref<10x16x10xbf16, #tpu.memory_space<vmem>>, vector<1x16x10xbf16>
    %186 = vector.shape_cast %185 : vector<1x16x10xbf16> to vector<16x10xbf16>
    %187 = vector.extract_strided_slice %182 {offsets = [0, 0], sizes = [16, 8], strides = [1, 1]} : vector<16x10xbf16> to vector<16x8xbf16>
    %188 = vector.extract_strided_slice %182 {offsets = [0, 1], sizes = [16, 8], strides = [1, 1]} : vector<16x10xbf16> to vector<16x8xbf16>
    %189 = vector.extract_strided_slice %182 {offsets = [0, 2], sizes = [16, 8], strides = [1, 1]} : vector<16x10xbf16> to vector<16x8xbf16>
    %190 = vector.extract_strided_slice %184 {offsets = [0, 0], sizes = [16, 8], strides = [1, 1]} : vector<16x10xbf16> to vector<16x8xbf16>
    %191 = vector.extract_strided_slice %184 {offsets = [0, 1], sizes = [16, 8], strides = [1, 1]} : vector<16x10xbf16> to vector<16x8xbf16>
    %192 = vector.extract_strided_slice %184 {offsets = [0, 2], sizes = [16, 8], strides = [1, 1]} : vector<16x10xbf16> to vector<16x8xbf16>
    %193 = vector.extract_strided_slice %186 {offsets = [0, 0], sizes = [16, 8], strides = [1, 1]} : vector<16x10xbf16> to vector<16x8xbf16>
    %194 = vector.extract_strided_slice %186 {offsets = [0, 1], sizes = [16, 8], strides = [1, 1]} : vector<16x10xbf16> to vector<16x8xbf16>
    %195 = vector.extract_strided_slice %186 {offsets = [0, 2], sizes = [16, 8], strides = [1, 1]} : vector<16x10xbf16> to vector<16x8xbf16>
    %196 = tpu.concatenate %187, %188, %189, %190, %191, %192, %193, %194, %195 in 0 : vector<16x8xbf16>, vector<16x8xbf16>, vector<16x8xbf16>, vector<16x8xbf16>, vector<16x8xbf16>, vector<16x8xbf16>, vector<16x8xbf16>, vector<16x8xbf16>, vector<16x8xbf16> -> vector<144x8xbf16>
    %cst_96 = arith.constant dense<0.000000e+00> : vector<32x8xf32>
    %197 = tpu.matmul %5, %196, %cst_96 {dimension_numbers = #tpu.dot_dimension_numbers<[1], [0], [0], [1], [0, 0, 1, 1], [], []>} : vector<32x144xbf16>, vector<144x8xbf16>, vector<32x8xf32> -> vector<32x8xf32>
    %198 = vector.broadcast %6 : vector<32x1xf32> to vector<32x8xf32>
    %199 = arith.addf %197, %198 : vector<32x8xf32>
    %200 = arith.negf %199 : vector<32x8xf32>
    %201 = math.exp %200 : vector<32x8xf32>
    %cst_97 = arith.constant 1.000000e+00 : f32
    %202 = vector.broadcast %cst_97 : f32 to vector<32x8xf32>
    %203 = arith.addf %202, %201 : vector<32x8xf32>
    %204 = arith.divf %202, %203 : vector<32x8xf32>
    %205 = arith.mulf %199, %204 : vector<32x8xf32>
    %206 = arith.truncf %205 : vector<32x8xf32> to vector<32x8xbf16>
    %c0_98 = arith.constant 0 : index
    %c0_99 = arith.constant 0 : index
    %c6_100 = arith.constant 6 : index
    %c0_101 = arith.constant 0 : index
    %207 = vector.load %arg5[%c0_98, %c0_99, %c6_100, %c0_101] : memref<1x32x8x8xbf16, #tpu.memory_space<vmem>>, vector<1x32x1x8xbf16>
    %208 = vector.shape_cast %207 : vector<1x32x1x8xbf16> to vector<32x8xbf16>
    %209 = vector.shape_cast %206 : vector<32x8xbf16> to vector<1x32x1x8xbf16>
    tpu.vector_store %arg5[%c0_98, %c0_99, %c6_100, %c0_101], %209 {strides = array<i32>} : memref<1x32x8x8xbf16, #tpu.memory_space<vmem>>, vector<1x32x1x8xbf16>,
    %c7_102 = arith.constant 7 : index
    %c0_103 = arith.constant 0 : index
    %c0_104 = arith.constant 0 : index
    %210 = vector.load %arg6[%c7_102, %c0_103, %c0_104] : memref<10x16x10xbf16, #tpu.memory_space<vmem>>, vector<1x16x10xbf16>
    %211 = vector.shape_cast %210 : vector<1x16x10xbf16> to vector<16x10xbf16>
    %c8_105 = arith.constant 8 : index
    %c0_106 = arith.constant 0 : index
    %c0_107 = arith.constant 0 : index
    %212 = vector.load %arg6[%c8_105, %c0_106, %c0_107] : memref<10x16x10xbf16, #tpu.memory_space<vmem>>, vector<1x16x10xbf16>
    %213 = vector.shape_cast %212 : vector<1x16x10xbf16> to vector<16x10xbf16>
    %c9 = arith.constant 9 : index
    %c0_108 = arith.constant 0 : index
    %c0_109 = arith.constant 0 : index
    %214 = vector.load %arg6[%c9, %c0_108, %c0_109] : memref<10x16x10xbf16, #tpu.memory_space<vmem>>, vector<1x16x10xbf16>
    %215 = vector.shape_cast %214 : vector<1x16x10xbf16> to vector<16x10xbf16>
    %216 = vector.extract_strided_slice %211 {offsets = [0, 0], sizes = [16, 8], strides = [1, 1]} : vector<16x10xbf16> to vector<16x8xbf16>
    %217 = vector.extract_strided_slice %211 {offsets = [0, 1], sizes = [16, 8], strides = [1, 1]} : vector<16x10xbf16> to vector<16x8xbf16>
    %218 = vector.extract_strided_slice %211 {offsets = [0, 2], sizes = [16, 8], strides = [1, 1]} : vector<16x10xbf16> to vector<16x8xbf16>
    %219 = vector.extract_strided_slice %213 {offsets = [0, 0], sizes = [16, 8], strides = [1, 1]} : vector<16x10xbf16> to vector<16x8xbf16>
    %220 = vector.extract_strided_slice %213 {offsets = [0, 1], sizes = [16, 8], strides = [1, 1]} : vector<16x10xbf16> to vector<16x8xbf16>
    %221 = vector.extract_strided_slice %213 {offsets = [0, 2], sizes = [16, 8], strides = [1, 1]} : vector<16x10xbf16> to vector<16x8xbf16>
    %222 = vector.extract_strided_slice %215 {offsets = [0, 0], sizes = [16, 8], strides = [1, 1]} : vector<16x10xbf16> to vector<16x8xbf16>
    %223 = vector.extract_strided_slice %215 {offsets = [0, 1], sizes = [16, 8], strides = [1, 1]} : vector<16x10xbf16> to vector<16x8xbf16>
    %224 = vector.extract_strided_slice %215 {offsets = [0, 2], sizes = [16, 8], strides = [1, 1]} : vector<16x10xbf16> to vector<16x8xbf16>
    %225 = tpu.concatenate %216, %217, %218, %219, %220, %221, %222, %223, %224 in 0 : vector<16x8xbf16>, vector<16x8xbf16>, vector<16x8xbf16>, vector<16x8xbf16>, vector<16x8xbf16>, vector<16x8xbf16>, vector<16x8xbf16>, vector<16x8xbf16>, vector<16x8xbf16> -> vector<144x8xbf16>
    %cst_110 = arith.constant dense<0.000000e+00> : vector<32x8xf32>
    %226 = tpu.matmul %5, %225, %cst_110 {dimension_numbers = #tpu.dot_dimension_numbers<[1], [0], [0], [1], [0, 0, 1, 1], [], []>} : vector<32x144xbf16>, vector<144x8xbf16>, vector<32x8xf32> -> vector<32x8xf32>
    %227 = vector.broadcast %6 : vector<32x1xf32> to vector<32x8xf32>
    %228 = arith.addf %226, %227 : vector<32x8xf32>
    %229 = arith.negf %228 : vector<32x8xf32>
    %230 = math.exp %229 : vector<32x8xf32>
    %cst_111 = arith.constant 1.000000e+00 : f32
    %231 = vector.broadcast %cst_111 : f32 to vector<32x8xf32>
    %232 = arith.addf %231, %230 : vector<32x8xf32>
    %233 = arith.divf %231, %232 : vector<32x8xf32>
    %234 = arith.mulf %228, %233 : vector<32x8xf32>
    %235 = arith.truncf %234 : vector<32x8xf32> to vector<32x8xbf16>
    %c0_112 = arith.constant 0 : index
    %c0_113 = arith.constant 0 : index
    %c7_114 = arith.constant 7 : index
    %c0_115 = arith.constant 0 : index
    %236 = vector.load %arg5[%c0_112, %c0_113, %c7_114, %c0_115] : memref<1x32x8x8xbf16, #tpu.memory_space<vmem>>, vector<1x32x1x8xbf16>
    %237 = vector.shape_cast %236 : vector<1x32x1x8xbf16> to vector<32x8xbf16>
    %238 = vector.shape_cast %235 : vector<32x8xbf16> to vector<1x32x1x8xbf16>
    tpu.vector_store %arg5[%c0_112, %c0_113, %c7_114, %c0_115], %238 {strides = array<i32>} : memref<1x32x8x8xbf16, #tpu.memory_space<vmem>>, vector<1x32x1x8xbf16>,
    return
  }
  func.func @transform_1(%arg0: i32, %arg1: i32) -> (i32, i32) {
    %c0_i32 = arith.constant 0 : i32
    %c0_i32_0 = arith.constant 0 : i32
    %c0_i32_1 = arith.constant 0 : i32
    return %c0_i32, %c0_i32_0 : i32, i32
  }
  func.func @transform_2(%arg0: i32, %arg1: i32) -> (i32, i32) {
    %c0_i32 = arith.constant 0 : i32
    %c0_i32_0 = arith.constant 0 : i32
    %c0_i32_1 = arith.constant 0 : i32
    return %c0_i32, %c0_i32_0 : i32, i32
  }
  func.func @transform_3(%arg0: i32, %arg1: i32) -> (i32, i32, i32, i32) {
    %c0_i32 = arith.constant 0 : i32
    %c0_i32_0 = arith.constant 0 : i32
    %c0_i32_1 = arith.constant 0 : i32
    return %arg0, %c0_i32, %arg1, %c0_i32_0 : i32, i32, i32, i32
  }
}

</mosaic_0001>

<bundles_post_ra>
// kernel: _lambda_.1
= control target key start
LH: loop header
LB: loop body
LE: loop exit
PB: predicated region body
PF: predicated region fallthrough
CT: control target
= control target key end

     0   :  { %s5759_s12 = smov 0   ;;  %s5761_s13 = smov 0   ;;  %s8127_s0 = inlined_call_operand.vmem [shape: bf16[2,10,16,10], index: 0, kind: input, shape index: {}]   ;;  %s8128_s1 = inlined_call_operand.vmem [shape: bf16[32,144], index: 1, kind: input, shape index: {}]   ;;  %s8129_s2 = inlined_call_operand.vmem [shape: f32[32,1], index: 2, kind: input, shape index: {}]   ;;  %s8130_s3 = inlined_call_operand.vmem [shape: bf16[2,32,8,8], index: 3, kind: output, shape index: {}]  }
   0x1   :  { %s5763_s14 = smov 0  }
   0x2 LB: > { %s25_s15 = sadd.s32 1, %s5728_s13  ;;  %p5338_p0 = scmp.ge.s32.totalorder %s5732_s14, 1  ;;  %s5732_s14 = sphi %s5763_s14, %s13_s14   ;;  %s5728_s13 = sphi %s5761_s13, %s8162_s13   ;;  %s5724_s12 = sphi %s5759_s12, %s8161_s12  }
   0x3   : > { %p27_p1 = scmp.ge.s32.totalorder %s25_s15, 2  ;;  %p117_p2 = scmp.lt.s32.totalorder %s5732_s14, 3 }
   0x5   : > { %s8164_s15 = smov (%p27_p1, %s25_s15), 0  ;;  %p118_p3 = pnand %p5338_p0, %p117_p2 }
   0x7   : > { %121 = sbr.rel (%p118_p3) target bundleno = 787 (0x313), region = 28 }
   0xe   : > { %p137_p4 = scmp.lt.s32.totalorder %s5724_s12, 1  ;;  %s5542_s16 = smul.u32 80, %s5724_s12 }
  0x10   : > { %s8166_s12 = smov (!%p137_p4, %s5724_s12), 1  ;;  %s151_s19 = scalar_lea.vmem %s8127_s0, %s5542_s16 }
  0x11   : > { %s5541_s20 = sshll.u32 %s8166_s12, 7  ;;  %v184_v0 = vld [vmem:[%s151_s19] sm:$0xff]  ;;  %v5780_v1 = vld [vmem:[%s151_s19 + $0x8] sm:$0xff]  ;;  %v5782_v2 = vld [vmem:[%s151_s19 + $0x10] sm:$0xff] }
  0x12   : > { %s5787_s23 = scalar_lea.vmem %s8130_s3, %s5541_s20  ;;  %v5789_v3 = vld [vmem:[%s151_s19 + $0x18] sm:$0xff]  ;;  %v5791_v4 = vld [vmem:[%s151_s19 + $0x20] sm:$0xff]  ;;  %v5793_v5 = vld [vmem:[%s151_s19 + $0x28] sm:$0xff] }
  0x13   : > { %v5795_v6 = vld [vmem:[%s151_s19 + $0x30] sm:$0xff]  ;;  %v5797_v7 = vld [vmem:[%s151_s19 + $0x38] sm:$0xff]  ;;  %v5799_v8 = vld [vmem:[%s151_s19 + $0x40] sm:$0xff] }
  0x14   : > { %v5801_v9 = vld [vmem:[%s151_s19 + $0x48] sm:$0xff] }
  0x15   : > { %211 = vsyncadd [#allocation3], 1280 }
  0x16   : > { %5720 = dma.done.wait [#allocation3], 1280 }
  0x17   : > { %5721 = vsyncadd [#allocation3], 4294966016  ;;  %s5734_s24 = smov 127   ;;  %v5735_v10 = vmov 0   ;;  %s5736_s25 = smov 126   ;;  %vm289_vm0 = vcmask 130048  }
  0x18   : > { %231 = vrot.lane.b32.xlu0 %v184_v0, %s5734_s24  ;;  %899 = vrot.lane.b32.xlu1 %v5780_v1, %s5734_s24  ;;  %v5827_v11 = vld [vmem:[%s8128_s1 + $0x4] ss:$8 sps:$4 sm:$0xff]   ;;  %v223_v14 = vld [vmem:[%s8129_s2 + $0x10] sm:$0xff]  ;;  %vm795_vm1 = vcmask 57344   ;;  %vm796_vm2 = vsmask.f32 256 }
  0x19   : > { %296 = vmatprep.subr.bf16.mxu0 %v5735_v10  ;;  %919 = vmatprep.subr.bf16.mxu1 %v5735_v10  ;;  %v221_v12 = vld [vmem:[%s8129_s2] sm:$0xff]  ;;  %v222_v13 = vld [vmem:[%s8129_s2 + $0x8] sm:$0xff]  ;;  %v224_v15 = vld [vmem:[%s8129_s2 + $0x18] sm:$0xff]  ;;  %vm1418_vm4 = vsmask.f32 7938  ;;  %vm2040_vm6 = vcmask 58369  }
  0x1a   : > { %297 = vmatpush1.bf16.msra.mxu0 %v184_v0  ;;  %920 = vmatpush1.bf16.msra.mxu1 %v5780_v1  ;;  %v5945_v27 = vld [vmem:[%s8128_s1] ss:$8 sps:$4 sm:$0xff]   ;;  %v5952_v29 = vld [vmem:[%s8128_s1 + $0x14] ss:$8 sps:$4 sm:$0xff]   ;;  %v5964_v32 = vld [vmem:[%s8128_s1 + $0x10] ss:$8 sps:$4 sm:$0xff]  }
  0x1b   : > { %298 = vmatprep.subr.bf16.mxu0 %v5735_v10  ;;  %921 = vmatprep.subr.bf16.mxu1 %v5735_v10  ;;  %vm6198_vm3 = vmand %vm795_vm1, %vm796_vm2  ;;  %vm2041_vm7 = vsmask.f32 1280  ;;  %vm2663_vm9 = vsmask.f32 7942  ;;  %vm3285_vm11 = vcmask 59394  }
  0x1c   : > { %234 = vrot.lane.b32.xlu0 %v184_v0, %s5736_s25  ;;  %238 = vrot.lane.b32.xlu1 %v5780_v1, %s5734_s24  ;;  %vm6320_vm5 = vmand %vm795_vm1, %vm1418_vm4  ;;  %vm3286_vm12 = vsmask.f32 2304  ;;  %vm3908_vm14 = vsmask.f32 7946  ;;  %vm4531_vm1 = vsmask.f32 3328 }
  0x1d   : > { %5572 = vset.pattern.permute.xlu0 %v5735_v10  ;;  %5573 = vset.pattern.permute.xlu1 %v5735_v10  ;;  %vm6777_vm8 = vmand %vm2040_vm6, %vm2041_vm7 }
  0x1e   : > { %5346 = vmatprep.mubr.msk.bf16.mxu0 %vm289_vm0, %v5827_v11  ;;  %5370 = vmatprep.mubr.msk.bf16.mxu1 %vm289_vm0, %v5827_v11  ;;  %vm6902_vm10 = vmand %vm2040_vm6, %vm2663_vm9 }
  0x1f   : > { %vm7272_vm13 = vmand %vm3285_vm11, %vm3286_vm12 }
  0x20   : > { %902 = vrot.lane.b32.xlu0 %v5780_v1, %s5736_s25  ;;  %241 = vrot.lane.b32.xlu1 %v5780_v1, %s5736_s25  ;;  %vm7369_vm15 = vmand %vm3285_vm11, %vm3908_vm14 }
  0x24   : > { %906 = vrot.lane.b32.xlu0 %v5782_v2, %s5734_s24  ;;  %245 = vrot.lane.b32.xlu1 %v5782_v2, %s5734_s24 }
  0x28   : > { %909 = vrot.lane.b32.xlu0 %v5782_v2, %s5736_s25  ;;  %248 = vrot.lane.b32.xlu1 %v5782_v2, %s5736_s25 }
  0x2c   : > { %913 = vrot.lane.b32.xlu0 %v5789_v3, %s5734_s24  ;;  %1521 = vrot.lane.b32.xlu1 %v5782_v2, %s5734_s24 }
  0x30   : > { %916 = vrot.lane.b32.xlu0 %v5789_v3, %s5736_s25  ;;  %1524 = vrot.lane.b32.xlu1 %v5782_v2, %s5736_s25 }
  0x34   : > { %2144 = vrot.lane.b32.xlu0 %v5789_v3, %s5734_s24  ;;  %1528 = vrot.lane.b32.xlu1 %v5789_v3, %s5734_s24 }
  0x38   : > { %2147 = vrot.lane.b32.xlu0 %v5789_v3, %s5736_s25  ;;  %1531 = vrot.lane.b32.xlu1 %v5789_v3, %s5736_s25 }
  0x3c   : > { %2151 = vrot.lane.b32.xlu0 %v5791_v4, %s5734_s24  ;;  %1535 = vrot.lane.b32.xlu1 %v5791_v4, %s5734_s24 }
  0x40   : > { %2154 = vrot.lane.b32.xlu0 %v5791_v4, %s5736_s25  ;;  %1538 = vrot.lane.b32.xlu1 %v5791_v4, %s5736_s25 }
  0x44   : > { %2158 = vrot.lane.b32.xlu0 %v5793_v5, %s5734_s24  ;;  %2766 = vrot.lane.b32.xlu1 %v5791_v4, %s5734_s24 }
  0x48   : > { %2161 = vrot.lane.b32.xlu0 %v5793_v5, %s5736_s25  ;;  %2769 = vrot.lane.b32.xlu1 %v5791_v4, %s5736_s25 }
  0x4c   : > { %3389 = vrot.lane.b32.xlu0 %v5793_v5, %s5734_s24  ;;  %2773 = vrot.lane.b32.xlu1 %v5793_v5, %s5734_s24 }
  0x50   : > { %3392 = vrot.lane.b32.xlu0 %v5793_v5, %s5736_s25  ;;  %2776 = vrot.lane.b32.xlu1 %v5793_v5, %s5736_s25 }
  0x54   : > { %3396 = vrot.lane.b32.xlu0 %v5795_v6, %s5734_s24  ;;  %2780 = vrot.lane.b32.xlu1 %v5795_v6, %s5734_s24 }
  0x58   : > { %3399 = vrot.lane.b32.xlu0 %v5795_v6, %s5736_s25  ;;  %2783 = vrot.lane.b32.xlu1 %v5795_v6, %s5736_s25 }
  0x5c   : > { %3403 = vrot.lane.b32.xlu0 %v5797_v7, %s5734_s24  ;;  %4011 = vrot.lane.b32.xlu1 %v5795_v6, %s5734_s24 }
  0x60   : > { %3406 = vrot.lane.b32.xlu0 %v5797_v7, %s5736_s25  ;;  %4014 = vrot.lane.b32.xlu1 %v5795_v6, %s5736_s25 }
  0x64   : > { %4634 = vrot.lane.b32.xlu0 %v5797_v7, %s5734_s24  ;;  %4018 = vrot.lane.b32.xlu1 %v5797_v7, %s5734_s24 }
  0x68   : > { %4637 = vrot.lane.b32.xlu0 %v5797_v7, %s5736_s25  ;;  %4021 = vrot.lane.b32.xlu1 %v5797_v7, %s5736_s25 }
  0x6c   : > { %4641 = vrot.lane.b32.xlu0 %v5799_v8, %s5734_s24  ;;  %4025 = vrot.lane.b32.xlu1 %v5799_v8, %s5734_s24 }
  0x70   : > { %4644 = vrot.lane.b32.xlu0 %v5799_v8, %s5736_s25  ;;  %4028 = vrot.lane.b32.xlu1 %v5799_v8, %s5736_s25 }
  0x74   : > { %4648 = vrot.lane.b32.xlu0 %v5801_v9, %s5734_s24  ;;  %4651 = vrot.lane.b32.xlu1 %v5801_v9, %s5736_s25 }
  0x78   : > { %253 = vperm.xlu0 %5572, %v221_v12   ;;  %258 = vperm.xlu1 %5573, %v222_v13  }
  0x7c   : > { %263 = vperm.xlu1 %5573, %v223_v14   ;;  %268 = vperm.xlu0 %5572, %v224_v15  }
  0x8a   : > { %v232_v16 = vpop.permute.xlu0 %231  ;;  %v900_v17 = vpop.permute.xlu1 %899 }
  0x8b   : > { %299 = vmatpush1.bf16.msra.mxu0 %v232_v16  ;;  %922 = vmatpush1.bf16.msra.mxu1 %v900_v17 }
  0x8c   : > { %300 = vmatprep.subr.bf16.mxu0 %v5735_v10  ;;  %923 = vmatprep.subr.bf16.mxu1 %v5735_v10 }
  0x8e   : > { %v235_v18 = vpop.permute.xlu0 %234  ;;  %v239_v20 = vpop.permute.xlu1 %238 }
  0x8f   : > { %301 = vmatpush1.bf16.msra.mxu0 %v235_v18 }
  0x90   : > { %302 = vmatprep.subr.bf16.mxu0 %v5735_v10 }
  0x92   : > { %v903_v19 = vpop.permute.xlu0 %902  ;;  %v242_v22 = vpop.permute.xlu1 %241 }
  0x93   : > { %303 = vmatpush1.bf16.msra.mxu0 %v5780_v1  ;;  %924 = vmatpush1.bf16.msra.mxu1 %v903_v19 }
  0x94   : > { %304 = vmatprep.subr.bf16.mxu0 %v5735_v10  ;;  %925 = vmatprep.subr.bf16.mxu1 %v5735_v10 }
  0x96   : > { %v907_v21 = vpop.permute.xlu0 %906  ;;  %v246_v24 = vpop.permute.xlu1 %245 }
  0x97   : > { %305 = vmatpush1.bf16.msra.mxu0 %v239_v20  ;;  %926 = vmatpush1.bf16.msra.mxu1 %v5782_v2 }
  0x98   : > { %306 = vmatprep.subr.bf16.mxu0 %v5735_v10  ;;  %927 = vmatprep.subr.bf16.mxu1 %v5735_v10 }
  0x9a   : > { %v910_v23 = vpop.permute.xlu0 %909  ;;  %v249_v26 = vpop.permute.xlu1 %248 }
  0x9b   : > { %307 = vmatpush1.bf16.msra.mxu0 %v242_v22  ;;  %928 = vmatpush1.bf16.msra.mxu1 %v907_v21 }
  0x9c   : > { %308 = vmatprep.subr.bf16.mxu0 %v5735_v10  ;;  %929 = vmatprep.subr.bf16.mxu1 %v5735_v10 }
  0x9e   : > { %v914_v25 = vpop.permute.xlu0 %913  ;;  %v1522_v30 = vpop.permute.xlu1 %1521 }
  0x9f   : > { %309 = vmatpush1.bf16.msra.mxu0 %v5782_v2  ;;  %930 = vmatpush1.bf16.msra.mxu1 %v910_v23 }
  0xa0   : > { %310 = vmatprep.subr.bf16.mxu0 %v5735_v10  ;;  %931 = vmatprep.subr.bf16.mxu1 %v5735_v10 }
  0xa2   : > { %v917_v28 = vpop.permute.xlu0 %916  ;;  %v1525_v33 = vpop.permute.xlu1 %1524 }
  0xa3   : > { %311 = vmatpush1.bf16.msra.mxu0 %v246_v24  ;;  %932 = vmatpush1.bf16.msra.mxu1 %v5789_v3 }
  0xa4   : > { %312 = vmatprep.subr.bf16.mxu0 %v5735_v10  ;;  %933 = vmatprep.subr.bf16.mxu1 %v5735_v10 }
  0xa6   : > { %v2145_v31 = vpop.permute.xlu0 %2144  ;;  %v1529_v35 = vpop.permute.xlu1 %1528 }
  0xa7   : > { %313 = vmatpush1.bf16.msra.mxu0 %v249_v26  ;;  %934 = vmatpush1.bf16.msra.mxu1 %v914_v25 }
  0xa8   : > { %935 = vmatprep.subr.bf16.mxu1 %v5735_v10  ;;  %1541 = vmatprep.subr.bf16.mxu0 %v5735_v10 }
  0xaa   : > { %329 = vmatmul.mubr.bf16.vlgmr.msra.gmra.mrb[0].mxu0 %v5945_v27  ;;  %v2148_v34 = vpop.permute.xlu0 %2147  ;;  %v1532_v37 = vpop.permute.xlu1 %1531 }
  0xab   : > { %936 = vmatpush1.bf16.msra.mxu1 %v917_v28  ;;  %1542 = vmatpush1.bf16.msra.mxu0 %v5782_v2 }
  0xac   : > { %1543 = vmatprep.subr.bf16.mxu0 %v5735_v10  ;;  %2164 = vmatprep.subr.bf16.mxu1 %v5735_v10 }
  0xad   : > { %5347 = vmatprep.mubr.msk.bf16.mxu0 %vm289_vm0, %v5952_v29 }
  0xae   : > { %952 = vmatmul.mubr.bf16.vlgmr.msra.gmra.mrb[0].mxu1 %v5945_v27  ;;  %v2152_v36 = vpop.permute.xlu0 %2151  ;;  %v1536_v39 = vpop.permute.xlu1 %1535 }
  0xaf   : > { %1544 = vmatpush1.bf16.msra.mxu0 %v1522_v30  ;;  %2165 = vmatpush1.bf16.msra.mxu1 %v5789_v3 }
  0xb0   : > { %1545 = vmatprep.subr.bf16.mxu0 %v5735_v10  ;;  %2166 = vmatprep.subr.bf16.mxu1 %v5735_v10 }
  0xb1   : > { %5371 = vmatprep.mubr.msk.bf16.mxu1 %vm289_vm0, %v5952_v29 }
  0xb2   : > { %337 = vmatmul.mubr.bf16.gmra.mrb[4].mxu0 %v5964_v32  ;;  %v2155_v38 = vpop.permute.xlu0 %2154  ;;  %v1539_v41 = vpop.permute.xlu1 %1538 }
  0xb3   : > { %1546 = vmatpush1.bf16.msra.mxu0 %v1525_v33  ;;  %2167 = vmatpush1.bf16.msra.mxu1 %v2145_v31 }
  0xb4   : > { %1547 = vmatprep.subr.bf16.mxu0 %v5735_v10  ;;  %2168 = vmatprep.subr.bf16.mxu1 %v5735_v10 }
  0xb5   : > { %5394 = vmatprep.mubr.msk.bf16.mxu0 %vm289_vm0, %v5827_v11 }
  0xb6   : > { %960 = vmatmul.mubr.bf16.gmra.mrb[4].mxu1 %v5964_v32  ;;  %v2159_v40 = vpop.permute.xlu0 %2158  ;;  %v2767_v43 = vpop.permute.xlu1 %2766 }
  0xb7   : > { %1548 = vmatpush1.bf16.msra.mxu0 %v5789_v3  ;;  %2169 = vmatpush1.bf16.msra.mxu1 %v2148_v34 }
  0xb8   : > { %1549 = vmatprep.subr.bf16.mxu0 %v5735_v10  ;;  %2170 = vmatprep.subr.bf16.mxu1 %v5735_v10 }
  0xb9   : > { %5418 = vmatprep.mubr.msk.bf16.mxu1 %vm289_vm0, %v5827_v11 }
  0xba   : > { %v2162_v42 = vpop.permute.xlu0 %2161  ;;  %v2770_v45 = vpop.permute.xlu1 %2769 }
  0xbb   : > { %1550 = vmatpush1.bf16.msra.mxu0 %v1529_v35  ;;  %2171 = vmatpush1.bf16.msra.mxu1 %v5791_v4 }
  0xbc   : > { %1551 = vmatprep.subr.bf16.mxu0 %v5735_v10  ;;  %2172 = vmatprep.subr.bf16.mxu1 %v5735_v10 }
  0xbe   : > { %v3390_v44 = vpop.permute.xlu0 %3389  ;;  %v2774_v47 = vpop.permute.xlu1 %2773 }
  0xbf   : > { %1552 = vmatpush1.bf16.msra.mxu0 %v1532_v37  ;;  %2173 = vmatpush1.bf16.msra.mxu1 %v2152_v36 }
  0xc0   : > { %1553 = vmatprep.subr.bf16.mxu0 %v5735_v10  ;;  %2174 = vmatprep.subr.bf16.mxu1 %v5735_v10 }
  0xc2   : > { %v3393_v46 = vpop.permute.xlu0 %3392  ;;  %v2777_v49 = vpop.permute.xlu1 %2776 }
  0xc3   : > { %1554 = vmatpush1.bf16.msra.mxu0 %v5791_v4  ;;  %2175 = vmatpush1.bf16.msra.mxu1 %v2155_v38 }
  0xc4   : > { %1555 = vmatprep.subr.bf16.mxu0 %v5735_v10  ;;  %2176 = vmatprep.subr.bf16.mxu1 %v5735_v10 }
  0xc6   : > { %v3397_v48 = vpop.permute.xlu0 %3396  ;;  %v2781_v51 = vpop.permute.xlu1 %2780 }
  0xc7   : > { %1556 = vmatpush1.bf16.msra.mxu0 %v1536_v39  ;;  %2177 = vmatpush1.bf16.msra.mxu1 %v5793_v5 }
  0xc8   : > { %1557 = vmatprep.subr.bf16.mxu0 %v5735_v10  ;;  %2178 = vmatprep.subr.bf16.mxu1 %v5735_v10 }
  0xca   : > { %v3400_v50 = vpop.permute.xlu0 %3399  ;;  %v2784_v53 = vpop.permute.xlu1 %2783 }
  0xcb   : > { %1558 = vmatpush1.bf16.msra.mxu0 %v1539_v41  ;;  %2179 = vmatpush1.bf16.msra.mxu1 %v2159_v40 }
  0xcc   : > { %2180 = vmatprep.subr.bf16.mxu1 %v5735_v10  ;;  %2786 = vmatprep.subr.bf16.mxu0 %v5735_v10 }
  0xce   : > { %1574 = vmatmul.mubr.bf16.vlgmr.msra.gmra.mrb[8].mxu0 %v5945_v27  ;;  %v3404_v52 = vpop.permute.xlu0 %3403  ;;  %v4012_v55 = vpop.permute.xlu1 %4011 }
  0xcf   : > { %2181 = vmatpush1.bf16.msra.mxu1 %v2162_v42  ;;  %2787 = vmatpush1.bf16.msra.mxu0 %v5791_v4 }
  0xd0   : > { %2788 = vmatprep.subr.bf16.mxu0 %v5735_v10  ;;  %3409 = vmatprep.subr.bf16.mxu1 %v5735_v10 }
  0xd1   : > { %5395 = vmatprep.mubr.msk.bf16.mxu0 %vm289_vm0, %v5952_v29 }
  0xd2   : > { %2197 = vmatmul.mubr.bf16.vlgmr.msra.gmra.mrb[8].mxu1 %v5945_v27  ;;  %v3407_v54 = vpop.permute.xlu0 %3406  ;;  %v4015_v57 = vpop.permute.xlu1 %4014 }
  0xd3   : > { %2789 = vmatpush1.bf16.msra.mxu0 %v2767_v43  ;;  %3410 = vmatpush1.bf16.msra.mxu1 %v5793_v5 }
  0xd4   : > { %2790 = vmatprep.subr.bf16.mxu0 %v5735_v10  ;;  %3411 = vmatprep.subr.bf16.mxu1 %v5735_v10 }
  0xd5   : > { %5419 = vmatprep.mubr.msk.bf16.mxu1 %vm289_vm0, %v5952_v29 }
  0xd6   : > { %1582 = vmatmul.mubr.bf16.gmra.mrb[12].mxu0 %v5964_v32  ;;  %v4635_v56 = vpop.permute.xlu0 %4634  ;;  %v4019_v59 = vpop.permute.xlu1 %4018 }
  0xd7   : > { %2791 = vmatpush1.bf16.msra.mxu0 %v2770_v45  ;;  %3412 = vmatpush1.bf16.msra.mxu1 %v3390_v44 }
  0xd8   : > { %2792 = vmatprep.subr.bf16.mxu0 %v5735_v10  ;;  %3413 = vmatprep.subr.bf16.mxu1 %v5735_v10 }
  0xd9   : > { %5442 = vmatprep.mubr.msk.bf16.mxu0 %vm289_vm0, %v5827_v11 }
  0xda   : > { %2205 = vmatmul.mubr.bf16.gmra.mrb[12].mxu1 %v5964_v32  ;;  %v4638_v58 = vpop.permute.xlu0 %4637  ;;  %v4022_v61 = vpop.permute.xlu1 %4021 }
  0xdb   : > { %2793 = vmatpush1.bf16.msra.mxu0 %v5793_v5  ;;  %3414 = vmatpush1.bf16.msra.mxu1 %v3393_v46 }
  0xdc   : > { %2794 = vmatprep.subr.bf16.mxu0 %v5735_v10  ;;  %3415 = vmatprep.subr.bf16.mxu1 %v5735_v10 }
  0xdd   : > { %5466 = vmatprep.mubr.msk.bf16.mxu1 %vm289_vm0, %v5827_v11 }
  0xde   : > { %v4642_v60 = vpop.permute.xlu0 %4641  ;;  %v4026_v63 = vpop.permute.xlu1 %4025 }
  0xdf   : > { %2795 = vmatpush1.bf16.msra.mxu0 %v2774_v47  ;;  %3416 = vmatpush1.bf16.msra.mxu1 %v5795_v6 }
  0xe0   : > { %2796 = vmatprep.subr.bf16.mxu0 %v5735_v10  ;;  %3417 = vmatprep.subr.bf16.mxu1 %v5735_v10 }
  0xe2   : > { %v4645_v62 = vpop.permute.xlu0 %4644  ;;  %v4029_v0 = vpop.permute.xlu1 %4028 }
  0xe3   : > { %2797 = vmatpush1.bf16.msra.mxu0 %v2777_v49  ;;  %3418 = vmatpush1.bf16.msra.mxu1 %v3397_v48  ;;  %v5737_v48 = vmov 1966171168  }
  0xe4   : > { %2798 = vmatprep.subr.bf16.mxu0 %v5735_v10  ;;  %3419 = vmatprep.subr.bf16.mxu1 %v5735_v10  ;;  %v379_v49 = vunpack.c.l.s4 %v5737_v48 }
  0xe6   : > { %v4649_v1 = vpop.permute.xlu0 %4648  ;;  %v4652_v2 = vpop.permute.xlu1 %4651 }
  0xe7   : > { %2799 = vmatpush1.bf16.msra.mxu0 %v5795_v6  ;;  %3420 = vmatpush1.bf16.msra.mxu1 %v3400_v50  ;;  %v381_v50 = vlaneseq }
  0xe8   : > { %2800 = vmatprep.subr.bf16.mxu0 %v5735_v10  ;;  %3421 = vmatprep.subr.bf16.mxu1 %v5735_v10 }
  0xeb   : > { %2801 = vmatpush1.bf16.msra.mxu0 %v2781_v51  ;;  %3422 = vmatpush1.bf16.msra.mxu1 %v5797_v7 }
  0xec   : > { %2802 = vmatprep.subr.bf16.mxu0 %v5735_v10  ;;  %3423 = vmatprep.subr.bf16.mxu1 %v5735_v10 }
  0xef   : > { %2803 = vmatpush1.bf16.msra.mxu0 %v2784_v53  ;;  %3424 = vmatpush1.bf16.msra.mxu1 %v3404_v52  ;;  %v5738_v53 = vmov 286326784  }
  0xf0   : > { %3425 = vmatprep.subr.bf16.mxu1 %v5735_v10  ;;  %4031 = vmatprep.subr.bf16.mxu0 %v5735_v10 }
  0xf2   : > { %2819 = vmatmul.mubr.bf16.vlgmr.msra.gmra.mrb[16].mxu0 %v5945_v27 }
  0xf3   : > { %3426 = vmatpush1.bf16.msra.mxu1 %v3407_v54  ;;  %4032 = vmatpush1.bf16.msra.mxu0 %v5795_v6  ;;  %v540_v54 = vunpack.c.l.s4 %v5738_v53 }
  0xf4   : > { %4033 = vmatprep.subr.bf16.mxu0 %v5735_v10  ;;  %4654 = vmatprep.subr.bf16.mxu1 %v5735_v10 }
  0xf5   : > { %5443 = vmatprep.mubr.msk.bf16.mxu0 %vm289_vm0, %v5952_v29 }
  0xf6   : > { %3442 = vmatmul.mubr.bf16.vlgmr.msra.gmra.mrb[16].mxu1 %v5945_v27 }
  0xf7   : > { %4034 = vmatpush1.bf16.msra.mxu0 %v4012_v55  ;;  %4655 = vmatpush1.bf16.msra.mxu1 %v5797_v7  ;;  %v6074_v3 = vpop.permute.xlu0 %253  ;;  %v6076_v5 = vpop.permute.xlu1 %258 }
  0xf8   : > { %4035 = vmatprep.subr.bf16.mxu0 %v5735_v10  ;;  %4656 = vmatprep.subr.bf16.mxu1 %v5735_v10 }
  0xf9   : > { %5467 = vmatprep.mubr.msk.bf16.mxu1 %vm289_vm0, %v5952_v29 }
  0xfa   : > { %2827 = vmatmul.mubr.bf16.gmra.mrb[20].mxu0 %v5964_v32 }
  0xfb   : > { %4036 = vmatpush1.bf16.msra.mxu0 %v4015_v57  ;;  %4657 = vmatpush1.bf16.msra.mxu1 %v4635_v56  ;;  %v6089_v17 = vpop.permute.xlu1 %263  ;;  %v6095_v22 = vpop.permute.xlu0 %268  ;;  %v380_v56 = vunpack.c.0.s8 %v379_v49  ;;  %v382_v57 = vshrl.u32 %v381_v50, 7 }
  0xfc   : > { %4037 = vmatprep.subr.bf16.mxu0 %v5735_v10  ;;  %4658 = vmatprep.subr.bf16.mxu1 %v5735_v10  ;;  %8135 = vst [vmem:[#allocation6_spill] sm:$0xff] %v6089_v17  ;;  %8136 = vst [vmem:[#allocation7_spill] sm:$0xff] %v6095_v22 }
  0xfd   : > { %5490 = vmatprep.mubr.msk.bf16.mxu0 %vm289_vm0, %v5827_v11 }
  0xfe   : > { %3450 = vmatmul.mubr.bf16.gmra.mrb[20].mxu1 %v5964_v32 }
  0xff   : > { %4038 = vmatpush1.bf16.msra.mxu0 %v5797_v7  ;;  %4659 = vmatpush1.bf16.msra.mxu1 %v4638_v58 }
 0x100   : > { %4039 = vmatprep.subr.bf16.mxu0 %v5735_v10  ;;  %4660 = vmatprep.subr.bf16.mxu1 %v5735_v10 }
 0x101   : > { %5514 = vmatprep.mubr.msk.bf16.mxu1 %vm289_vm0, %v5827_v11 }
 0x103   : > { %4040 = vmatpush1.bf16.msra.mxu0 %v4019_v59  ;;  %4661 = vmatpush1.bf16.msra.mxu1 %v5799_v8 }
 0x104   : > { %4041 = vmatprep.subr.bf16.mxu0 %v5735_v10  ;;  %4662 = vmatprep.subr.bf16.mxu1 %v5735_v10 }
 0x107   : > { %4042 = vmatpush1.bf16.msra.mxu0 %v4022_v61  ;;  %4663 = vmatpush1.bf16.msra.mxu1 %v4642_v60  ;;  %v541_v61 = vunpack.c.0.s8 %v540_v54 }
 0x108   : > { %4043 = vmatprep.subr.bf16.mxu0 %v5735_v10  ;;  %4664 = vmatprep.subr.bf16.mxu1 %v5735_v10 }
 0x10b   : > { %4044 = vmatpush1.bf16.msra.mxu0 %v5799_v8  ;;  %4665 = vmatpush1.bf16.msra.mxu1 %v4645_v62 }
 0x10c   : > { %4045 = vmatprep.subr.bf16.mxu0 %v5735_v10  ;;  %4666 = vmatprep.subr.bf16.mxu1 %v5735_v10 }
 0x10f   : > { %4046 = vmatpush1.bf16.msra.mxu0 %v4026_v63  ;;  %4667 = vmatpush1.bf16.msra.mxu1 %v5801_v9 }
 0x110   : > { %4047 = vmatprep.subr.bf16.mxu0 %v5735_v10  ;;  %4668 = vmatprep.subr.bf16.mxu1 %v5735_v10 }
 0x113   : > { %4048 = vmatpush1.bf16.msra.mxu0 %v4029_v0  ;;  %4669 = vmatpush1.bf16.msra.mxu1 %v4649_v1  ;;  %v6116_v1 = vsub.s32 %v380_v56, %v382_v57 }
 0x114   : > { %4670 = vmatprep.subr.bf16.mxu1 %v5735_v10 }
 0x116   : > { %4064 = vmatmul.mubr.bf16.vlgmr.msra.gmra.mrb[24].mxu0 %v5945_v27 }
 0x117   : > { %4671 = vmatpush1.bf16.msra.mxu1 %v4652_v2  ;;  %5491 = vmatprep.mubr.msk.bf16.mxu0 %vm289_vm0, %v5952_v29 }
 0x11a   : > { %4687 = vmatmul.mubr.bf16.vlgmr.msra.gmra.mrb[24].mxu1 %v5945_v27 }
 0x11b   : > { %5515 = vmatprep.mubr.msk.bf16.mxu1 %vm289_vm0, %v5952_v29  ;;  %vm4530_vm0 = vcmask 60419  }
 0x11c   : > { %vm7736_vm2 = vmand %vm4530_vm0, %vm4531_vm1 }
 0x11e   : > { %4072 = vmatmul.mubr.bf16.gmra.mrb[28].mxu0 %v5964_v32 }
 0x122   : > { %4695 = vmatmul.mubr.bf16.gmra.mrb[28].mxu1 %v5964_v32 }
 0x17d   : > { %v330_v4 = vpop.f32.mrb[0].mxu0 }
 0x17e   : > { %v6079_v6 = vadd.f32 %v330_v4, %v6074_v3  ;;  %v332_v7 = vpop.f32.mrb[1].mxu0 }
 0x17f   : > { %v333_v8 = vpop.f32.mrb[2].mxu0 }
 0x180   : > { %v5348_v9 = vmul.f32 -1.442695, %v6079_v6  ;;  %v6083_v10 = vadd.f32 %v333_v8, %v6076_v5  ;;  %v335_v11 = vpop.f32.mrb[3].mxu0 }
 0x181   : > { %v953_v12 = vpop.f32.mrb[0].mxu1 }
 0x182   : > { %5580 = vpow2.f32 %v5348_v9  ;;  %v5349_v13 = vmul.f32 -1.442695, %v6083_v10  ;;  %v6087_v14 = vadd.f32 %v953_v12, %v6074_v3  ;;  %v955_v15 = vpop.f32.mrb[1].mxu1  ;;  %v6118_v12 = vsub.s32 %v541_v61, %v382_v57 }
 0x183   : > { %v956_v16 = vpop.f32.mrb[2].mxu1 }
 0x184   : > { %5582 = vpow2.f32 %v5349_v13  ;;  %v5372_v18 = vmul.f32 -1.442695, %v6087_v14  ;;  %v6093_v19 = vadd.f32 %v956_v16, %v6076_v5  ;;  %v958_v20 = vpop.f32.mrb[3].mxu1 }
 0x185   : > { %v338_v21 = vpop.f32.mrb[4].mxu0 }
 0x186   : > { %5584 = vpow2.f32 %v5372_v18  ;;  %v5373_v23 = vmul.f32 -1.442695, %v6093_v19  ;;  %v6099_v24 = vadd.f32 %v338_v21, %v6089_v17  ;;  %v340_v25 = vpop.f32.mrb[5].mxu0 }
 0x187   : > { %v341_v26 = vpop.f32.mrb[6].mxu0 }
 0x188   : > { %5586 = vpow2.f32 %v5373_v23  ;;  %v5350_v27 = vmul.f32 -1.442695, %v6099_v24  ;;  %v6103_v28 = vadd.f32 %v341_v26, %v6095_v22  ;;  %v343_v29 = vpop.f32.mrb[7].mxu0 }
 0x189   : > { %v961_v30 = vpop.f32.mrb[4].mxu1 }
 0x18a   : > { %5588 = vpow2.f32 %v5350_v27  ;;  %v5351_v31 = vmul.f32 -1.442695, %v6103_v28  ;;  %v6107_v32 = vadd.f32 %v961_v30, %v6089_v17  ;;  %v963_v33 = vpop.f32.mrb[5].mxu1 }
 0x18b   : > { %v964_v34 = vpop.f32.mrb[6].mxu1 }
 0x18c   : > { %v5581_v35 = vpop.eup %5580  ;;  %v5374_v36 = vmul.f32 -1.442695, %v6107_v32  ;;  %v6111_v37 = vadd.f32 %v964_v34, %v6095_v22  ;;  %v966_v38 = vpop.f32.mrb[7].mxu1  ;;  %5590 = vpow2.f32 %v5351_v31 }
 0x18d   : > { %v357_v39 = vadd.f32 1.0, %v5581_v35 }
 0x18e   : > { %v5583_v40 = vpop.eup %5582  ;;  %5592 = vpow2.f32 %v5374_v36  ;;  %v5375_v41 = vmul.f32 -1.442695, %v6111_v37 }
 0x18f   : > { %5594 = vrcp.f32 %v357_v39  ;;  %v358_v42 = vadd.f32 1.0, %v5583_v40 }
 0x190   : > { %v5585_v43 = vpop.eup %5584  ;;  %5596 = vpow2.f32 %v5375_v41 }
 0x191   : > { %5598 = vrcp.f32 %v358_v42  ;;  %v980_v44 = vadd.f32 1.0, %v5585_v43 }
 0x192   : > { %v5587_v45 = vpop.eup %5586 }
 0x193   : > { %v981_v46 = vadd.f32 1.0, %v5587_v45  ;;  %5600 = vrcp.f32 %v980_v44 }
 0x194   : > { %v5589_v47 = vpop.eup %5588 }
 0x195   : > { %5602 = vrcp.f32 %v981_v46  ;;  %v359_v51 = vadd.f32 1.0, %v5589_v47 }
 0x196   : > { %v5591_v52 = vpop.eup %5590 }
 0x197   : > { %5604 = vrcp.f32 %v359_v51  ;;  %v360_v62 = vadd.f32 1.0, %v5591_v52 }
 0x198   : > { %v5593_v55 = vpop.eup %5592 }
 0x199   : > { %v5595_v58 = vpop.eup %5594  ;;  %v982_v2 = vadd.f32 1.0, %v5593_v55  ;;  %5606 = vrcp.f32 %v360_v62 }
 0x19a   : > { %v5597_v59 = vpop.eup %5596  ;;  %v369_v63 = vmul.f32 %v5595_v58, %v6079_v6 }
 0x19b   : > { %v5599_v60 = vpop.eup %5598  ;;  %v983_v4 = vadd.f32 1.0, %v5597_v59  ;;  %5608 = vrcp.f32 %v982_v2 }
 0x19c   : > { %v370_v0 = vmul.f32 %v5599_v60, %v6083_v10 }
 0x19d   : > { %v5601_v7 = vpop.eup %5600  ;;  %5610 = vrcp.f32 %v983_v4 }
 0x19e   : > { %v373_v8 = vpack.c.bf16 %v370_v0, %v369_v63  ;;  %v5352_v9 = vpack.c.bf16 %v370_v0, %v370_v0  ;;  %v6126_v10 = vmul.f32 %v5601_v7, %v6087_v14 }
 0x19f   : > { %v5603_v11 = vpop.eup %5602 }
 0x1a0   : > { %v384_v13 = vrot.slane %v373_v8, %v6116_v1  ;;  %v391_v15 = vrot.slane %v5352_v9, %v6116_v1  ;;  %v6123_v16 = vmul.f32 %v5603_v11, %v6093_v19  ;;  %v798_v8 = vld [vmem:[%s5787_s23] sm:$0x1]  ;;  %v801_v9 = vld [vmem:[%s5787_s23 + $0x4] sm:$0x1] }
 0x1a1   : > { %v5605_v6 = vpop.eup %5604  ;;  %v1575_v18 = vpop.f32.mrb[8].mxu0 }
 0x1a2   : > { %v392_v20 = vcombine.high %v384_v13, %v384_v13  ;;  %v393_v21 = vcombine.high %v391_v15, %v391_v15  ;;  %v400_v23 = vrot.slane %v384_v13, %v6116_v1  ;;  %v6130_v25 = vrot.slane %v391_v15, %v6116_v1  ;;  %v1577_v26 = vpop.f32.mrb[9].mxu0 }
 0x1a3   : > { %v996_v19 = vpack.c.bf16 %v6123_v16, %v6126_v10  ;;  %v5376_v27 = vpack.c.bf16 %v6123_v16, %v6123_v16  ;;  %v6137_v29 = vmul.f32 %v5605_v6, %v6099_v24  ;;  %v6140_v14 = vadd.f32 %v1575_v18, %v6074_v3  ;;  %v6142_v30 = vpop.f32.mrb[10].mxu0  ;;  %v6163_v57 = vpop.eup %5606 }
 0x1a4   : > { %v414_v31 = vrot.slane %v392_v20, %v6116_v1  ;;  %v6146_v33 = vrot.slane %v393_v21, %v6116_v1  ;;  %v422_v34 = vcombine.high %v400_v23, %v400_v23  ;;  %v6150_v35 = vcombine.high %v6130_v25, %v6130_v25  ;;  %v1580_v36 = vpop.f32.mrb[11].mxu0  ;;  %v804_v21 = vld [vmem:[%s5787_s23 + $0x8] sm:$0x1] }
 0x1a5   : > { %v476_v38 = vunpack.i.h.s16 %v400_v23  ;;  %v484_v24 = vunpack.i.h.s16 %v6130_v25  ;;  %v5354_v39 = vpack.i.b16 %v400_v23, %v400_v23  ;;  %v5358_v40 = vpack.i.b16 %v6130_v25, %v6130_v25  ;;  %v6155_v41 = vpop.f32.mrb[8].mxu1  ;;  %v6171_v63 = vpop.eup %5608  ;;  %v807_v23 = vld [vmem:[%s5787_s23 + $0xc] sm:$0x1]  ;;  %v810_v25 = vld [vmem:[%s5787_s23 + $0x10] sm:$0x1] }
 0x1a6   : > { %v424_v42 = vcombine.high %v414_v31, %v414_v31  ;;  %v425_v43 = vcombine.high %v6146_v33, %v6146_v33  ;;  %v478_v44 = vunpack.i.h.s16 %v414_v31  ;;  %v480_v45 = vunpack.i.h.s16 %v422_v34  ;;  %v2200_v46 = vpop.f32.mrb[9].mxu1 }
 0x1a7   : > { %v486_v47 = vunpack.i.h.s16 %v6146_v33  ;;  %v488_v48 = vunpack.i.h.s16 %v6150_v35  ;;  %v508_v49 = vpack.i.b16 %v476_v38, %v476_v38  ;;  %v5355_v50 = vpack.i.b16 %v414_v31, %v414_v31  ;;  %v6161_v51 = vpop.f32.mrb[10].mxu1  ;;  %v6181_v13 = vpop.eup %5610  ;;  %v813_v38 = vld [vmem:[%s5787_s23 + $0x14] sm:$0x1] }
 0x1a8   : > { %v482_v52 = vunpack.i.h.s16 %v424_v42  ;;  %v490_v53 = vunpack.i.h.s16 %v425_v43  ;;  %v510_v54 = vpack.i.b16 %v478_v44, %v478_v44  ;;  %v5356_v55 = vpack.i.b16 %v422_v34, %v422_v34  ;;  %v2203_v56 = vpop.f32.mrb[11].mxu1 }
 0x1a9   : > { %v512_v58 = vpack.i.b16 %v480_v45, %v480_v45  ;;  %v5357_v59 = vpack.i.b16 %v424_v42, %v424_v42  ;;  %v6165_v60 = vpack.i.b16 %v484_v24, %v484_v24  ;;  %v5359_v61 = vpack.i.b16 %v6146_v33, %v6146_v33  ;;  %v6169_v62 = vpop.f32.mrb[12].mxu0  ;;  %v816_v24 = vld [vmem:[%s5787_s23 + $0x18] sm:$0x1] }
 0x1aa   : > { %v514_v0 = vpack.i.b16 %v482_v52, %v482_v52  ;;  %v6173_v2 = vpack.i.b16 %v486_v47, %v486_v47  ;;  %v5360_v4 = vpack.i.b16 %v6150_v35, %v6150_v35  ;;  %v6177_v7 = vpack.i.b16 %v488_v48, %v488_v48  ;;  %v1585_v11 = vpop.f32.mrb[13].mxu0  ;;  %v819_v47 = vld [vmem:[%s5787_s23 + $0x1c] sm:$0x1]  ;;  %v825_v48 = vld [vmem:[%s5787_s23 + $0x24] sm:$0x1] }
 0x1ab   : > { %v5361_v15 = vpack.i.b16 %v425_v43, %v425_v43  ;;  %v6183_v6 = vpack.i.b16 %v490_v53, %v490_v53  ;;  %v545_v18 = vrot.slane %v5354_v39, %v6118_v12  ;;  %v552_v20 = vrot.slane %v508_v49, %v6118_v12  ;;  %v6190_v26 = vpop.f32.mrb[14].mxu0  ;;  %v822_v39 = vld [vmem:[%s5787_s23 + $0x20] sm:$0x1] }
 0x1ac   : > { %v559_v31 = vrot.slane %v5355_v50, %v6118_v12  ;;  %v566_v33 = vrot.slane %v510_v54, %v6118_v12  ;;  %v573_v34 = vrot.slane %v5356_v55, %v6118_v12  ;;  %v580_v35 = vrot.slane %v512_v58, %v6118_v12  ;;  %v1588_v42 = vpop.f32.mrb[15].mxu0  ;;  %v828_v54 = vld [vmem:[%s5787_s23 + $0x28] sm:$0x1]  ;;  %v831_v55 = vld [vmem:[%s5787_s23 + $0x2c] sm:$0x1] }
 0x1ad   : > { %v587_v43 = vrot.slane %v5357_v59, %v6118_v12  ;;  %v594_v44 = vrot.slane %v514_v0, %v6118_v12  ;;  %v601_v45 = vrot.slane %v5358_v40, %v6118_v12  ;;  %v608_v46 = vrot.slane %v6165_v60, %v6118_v12  ;;  %v6212_v49 = vpop.f32.mrb[12].mxu1  ;;  %v834_v0 = vld [vmem:[%s5787_s23 + $0x30] sm:$0x1] }
 0x1ae   : > { %v615_v50 = vrot.slane %v5359_v61, %v6118_v12  ;;  %v622_v52 = vrot.slane %v6173_v2, %v6118_v12  ;;  %v629_v53 = vrot.slane %v5360_v4, %v6118_v12  ;;  %v636_v40 = vrot.slane %v6177_v7, %v6118_v12  ;;  %v2208_v56 = vpop.f32.mrb[13].mxu1  ;;  %v837_v2 = vld [vmem:[%s5787_s23 + $0x34] sm:$0x1] }
 0x1af   : > { %v643_v58 = vrot.slane %v5361_v15, %v6118_v12  ;;  %v650_v59 = vrot.slane %v6183_v6, %v6118_v12  ;;  %v799_v60 = vsel %vm6198_vm3, %v545_v18, %v798_v8  ;;  %v802_v61 = vsel %vm6198_vm3, %v552_v20, %v801_v9  ;;  %v6231_v4 = vpop.f32.mrb[14].mxu1  ;;  %v840_v15 = vld [vmem:[%s5787_s23 + $0x38] sm:$0x1]  ;;  %v843_v6 = vld [vmem:[%s5787_s23 + $0x3c] sm:$0x1] }
 0x1b0   : > { %800 = vst [vmem:[%s5787_s23] sm:$0x1] %v799_v60  ;;  %803 = vst [vmem:[%s5787_s23 + $0x4] sm:$0x1] %v802_v61  ;;  %v805_v7 = vsel %vm6198_vm3, %v559_v31, %v804_v21  ;;  %v808_v11 = vsel %vm6198_vm3, %v566_v33, %v807_v23  ;;  %v811_v8 = vsel %vm6198_vm3, %v573_v34, %v810_v25  ;;  %v2211_v18 = vpop.f32.mrb[15].mxu1 }
 0x1b1   : > { %v814_v9 = vsel %vm6198_vm3, %v580_v35, %v813_v38  ;;  %806 = vst [vmem:[%s5787_s23 + $0x8] sm:$0x1] %v805_v7  ;;  %809 = vst [vmem:[%s5787_s23 + $0xc] sm:$0x1] %v808_v11  ;;  %v817_v20 = vsel %vm6198_vm3, %v587_v43, %v816_v24  ;;  %v820_v21 = vsel %vm6198_vm3, %v594_v44, %v819_v47 }
 0x1b2   : > { %812 = vst [vmem:[%s5787_s23 + $0x10] sm:$0x1] %v811_v8  ;;  %815 = vst [vmem:[%s5787_s23 + $0x14] sm:$0x1] %v814_v9  ;;  %v823_v23 = vsel %vm6198_vm3, %v601_v45, %v822_v39  ;;  %v826_v25 = vsel %vm6198_vm3, %v608_v46, %v825_v48  ;;  %v829_v31 = vsel %vm6198_vm3, %v615_v50, %v828_v54 }
 0x1b3   : > { %818 = vst [vmem:[%s5787_s23 + $0x18] sm:$0x1] %v817_v20  ;;  %821 = vst [vmem:[%s5787_s23 + $0x1c] sm:$0x1] %v820_v21  ;;  %v832_v33 = vsel %vm6198_vm3, %v622_v52, %v831_v55  ;;  %v835_v34 = vsel %vm6198_vm3, %v629_v53, %v834_v0  ;;  %v838_v35 = vsel %vm6198_vm3, %v636_v40, %v837_v2 }
 0x1b4   : > { %824 = vst [vmem:[%s5787_s23 + $0x20] sm:$0x1] %v823_v23  ;;  %827 = vst [vmem:[%s5787_s23 + $0x24] sm:$0x1] %v826_v25  ;;  %v841_v38 = vsel %vm6198_vm3, %v643_v58, %v840_v15  ;;  %v844_v24 = vsel %vm6198_vm3, %v650_v59, %v843_v6  ;;  %v1007_v39 = vrot.slane %v996_v19, %v6116_v1  ;;  %v6300_v19 = vmul.f32 -1.442695, %v6140_v14 }
 0x1b5   : > { %830 = vst [vmem:[%s5787_s23 + $0x28] sm:$0x1] %v829_v31  ;;  %833 = vst [vmem:[%s5787_s23 + $0x2c] sm:$0x1] %v832_v33  ;;  %v1014_v42 = vrot.slane %v5376_v27, %v6116_v1  ;;  %v6289_v43 = vmul.f32 %v6163_v57, %v6103_v28  ;;  %v6293_v44 = vmul.f32 %v6171_v63, %v6107_v32 }
 0x1b6   : > { %836 = vst [vmem:[%s5787_s23 + $0x30] sm:$0x1] %v835_v34  ;;  %839 = vst [vmem:[%s5787_s23 + $0x34] sm:$0x1] %v838_v35  ;;  %v6297_v10 = vmul.f32 %v6181_v13, %v6111_v37  ;;  %v1015_v16 = vcombine.high %v1007_v39, %v1007_v39  ;;  %v1023_v45 = vrot.slane %v1007_v39, %v6116_v1  ;;  %5612 = vpow2.f32 %v6300_v19 }
 0x1b7   : > { %842 = vst [vmem:[%s5787_s23 + $0x38] sm:$0x1] %v841_v38  ;;  %845 = vst [vmem:[%s5787_s23 + $0x3c] sm:$0x1] %v844_v24  ;;  %v1016_v27 = vcombine.high %v1014_v42, %v1014_v42  ;;  %v1030_v46 = vrot.slane %v1014_v42, %v6116_v1  ;;  %v374_v28 = vpack.c.bf16 %v6289_v43, %v6137_v29  ;;  %v1420_v24 = vld [vmem:[%s5787_s23] sm:$0x1] }
 0x1b8   : > { %v5353_v32 = vpack.c.bf16 %v6289_v43, %v6289_v43  ;;  %v997_v57 = vpack.c.bf16 %v6297_v10, %v6293_v44  ;;  %v5377_v37 = vpack.c.bf16 %v6297_v10, %v6297_v10  ;;  %v1037_v63 = vrot.slane %v1015_v16, %v6116_v1  ;;  %v1423_v39 = vld [vmem:[%s5787_s23 + $0x4] sm:$0x1] }
 0x1b9   : > { %v1044_v13 = vrot.slane %v1016_v27, %v6116_v1  ;;  %v1045_v47 = vcombine.high %v1023_v45, %v1023_v45  ;;  %v1046_v48 = vcombine.high %v1030_v46, %v1030_v46  ;;  %v1099_v50 = vunpack.i.h.s16 %v1023_v45 }
 0x1ba   : > { %v1107_v52 = vunpack.i.h.s16 %v1030_v46  ;;  %v5378_v53 = vpack.i.b16 %v1023_v45, %v1023_v45  ;;  %v5382_v40 = vpack.i.b16 %v1030_v46, %v1030_v46  ;;  %v1047_v54 = vcombine.high %v1037_v63, %v1037_v63  ;;  %v1426_v46 = vld [vmem:[%s5787_s23 + $0x8] sm:$0x1] }
 0x1bb   : > { %v1048_v55 = vcombine.high %v1044_v13, %v1044_v13  ;;  %v1101_v56 = vunpack.i.h.s16 %v1037_v63  ;;  %v1103_v58 = vunpack.i.h.s16 %v1045_v47  ;;  %v1109_v59 = vunpack.i.h.s16 %v1044_v13 }
 0x1bc   : > { %v1111_v60 = vunpack.i.h.s16 %v1046_v48  ;;  %v1131_v61 = vpack.i.b16 %v1099_v50, %v1099_v50  ;;  %v5379_v0 = vpack.i.b16 %v1037_v63, %v1037_v63  ;;  %v1105_v2 = vunpack.i.h.s16 %v1047_v54  ;;  %v1429_v63 = vld [vmem:[%s5787_s23 + $0xc] sm:$0x1] }
 0x1bd   : > { %v1113_v7 = vunpack.i.h.s16 %v1048_v55  ;;  %v1133_v11 = vpack.i.b16 %v1101_v56, %v1101_v56  ;;  %v5380_v8 = vpack.i.b16 %v1045_v47, %v1045_v47  ;;  %v1135_v9 = vpack.i.b16 %v1103_v58, %v1103_v58 }
 0x1be   : > { %v5381_v15 = vpack.i.b16 %v1047_v54, %v1047_v54  ;;  %v1139_v6 = vpack.i.b16 %v1107_v52, %v1107_v52  ;;  %v5383_v18 = vpack.i.b16 %v1044_v13, %v1044_v13  ;;  %v1137_v20 = vpack.i.b16 %v1105_v2, %v1105_v2  ;;  %v1432_v13 = vld [vmem:[%s5787_s23 + $0x10] sm:$0x1]  ;;  %v1438_v54 = vld [vmem:[%s5787_s23 + $0x18] sm:$0x1] }
 0x1bf   : > { %v1141_v21 = vpack.i.b16 %v1109_v59, %v1109_v59  ;;  %v5384_v23 = vpack.i.b16 %v1046_v48, %v1046_v48  ;;  %v1143_v25 = vpack.i.b16 %v1111_v60, %v1111_v60  ;;  %v5385_v31 = vpack.i.b16 %v1048_v55, %v1048_v55  ;;  %v1441_v55 = vld [vmem:[%s5787_s23 + $0x1c] sm:$0x1] }
 0x1c0   : > { %v6314_v33 = vpack.i.b16 %v1113_v7, %v1113_v7  ;;  %v1168_v34 = vrot.slane %v5378_v53, %v6118_v12  ;;  %v1175_v35 = vrot.slane %v1131_v61, %v6118_v12  ;;  %v1182_v42 = vrot.slane %v5379_v0, %v6118_v12  ;;  %v1435_v53 = vld [vmem:[%s5787_s23 + $0x14] sm:$0x1]  ;;  %v1444_v61 = vld [vmem:[%s5787_s23 + $0x20] sm:$0x1]  ;;  %v1450_v0 = vld [vmem:[%s5787_s23 + $0x28] sm:$0x1] }
 0x1c1   : > { %v1189_v16 = vrot.slane %v1133_v11, %v6118_v12  ;;  %v1196_v27 = vrot.slane %v5380_v8, %v6118_v12  ;;  %v1203_v45 = vrot.slane %v1135_v9, %v6118_v12  ;;  %v1210_v47 = vrot.slane %v5381_v15, %v6118_v12  ;;  %v1453_v9 = vld [vmem:[%s5787_s23 + $0x2c] sm:$0x1]  ;;  %v1456_v15 = vld [vmem:[%s5787_s23 + $0x30] sm:$0x1] }
 0x1c2   : > { %v1217_v48 = vrot.slane %v1137_v20, %v6118_v12  ;;  %v1224_v50 = vrot.slane %v5382_v40, %v6118_v12  ;;  %v1231_v52 = vrot.slane %v1139_v6, %v6118_v12  ;;  %v1238_v56 = vrot.slane %v5383_v18, %v6118_v12  ;;  %v1447_v40 = vld [vmem:[%s5787_s23 + $0x24] sm:$0x1]  ;;  %v1459_v6 = vld [vmem:[%s5787_s23 + $0x34] sm:$0x1] }
 0x1c3   : > { %v1245_v58 = vrot.slane %v1141_v21, %v6118_v12  ;;  %v1252_v59 = vrot.slane %v5384_v23, %v6118_v12  ;;  %v1259_v60 = vrot.slane %v1143_v25, %v6118_v12  ;;  %v1266_v2 = vrot.slane %v5385_v31, %v6118_v12  ;;  %v1462_v25 = vld [vmem:[%s5787_s23 + $0x38] sm:$0x1]  ;;  %v1465_v31 = vld [vmem:[%s5787_s23 + $0x3c] sm:$0x1] }
 0x1c4   : > { %v1273_v7 = vrot.slane %v6314_v33, %v6118_v12  ;;  %v1421_v11 = vsel %vm6320_vm5, %v1168_v34, %v1420_v24  ;;  %v1424_v8 = vsel %vm6320_vm5, %v1175_v35, %v1423_v39  ;;  %v1427_v18 = vsel %vm6320_vm5, %v1182_v42, %v1426_v46 }
 0x1c5   : > { %1422 = vst [vmem:[%s5787_s23] sm:$0x1] %v1421_v11  ;;  %1425 = vst [vmem:[%s5787_s23 + $0x4] sm:$0x1] %v1424_v8  ;;  %v1430_v20 = vsel %vm6320_vm5, %v1189_v16, %v1429_v63  ;;  %v1433_v21 = vsel %vm6320_vm5, %v1196_v27, %v1432_v13  ;;  %v1436_v23 = vsel %vm6320_vm5, %v1203_v45, %v1435_v53  ;;  %v6393_v45 = vpop.f32.mrb[16].mxu0 }
 0x1c6   : > { %1428 = vst [vmem:[%s5787_s23 + $0x8] sm:$0x1] %v1427_v18  ;;  %1431 = vst [vmem:[%s5787_s23 + $0xc] sm:$0x1] %v1430_v20  ;;  %v1439_v33 = vsel %vm6320_vm5, %v1210_v47, %v1438_v54  ;;  %v1442_v34 = vsel %vm6320_vm5, %v1217_v48, %v1441_v55  ;;  %v1445_v35 = vsel %vm6320_vm5, %v1224_v50, %v1444_v61  ;;  %v2822_v48 = vpop.f32.mrb[17].mxu0 }
 0x1c7   : > { %1434 = vst [vmem:[%s5787_s23 + $0x10] sm:$0x1] %v1433_v21  ;;  %1437 = vst [vmem:[%s5787_s23 + $0x14] sm:$0x1] %v1436_v23  ;;  %v1448_v24 = vsel %vm6320_vm5, %v1231_v52, %v1447_v40  ;;  %v1451_v39 = vsel %vm6320_vm5, %v1238_v56, %v1450_v0  ;;  %v1454_v42 = vsel %vm6320_vm5, %v1245_v58, %v1453_v9 }
 0x1c8   : > { %1440 = vst [vmem:[%s5787_s23 + $0x18] sm:$0x1] %v1439_v33  ;;  %1443 = vst [vmem:[%s5787_s23 + $0x1c] sm:$0x1] %v1442_v34  ;;  %v1457_v16 = vsel %vm6320_vm5, %v1252_v59, %v1456_v15  ;;  %v1460_v27 = vsel %vm6320_vm5, %v1259_v60, %v1459_v6  ;;  %v1463_v46 = vsel %vm6320_vm5, %v1266_v2, %v1462_v25 }
 0x1c9   : > { %1446 = vst [vmem:[%s5787_s23 + $0x20] sm:$0x1] %v1445_v35  ;;  %1449 = vst [vmem:[%s5787_s23 + $0x24] sm:$0x1] %v1448_v24  ;;  %v1466_v63 = vsel %vm6320_vm5, %v1273_v7, %v1465_v31  ;;  %v433_v13 = vrot.slane %v374_v28, %v6116_v1  ;;  %v440_v47 = vrot.slane %v5353_v32, %v6116_v1  ;;  %v6430_v28 = vpop.f32.mrb[18].mxu0  ;;  %v6446_v54 = vpop.f32.mrb[16].mxu1 }
 0x1ca   : > { %1452 = vst [vmem:[%s5787_s23 + $0x28] sm:$0x1] %v1451_v39  ;;  %1455 = vst [vmem:[%s5787_s23 + $0x2c] sm:$0x1] %v1454_v42  ;;  %v6417_v50 = vrot.slane %v997_v57, %v6116_v1  ;;  %v6423_v29 = vrot.slane %v5377_v37, %v6116_v1  ;;  %v6428_v43 = vadd.f32 %v6142_v30, %v6076_v5  ;;  %v2825_v53 = vpop.f32.mrb[19].mxu0  ;;  %v3445_v60 = vpop.f32.mrb[17].mxu1 }
 0x1cb   : > { %1458 = vst [vmem:[%s5787_s23 + $0x30] sm:$0x1] %v1457_v16  ;;  %1461 = vst [vmem:[%s5787_s23 + $0x34] sm:$0x1] %v1460_v27  ;;  %v441_v32 = vcombine.high %v433_v13, %v433_v13  ;;  %v442_v52 = vcombine.high %v440_v47, %v440_v47  ;;  %v449_v44 = vrot.slane %v433_v13, %v6116_v1  ;;  %v6450_v7 = vpop.f32.mrb[18].mxu1 }
 0x1cc   : > { %1464 = vst [vmem:[%s5787_s23 + $0x38] sm:$0x1] %v1463_v46  ;;  %1467 = vst [vmem:[%s5787_s23 + $0x3c] sm:$0x1] %v1466_v63  ;;  %v456_v57 = vrot.slane %v440_v47, %v6116_v1  ;;  %v1064_v10 = vcombine.high %v6417_v50, %v6417_v50  ;;  %v1065_v37 = vcombine.high %v6423_v29, %v6423_v29  ;;  %v3448_v6 = vpop.f32.mrb[19].mxu1 }
 0x1cd   : > { %v6440_v19 = vrot.slane %v6417_v50, %v6116_v1  ;;  %v6444_v30 = vrot.slane %v6423_v29, %v6116_v1  ;;  %v463_v55 = vrot.slane %v441_v32, %v6116_v1  ;;  %v470_v56 = vrot.slane %v442_v52, %v6116_v1  ;;  %v6452_v25 = vpop.f32.mrb[20].mxu0  ;;  %v6456_v52 = vpop.eup %5612 }
 0x1ce   : > { %v471_v58 = vcombine.high %v449_v44, %v449_v44  ;;  %v472_v59 = vcombine.high %v456_v57, %v456_v57  ;;  %v492_v61 = vunpack.i.h.s16 %v449_v44  ;;  %v500_v40 = vunpack.i.h.s16 %v456_v57  ;;  %v2830_v24 = vpop.f32.mrb[21].mxu0 }
 0x1cf   : > { %v5362_v0 = vpack.i.b16 %v449_v44, %v449_v44  ;;  %v5366_v2 = vpack.i.b16 %v456_v57, %v456_v57  ;;  %v473_v11 = vcombine.high %v463_v55, %v463_v55  ;;  %v474_v8 = vcombine.high %v470_v56, %v470_v56  ;;  %v6454_v46 = vpop.f32.mrb[22].mxu0  ;;  %v867_v24 = vld [vmem:[%s5787_s23 + $0x5c] sm:$0x1] }
 0x1d0   : > { %v494_v9 = vunpack.i.h.s16 %v463_v55  ;;  %v496_v15 = vunpack.i.h.s16 %v471_v58  ;;  %v502_v18 = vunpack.i.h.s16 %v470_v56  ;;  %v504_v20 = vunpack.i.h.s16 %v472_v59  ;;  %v2833_v32 = vpop.f32.mrb[23].mxu0 }
 0x1d1   : > { %v524_v21 = vpack.i.b16 %v492_v61, %v492_v61  ;;  %v5363_v23 = vpack.i.b16 %v463_v55, %v463_v55  ;;  %v498_v31 = vunpack.i.h.s16 %v473_v11  ;;  %v506_v33 = vunpack.i.h.s16 %v474_v8 }
 0x1d2   : > { %v526_v34 = vpack.i.b16 %v494_v9, %v494_v9  ;;  %v5364_v35 = vpack.i.b16 %v471_v58, %v471_v58  ;;  %v528_v39 = vpack.i.b16 %v496_v15, %v496_v15  ;;  %v5365_v42 = vpack.i.b16 %v473_v11, %v473_v11  ;;  %v852_v11 = vld [vmem:[%s5787_s23 + $0x48] sm:$0x1] }
 0x1d3   : > { %v532_v16 = vpack.i.b16 %v500_v40, %v500_v40  ;;  %v5367_v27 = vpack.i.b16 %v470_v56, %v470_v56  ;;  %v530_v63 = vpack.i.b16 %v498_v31, %v498_v31  ;;  %v534_v13 = vpack.i.b16 %v502_v18, %v502_v18  ;;  %v846_v56 = vld [vmem:[%s5787_s23 + $0x40] sm:$0x1]  ;;  %v849_v40 = vld [vmem:[%s5787_s23 + $0x44] sm:$0x1] }
 0x1d4   : > { %v5368_v47 = vpack.i.b16 %v472_v59, %v472_v59  ;;  %v536_v48 = vpack.i.b16 %v504_v20, %v504_v20  ;;  %v5369_v44 = vpack.i.b16 %v474_v8, %v474_v8  ;;  %v6458_v57 = vpack.i.b16 %v506_v33, %v506_v33  ;;  %v858_v8 = vld [vmem:[%s5787_s23 + $0x50] sm:$0x1]  ;;  %v855_v20 = vld [vmem:[%s5787_s23 + $0x4c] sm:$0x1] }
 0x1d5   : > { %v657_v53 = vrot.slane %v5362_v0, %v6118_v12  ;;  %v664_v55 = vrot.slane %v524_v21, %v6118_v12  ;;  %v671_v58 = vrot.slane %v5363_v23, %v6118_v12  ;;  %v678_v59 = vrot.slane %v526_v34, %v6118_v12  ;;  %v870_v0 = vld [vmem:[%s5787_s23 + $0x60] sm:$0x1]  ;;  %v861_v21 = vld [vmem:[%s5787_s23 + $0x54] sm:$0x1]  ;;  %v864_v23 = vld [vmem:[%s5787_s23 + $0x58] sm:$0x1] }
 0x1d6   : > { %v685_v60 = vrot.slane %v5364_v35, %v6118_v12  ;;  %v692_v61 = vrot.slane %v528_v39, %v6118_v12  ;;  %v699_v9 = vrot.slane %v5365_v42, %v6118_v12  ;;  %v706_v15 = vrot.slane %v530_v63, %v6118_v12  ;;  %v876_v39 = vld [vmem:[%s5787_s23 + $0x68] sm:$0x1] }
 0x1d7   : > { %v713_v6 = vrot.slane %v5366_v2, %v6118_v12  ;;  %v720_v18 = vrot.slane %v532_v16, %v6118_v12  ;;  %v727_v31 = vrot.slane %v5367_v27, %v6118_v12  ;;  %v734_v33 = vrot.slane %v534_v13, %v6118_v12  ;;  %v873_v2 = vld [vmem:[%s5787_s23 + $0x64] sm:$0x1]  ;;  %v879_v13 = vld [vmem:[%s5787_s23 + $0x6c] sm:$0x1] }
 0x1d8   : > { %v741_v34 = vrot.slane %v5368_v47, %v6118_v12  ;;  %v748_v35 = vrot.slane %v536_v48, %v6118_v12  ;;  %v755_v42 = vrot.slane %v5369_v44, %v6118_v12  ;;  %v762_v16 = vrot.slane %v6458_v57, %v6118_v12  ;;  %v882_v47 = vld [vmem:[%s5787_s23 + $0x70] sm:$0x1]  ;;  %v885_v48 = vld [vmem:[%s5787_s23 + $0x74] sm:$0x1] }
 0x1d9   : > { %v847_v27 = vsel %vm6198_vm3, %v657_v53, %v846_v56  ;;  %v850_v63 = vsel %vm6198_vm3, %v664_v55, %v849_v40  ;;  %v853_v32 = vsel %vm6198_vm3, %v671_v58, %v852_v11  ;;  %v856_v44 = vsel %vm6198_vm3, %v678_v59, %v855_v20  ;;  %v888_v55 = vld [vmem:[%s5787_s23 + $0x78] sm:$0x1]  ;;  %v891_v56 = vld [vmem:[%s5787_s23 + $0x7c] sm:$0x1] }
 0x1da   : > { %848 = vst [vmem:[%s5787_s23 + $0x40] sm:$0x1] %v847_v27  ;;  %851 = vst [vmem:[%s5787_s23 + $0x44] sm:$0x1] %v850_v63  ;;  %v859_v57 = vsel %vm6198_vm3, %v685_v60, %v858_v8  ;;  %v862_v53 = vsel %vm6198_vm3, %v692_v61, %v861_v21  ;;  %v865_v58 = vsel %vm6198_vm3, %v699_v9, %v864_v23  ;;  %v1115_v36 = vunpack.i.h.s16 %v6440_v19 }
 0x1db   : > { %854 = vst [vmem:[%s5787_s23 + $0x48] sm:$0x1] %v853_v32  ;;  %857 = vst [vmem:[%s5787_s23 + $0x4c] sm:$0x1] %v856_v44  ;;  %v868_v59 = vsel %vm6198_vm3, %v706_v15, %v867_v24  ;;  %v871_v60 = vsel %vm6198_vm3, %v713_v6, %v870_v0  ;;  %v874_v61 = vsel %vm6198_vm3, %v720_v18, %v873_v2  ;;  %v1123_v23 = vunpack.i.h.s16 %v6444_v30 }
 0x1dc   : > { %860 = vst [vmem:[%s5787_s23 + $0x50] sm:$0x1] %v859_v57  ;;  %863 = vst [vmem:[%s5787_s23 + $0x54] sm:$0x1] %v862_v53  ;;  %v877_v40 = vsel %vm6198_vm3, %v727_v31, %v876_v39  ;;  %v880_v11 = vsel %vm6198_vm3, %v734_v33, %v879_v13  ;;  %v883_v8 = vsel %vm6198_vm3, %v741_v34, %v882_v47 }
 0x1dd   : > { %866 = vst [vmem:[%s5787_s23 + $0x58] sm:$0x1] %v865_v58  ;;  %869 = vst [vmem:[%s5787_s23 + $0x5c] sm:$0x1] %v868_v59  ;;  %v886_v0 = vsel %vm6198_vm3, %v748_v35, %v885_v48  ;;  %v889_v9 = vsel %vm6198_vm3, %v755_v42, %v888_v55  ;;  %v892_v15 = vsel %vm6198_vm3, %v762_v16, %v891_v56  ;;  %vm5153_vm3 = vsmask.f32 7950 }
 0x1de   : > { %872 = vst [vmem:[%s5787_s23 + $0x60] sm:$0x1] %v871_v60  ;;  %875 = vst [vmem:[%s5787_s23 + $0x64] sm:$0x1] %v874_v61  ;;  %v1086_v6 = vrot.slane %v1064_v10, %v6116_v1  ;;  %v1093_v18 = vrot.slane %v1065_v37, %v6116_v1  ;;  %v1094_v20 = vcombine.high %v6440_v19, %v6440_v19 }
 0x1df   : > { %878 = vst [vmem:[%s5787_s23 + $0x68] sm:$0x1] %v877_v40  ;;  %881 = vst [vmem:[%s5787_s23 + $0x6c] sm:$0x1] %v880_v11  ;;  %v1095_v21 = vcombine.high %v6444_v30, %v6444_v30  ;;  %v5386_v29 = vpack.i.b16 %v6440_v19, %v6440_v19  ;;  %v1147_v37 = vpack.i.b16 %v1115_v36, %v1115_v36 }
 0x1e0   : > { %884 = vst [vmem:[%s5787_s23 + $0x70] sm:$0x1] %v883_v8  ;;  %887 = vst [vmem:[%s5787_s23 + $0x74] sm:$0x1] %v886_v0  ;;  %v1096_v31 = vcombine.high %v1086_v6, %v1086_v6  ;;  %v1097_v50 = vcombine.high %v1093_v18, %v1093_v18  ;;  %v1117_v10 = vunpack.i.h.s16 %v1086_v6  ;;  %v1125_v33 = vunpack.i.h.s16 %v1093_v18 }
 0x1e1   : > { %890 = vst [vmem:[%s5787_s23 + $0x78] sm:$0x1] %v889_v9  ;;  %893 = vst [vmem:[%s5787_s23 + $0x7c] sm:$0x1] %v892_v15  ;;  %v1119_v34 = vunpack.i.h.s16 %v1094_v20  ;;  %v1127_v35 = vunpack.i.h.s16 %v1095_v21  ;;  %v5387_v39 = vpack.i.b16 %v1086_v6, %v1086_v6  ;;  %v5388_v16 = vpack.i.b16 %v1094_v20, %v1094_v20  ;;  %v1468_v56 = vld [vmem:[%s5787_s23 + $0x40] sm:$0x1] }
 0x1e2   : > { %v1121_v24 = vunpack.i.h.s16 %v1096_v31  ;;  %v1129_v2 = vunpack.i.h.s16 %v1097_v50  ;;  %v1149_v42 = vpack.i.b16 %v1117_v10, %v1117_v10  ;;  %v5389_v63 = vpack.i.b16 %v1096_v31, %v1096_v31  ;;  %v1471_v61 = vld [vmem:[%s5787_s23 + $0x44] sm:$0x1]  ;;  %v1474_v40 = vld [vmem:[%s5787_s23 + $0x48] sm:$0x1]  ;;  %v1477_v11 = vld [vmem:[%s5787_s23 + $0x4c] sm:$0x1] }
 0x1e3   : > { %v1151_v27 = vpack.i.b16 %v1119_v34, %v1119_v34  ;;  %v5390_v13 = vpack.i.b16 %v6444_v30, %v6444_v30  ;;  %v1155_v48 = vpack.i.b16 %v1123_v23, %v1123_v23  ;;  %v5391_v32 = vpack.i.b16 %v1093_v18, %v1093_v18  ;;  %v1480_v6 = vld [vmem:[%s5787_s23 + $0x50] sm:$0x1]  ;;  %v1483_v18 = vld [vmem:[%s5787_s23 + $0x54] sm:$0x1]  ;;  %vm7841_vm4 = vmand %vm4530_vm0, %vm5153_vm3 }
 0x1e4   : > { %v1153_v47 = vpack.i.b16 %v1121_v24, %v1121_v24  ;;  %v1157_v44 = vpack.i.b16 %v1125_v33, %v1125_v33  ;;  %v5392_v19 = vpack.i.b16 %v1095_v21, %v1095_v21  ;;  %v1159_v57 = vpack.i.b16 %v1127_v35, %v1127_v35  ;;  %v1486_v20 = vld [vmem:[%s5787_s23 + $0x58] sm:$0x1] }
 0x1e5   : > { %v5393_v53 = vpack.i.b16 %v1097_v50, %v1097_v50  ;;  %v1161_v55 = vpack.i.b16 %v1129_v2, %v1129_v2  ;;  %v1280_v58 = vrot.slane %v5386_v29, %v6118_v12  ;;  %v1287_v59 = vrot.slane %v1147_v37, %v6118_v12  ;;  %v1489_v50 = vld [vmem:[%s5787_s23 + $0x5c] sm:$0x1]  ;;  %v1492_v10 = vld [vmem:[%s5787_s23 + $0x60] sm:$0x1]  ;;  %v1495_v33 = vld [vmem:[%s5787_s23 + $0x64] sm:$0x1] }
 0x1e6   : > { %v1294_v60 = vrot.slane %v5387_v39, %v6118_v12  ;;  %v1301_v30 = vrot.slane %v1149_v42, %v6118_v12  ;;  %v1308_v8 = vrot.slane %v5388_v16, %v6118_v12  ;;  %v1315_v0 = vrot.slane %v1151_v27, %v6118_v12  ;;  %v1498_v24 = vld [vmem:[%s5787_s23 + $0x68] sm:$0x1]  ;;  %v1501_v2 = vld [vmem:[%s5787_s23 + $0x6c] sm:$0x1] }
 0x1e7   : > { %v1322_v9 = vrot.slane %v5389_v63, %v6118_v12  ;;  %v1329_v15 = vrot.slane %v1153_v47, %v6118_v12  ;;  %v1336_v21 = vrot.slane %v5390_v13, %v6118_v12  ;;  %v1343_v36 = vrot.slane %v1155_v48, %v6118_v12  ;;  %v1504_v39 = vld [vmem:[%s5787_s23 + $0x70] sm:$0x1]  ;;  %v1507_v13 = vld [vmem:[%s5787_s23 + $0x74] sm:$0x1] }
 0x1e8   : > { %v1350_v23 = vrot.slane %v5391_v32, %v6118_v12  ;;  %v1357_v31 = vrot.slane %v1157_v44, %v6118_v12  ;;  %v1364_v34 = vrot.slane %v5392_v19, %v6118_v12  ;;  %v1371_v35 = vrot.slane %v1159_v57, %v6118_v12  ;;  %v1510_v47 = vld [vmem:[%s5787_s23 + $0x78] sm:$0x1]  ;;  %v1513_v48 = vld [vmem:[%s5787_s23 + $0x7c] sm:$0x1] }
 0x1e9   : > { %v1378_v29 = vrot.slane %v5393_v53, %v6118_v12  ;;  %v1385_v37 = vrot.slane %v1161_v55, %v6118_v12  ;;  %v1469_v42 = vsel %vm6320_vm5, %v1280_v58, %v1468_v56  ;;  %v1472_v16 = vsel %vm6320_vm5, %v1287_v59, %v1471_v61 }
 0x1ea   : > { %v1475_v27 = vsel %vm6320_vm5, %v1294_v60, %v1474_v40  ;;  %v1478_v63 = vsel %vm6320_vm5, %v1301_v30, %v1477_v11  ;;  %1470 = vst [vmem:[%s5787_s23 + $0x40] sm:$0x1] %v1469_v42  ;;  %1473 = vst [vmem:[%s5787_s23 + $0x44] sm:$0x1] %v1472_v16  ;;  %v1481_v32 = vsel %vm6320_vm5, %v1308_v8, %v1480_v6  ;;  %v6635_v40 = vpop.f32.mrb[20].mxu1  ;;  %v1602_v11 = vadd.f32 1.0, %v6456_v52 }
 0x1eb   : > { %1476 = vst [vmem:[%s5787_s23 + $0x48] sm:$0x1] %v1475_v27  ;;  %1479 = vst [vmem:[%s5787_s23 + $0x4c] sm:$0x1] %v1478_v63  ;;  %v1484_v44 = vsel %vm6320_vm5, %v1315_v0, %v1483_v18  ;;  %v1487_v19 = vsel %vm6320_vm5, %v1322_v9, %v1486_v20  ;;  %v1490_v57 = vsel %vm6320_vm5, %v1329_v15, %v1489_v50  ;;  %v5397_v8 = vmul.f32 -1.442695, %v6428_v43 }
 0x1ec   : > { %1482 = vst [vmem:[%s5787_s23 + $0x50] sm:$0x1] %v1481_v32  ;;  %1485 = vst [vmem:[%s5787_s23 + $0x54] sm:$0x1] %v1484_v44  ;;  %v1493_v53 = vsel %vm6320_vm5, %v1336_v21, %v1492_v10  ;;  %v1496_v55 = vsel %vm6320_vm5, %v1343_v36, %v1495_v33  ;;  %v1499_v56 = vsel %vm6320_vm5, %v1350_v23, %v1498_v24  ;;  %v3453_v38 = vpop.f32.mrb[21].mxu1  ;;  %5614 = vrcp.f32 %v1602_v11 }
 0x1ed   : > { %1488 = vst [vmem:[%s5787_s23 + $0x58] sm:$0x1] %v1487_v19  ;;  %1491 = vst [vmem:[%s5787_s23 + $0x5c] sm:$0x1] %v1490_v57  ;;  %v1502_v58 = vsel %vm6320_vm5, %v1357_v31, %v1501_v2  ;;  %v1505_v59 = vsel %vm6320_vm5, %v1364_v34, %v1504_v39  ;;  %v1508_v60 = vsel %vm6320_vm5, %v1371_v35, %v1507_v13  ;;  %v6663_v18 = vpop.f32.mrb[22].mxu1  ;;  %5616 = vpow2.f32 %v5397_v8 }
 0x1ee   : > { %1494 = vst [vmem:[%s5787_s23 + $0x60] sm:$0x1] %v1493_v53  ;;  %1497 = vst [vmem:[%s5787_s23 + $0x64] sm:$0x1] %v1496_v55  ;;  %v1511_v30 = vsel %vm6320_vm5, %v1378_v29, %v1510_v47  ;;  %v1514_v61 = vsel %vm6320_vm5, %v1385_v37, %v1513_v48  ;;  %v6645_v0 = vadd.f32 %v6155_v41, %v6074_v3 }
 0x1ef   : > { %1500 = vst [vmem:[%s5787_s23 + $0x68] sm:$0x1] %v1499_v56  ;;  %1503 = vst [vmem:[%s5787_s23 + $0x6c] sm:$0x1] %v1502_v58  ;;  %v6649_v9 = vadd.f32 %v6161_v51, %v6076_v5  ;;  %v6653_v15 = vadd.f32 %v6169_v62, %v6089_v17  ;;  %v6657_v6 = vadd.f32 %v6190_v26, %v6095_v22  ;;  %v3456_v62 = vpop.f32.mrb[23].mxu1 }
 0x1f0   : > { %1506 = vst [vmem:[%s5787_s23 + $0x70] sm:$0x1] %v1505_v59  ;;  %1509 = vst [vmem:[%s5787_s23 + $0x74] sm:$0x1] %v1508_v60  ;;  %v6661_v52 = vadd.f32 %v6212_v49, %v6089_v17  ;;  %v5420_v41 = vmul.f32 -1.442695, %v6645_v0  ;;  %v6669_v20 = vadd.f32 %v6231_v4, %v6095_v22  ;;  %v6676_v36 = vadd.f32 %v6393_v45, %v6074_v3 }
 0x1f1   : > { %1512 = vst [vmem:[%s5787_s23 + $0x78] sm:$0x1] %v1511_v30  ;;  %1515 = vst [vmem:[%s5787_s23 + $0x7c] sm:$0x1] %v1514_v61  ;;  %v5421_v51 = vmul.f32 -1.442695, %v6649_v9  ;;  %v6680_v23 = vadd.f32 %v6430_v28, %v6076_v5  ;;  %v6685_v31 = vadd.f32 %v6446_v54, %v6074_v3  ;;  %v6690_v10 = vadd.f32 %v6450_v7, %v6076_v5 }
 0x1f2   : > { %v5398_v26 = vmul.f32 -1.442695, %v6653_v15  ;;  %v5399_v21 = vmul.f32 -1.442695, %v6657_v6  ;;  %5618 = vpow2.f32 %v5420_v41  ;;  %v5422_v49 = vmul.f32 -1.442695, %v6661_v52 }
 0x1f3   : > { %5620 = vpow2.f32 %v5421_v51  ;;  %v5423_v4 = vmul.f32 -1.442695, %v6669_v20  ;;  %v5444_v50 = vmul.f32 -1.442695, %v6676_v36  ;;  %v5445_v45 = vmul.f32 -1.442695, %v6680_v23 }
 0x1f4   : > { %5622 = vpow2.f32 %v5398_v26  ;;  %v6695_v28 = vadd.f32 %v6452_v25, %v6089_v17  ;;  %v5468_v33 = vmul.f32 -1.442695, %v6685_v31  ;;  %v6700_v54 = vadd.f32 %v6454_v46, %v6095_v22 }
 0x1f5   : > { %5624 = vpow2.f32 %v5399_v21  ;;  %v5469_v34 = vmul.f32 -1.442695, %v6690_v10  ;;  %v6707_v56 = vadd.f32 %v6635_v40, %v6089_v17  ;;  %v6711_v61 = vadd.f32 %v6663_v18, %v6095_v22  ;;  %v2079_v22 = vld [vmem:[%s5787_s23 + $0x30] sm:$0x2]  ;;  %v2082_v17 = vld [vmem:[%s5787_s23 + $0x34] sm:$0x2] }
 0x1f6   : > { %5626 = vpow2.f32 %v5422_v49  ;;  %v5446_v7 = vmul.f32 -1.442695, %v6695_v28  ;;  %v5447_v35 = vmul.f32 -1.442695, %v6700_v54  ;;  %v5615_v29 = vpop.eup %5614 }
 0x1f7   : > { %5628 = vpow2.f32 %v5423_v4  ;;  %v5617_v25 = vpop.eup %5616  ;;  %v5470_v51 = vmul.f32 -1.442695, %v6707_v56  ;;  %v1614_v62 = vmul.f32 %v5615_v29, %v6140_v14  ;;  %v5471_v18 = vmul.f32 -1.442695, %v6711_v61 }
 0x1f8   : > { %5630 = vpow2.f32 %v5444_v50  ;;  %v1603_v24 = vadd.f32 1.0, %v5617_v25  ;;  %v4065_v25 = vpop.f32.mrb[24].mxu0 }
 0x1f9   : > { %5632 = vpow2.f32 %v5445_v45 }
 0x1fa   : > { %5634 = vpow2.f32 %v5468_v33 }
 0x1fb   : > { %5636 = vpow2.f32 %v5469_v34 }
 0x1fc   : > { %v5619_v37 = vpop.eup %5618  ;;  %5638 = vpow2.f32 %v5446_v7 }
 0x1fd   : > { %v5621_v2 = vpop.eup %5620  ;;  %v2225_v39 = vadd.f32 1.0, %v5619_v37  ;;  %5640 = vpow2.f32 %v5447_v35 }
 0x1fe   : > { %v5623_v46 = vpop.eup %5622  ;;  %5642 = vrcp.f32 %v1603_v24  ;;  %v2226_v42 = vadd.f32 1.0, %v5621_v2  ;;  %v4067_v24 = vpop.f32.mrb[25].mxu0 }
 0x1ff   : > { %v5625_v16 = vpop.eup %5624  ;;  %5644 = vrcp.f32 %v2225_v39  ;;  %v1604_v27 = vadd.f32 1.0, %v5623_v46 }
 0x200   : > { %v5627_v63 = vpop.eup %5626  ;;  %5646 = vrcp.f32 %v2226_v42  ;;  %v1605_v13 = vadd.f32 1.0, %v5625_v16 }
 0x201   : > { %v5629_v47 = vpop.eup %5628  ;;  %5648 = vrcp.f32 %v1604_v27  ;;  %v2227_v48 = vadd.f32 1.0, %v5627_v63  ;;  %v6737_v27 = vpop.f32.mrb[26].mxu0 }
 0x202   : > { %v5631_v32 = vpop.eup %5630  ;;  %5650 = vrcp.f32 %v1605_v13  ;;  %v2228_v44 = vadd.f32 1.0, %v5629_v47  ;;  %v2073_v47 = vld [vmem:[%s5787_s23 + $0x28] sm:$0x2] }
 0x203   : > { %v5633_v19 = vpop.eup %5632  ;;  %5652 = vrcp.f32 %v2227_v48  ;;  %v2847_v57 = vadd.f32 1.0, %v5631_v32  ;;  %v4070_v48 = vpop.f32.mrb[27].mxu0 }
 0x204   : > { %v5635_v53 = vpop.eup %5634  ;;  %v2848_v55 = vadd.f32 1.0, %v5633_v19  ;;  %5654 = vrcp.f32 %v2228_v44 }
 0x205   : > { %v5637_v58 = vpop.eup %5636  ;;  %v3470_v59 = vadd.f32 1.0, %v5635_v53  ;;  %5656 = vrcp.f32 %v2847_v57 }
 0x206   : > { %v5639_v60 = vpop.eup %5638  ;;  %v3471_v30 = vadd.f32 1.0, %v5637_v58  ;;  %5658 = vrcp.f32 %v2848_v55 }
 0x207   : > { %v5641_v11 = vpop.eup %5640  ;;  %v2849_v8 = vadd.f32 1.0, %v5639_v60  ;;  %5660 = vrcp.f32 %v3470_v59 }
 0x208   : > { %v5643_v38 = vpop.eup %5642  ;;  %v2850_v41 = vadd.f32 1.0, %v5641_v11  ;;  %5662 = vrcp.f32 %v3471_v30 }
 0x209   : > { %v5645_v40 = vpop.eup %5644  ;;  %v1615_v26 = vmul.f32 %v5643_v38, %v6428_v43  ;;  %5664 = vrcp.f32 %v2849_v8 }
 0x20a   : > { %v5647_v21 = vpop.eup %5646  ;;  %v2237_v49 = vmul.f32 %v5645_v40, %v6645_v0  ;;  %5666 = vrcp.f32 %v2850_v41 }
 0x20b   : > { %v5649_v4 = vpop.eup %5648  ;;  %v1618_v50 = vpack.c.bf16 %v1615_v26, %v1614_v62  ;;  %v5400_v45 = vpack.c.bf16 %v1615_v26, %v1615_v26  ;;  %v2238_v33 = vmul.f32 %v5647_v21, %v6649_v9  ;;  %5668 = vpow2.f32 %v5470_v51 }
 0x20c   : > { %v5651_v34 = vpop.eup %5650  ;;  %v6720_v7 = vmul.f32 %v5649_v4, %v6653_v15  ;;  %5670 = vpow2.f32 %v5471_v18  ;;  %v6731_v15 = vadd.f32 %v4065_v25, %v6074_v3 }
 0x20d   : > { %v5653_v14 = vpop.eup %5652  ;;  %v1629_v43 = vrot.slane %v1618_v50, %v6116_v1  ;;  %v1636_v35 = vrot.slane %v5400_v45, %v6116_v1  ;;  %v2241_v0 = vpack.c.bf16 %v2238_v33, %v2237_v49  ;;  %v5424_v29 = vpack.c.bf16 %v2238_v33, %v2238_v33 }
 0x20e   : > { %v6725_v37 = vmul.f32 %v5651_v34, %v6657_v6  ;;  %v6728_v9 = vmul.f32 %v5653_v14, %v6661_v52  ;;  %v6733_v2 = vpop.eup %5654 }
 0x20f   : > { %v1637_v39 = vcombine.high %v1629_v43, %v1629_v43  ;;  %v1638_v46 = vcombine.high %v1636_v35, %v1636_v35  ;;  %v1645_v42 = vrot.slane %v1629_v43, %v6116_v1  ;;  %v1652_v16 = vrot.slane %v1636_v35, %v6116_v1  ;;  %v6739_v6 = vpop.eup %5656 }
 0x210   : > { %v6742_v52 = vrot.slane %v2241_v0, %v6116_v1  ;;  %v6745_v63 = vrot.slane %v5424_v29, %v6116_v1  ;;  %v6751_v32 = vpop.eup %5658 }
 0x211   : > { %v1659_v44 = vrot.slane %v1637_v39, %v6116_v1  ;;  %v1666_v19 = vrot.slane %v1638_v46, %v6116_v1  ;;  %v1667_v57 = vcombine.high %v1645_v42, %v1645_v42  ;;  %v1668_v53 = vcombine.high %v1652_v16, %v1652_v16  ;;  %v6755_v55 = vpop.eup %5660 }
 0x212   : > { %v1721_v58 = vunpack.i.h.s16 %v1645_v42  ;;  %v1729_v59 = vunpack.i.h.s16 %v1652_v16  ;;  %v5402_v60 = vpack.i.b16 %v1645_v42, %v1645_v42  ;;  %v5406_v30 = vpack.i.b16 %v1652_v16, %v1652_v16  ;;  %v6757_v11 = vpop.eup %5662 }
 0x213   : > { %v1669_v8 = vcombine.high %v1659_v44, %v1659_v44  ;;  %v1670_v38 = vcombine.high %v1666_v19, %v1666_v19  ;;  %v1723_v41 = vunpack.i.h.s16 %v1659_v44  ;;  %v1725_v51 = vunpack.i.h.s16 %v1667_v57  ;;  %v6759_v40 = vpop.eup %5664 }
 0x214   : > { %v1731_v62 = vunpack.i.h.s16 %v1666_v19  ;;  %v1733_v26 = vunpack.i.h.s16 %v1668_v53  ;;  %v1753_v21 = vpack.i.b16 %v1721_v58, %v1721_v58  ;;  %v5403_v49 = vpack.i.b16 %v1659_v44, %v1659_v44  ;;  %v6761_v18 = vpop.eup %5666 }
 0x215   : > { %v1727_v4 = vunpack.i.h.s16 %v1669_v8  ;;  %v1735_v50 = vunpack.i.h.s16 %v1670_v38  ;;  %v1755_v45 = vpack.i.b16 %v1723_v41, %v1723_v41  ;;  %v5404_v33 = vpack.i.b16 %v1667_v57, %v1667_v57  ;;  %v6763_v34 = vpop.eup %5668  ;;  %v2043_v57 = vld [vmem:[%s5787_s23] sm:$0x2]  ;;  %v2055_v41 = vld [vmem:[%s5787_s23 + $0x10] sm:$0x2] }
 0x216   : > { %v1757_v14 = vpack.i.b16 %v1725_v51, %v1725_v51  ;;  %v5405_v43 = vpack.i.b16 %v1669_v8, %v1669_v8  ;;  %v1761_v35 = vpack.i.b16 %v1729_v59, %v1729_v59  ;;  %v5407_v0 = vpack.i.b16 %v1666_v19, %v1666_v19  ;;  %v6769_v46 = vpop.eup %5670  ;;  %v2046_v8 = vld [vmem:[%s5787_s23 + $0x4] sm:$0x2]  ;;  %v2067_v51 = vld [vmem:[%s5787_s23 + $0x20] sm:$0x2] }
 0x217   : > { %v1759_v29 = vpack.i.b16 %v1727_v4, %v1727_v4  ;;  %v6765_v25 = vpack.i.b16 %v1731_v62, %v1731_v62  ;;  %v5408_v24 = vpack.i.b16 %v1668_v53, %v1668_v53  ;;  %v6767_v39 = vpack.i.b16 %v1733_v26, %v1733_v26  ;;  %v2052_v4 = vld [vmem:[%s5787_s23 + $0xc] sm:$0x2] }
 0x218   : > { %v5409_v42 = vpack.i.b16 %v1670_v38, %v1670_v38  ;;  %v6771_v16 = vpack.i.b16 %v1735_v50, %v1735_v50  ;;  %v1790_v48 = vrot.slane %v5402_v60, %v6118_v12  ;;  %v1797_v44 = vrot.slane %v1753_v21, %v6118_v12  ;;  %v2049_v38 = vld [vmem:[%s5787_s23 + $0x8] sm:$0x2]  ;;  %v2058_v50 = vld [vmem:[%s5787_s23 + $0x14] sm:$0x2] }
 0x219   : > { %v1804_v53 = vrot.slane %v5403_v49, %v6118_v12  ;;  %v1811_v58 = vrot.slane %v1755_v45, %v6118_v12  ;;  %v1818_v59 = vrot.slane %v5404_v33, %v6118_v12  ;;  %v1825_v60 = vrot.slane %v1757_v14, %v6118_v12  ;;  %v2061_v45 = vld [vmem:[%s5787_s23 + $0x18] sm:$0x2] }
 0x21a   : > { %v1832_v62 = vrot.slane %v5405_v43, %v6118_v12  ;;  %v1839_v26 = vrot.slane %v1759_v29, %v6118_v12  ;;  %v1846_v21 = vrot.slane %v5406_v30, %v6118_v12  ;;  %v1853_v49 = vrot.slane %v1761_v35, %v6118_v12  ;;  %v2064_v29 = vld [vmem:[%s5787_s23 + $0x1c] sm:$0x2]  ;;  %v2070_v35 = vld [vmem:[%s5787_s23 + $0x24] sm:$0x2] }
 0x21b   : > { %v1860_v33 = vrot.slane %v5407_v0, %v6118_v12  ;;  %v1867_v14 = vrot.slane %v6765_v25, %v6118_v12  ;;  %v1874_v43 = vrot.slane %v5408_v24, %v6118_v12  ;;  %v1881_v30 = vrot.slane %v6767_v39, %v6118_v12  ;;  %v2076_v39 = vld [vmem:[%s5787_s23 + $0x2c] sm:$0x2] }
 0x21c   : > { %v1888_v13 = vrot.slane %v5409_v42, %v6118_v12  ;;  %v1895_v0 = vrot.slane %v6771_v16, %v6118_v12  ;;  %v2044_v25 = vsel %vm6777_vm8, %v1790_v48, %v2043_v57  ;;  %v2047_v24 = vsel %vm6777_vm8, %v1797_v44, %v2046_v8  ;;  %v2085_v57 = vld [vmem:[%s5787_s23 + $0x38] sm:$0x2]  ;;  %v2088_v8 = vld [vmem:[%s5787_s23 + $0x3c] sm:$0x2] }
 0x21d   : > { %2045 = vst [vmem:[%s5787_s23] sm:$0x2] %v2044_v25  ;;  %2048 = vst [vmem:[%s5787_s23 + $0x4] sm:$0x2] %v2047_v24  ;;  %v2050_v42 = vsel %vm6777_vm8, %v1804_v53, %v2049_v38  ;;  %v2053_v16 = vsel %vm6777_vm8, %v1811_v58, %v2052_v4  ;;  %v2056_v48 = vsel %vm6777_vm8, %v1818_v59, %v2055_v41  ;;  %v6840_v38 = vpop.f32.mrb[24].mxu1 }
 0x21e   : > { %v2059_v44 = vsel %vm6777_vm8, %v1825_v60, %v2058_v50  ;;  %2051 = vst [vmem:[%s5787_s23 + $0x8] sm:$0x2] %v2050_v42  ;;  %2054 = vst [vmem:[%s5787_s23 + $0xc] sm:$0x2] %v2053_v16  ;;  %v2062_v53 = vsel %vm6777_vm8, %v1832_v62, %v2061_v45  ;;  %v2065_v58 = vsel %vm6777_vm8, %v1839_v26, %v2064_v29 }
 0x21f   : > { %2057 = vst [vmem:[%s5787_s23 + $0x10] sm:$0x2] %v2056_v48  ;;  %2060 = vst [vmem:[%s5787_s23 + $0x14] sm:$0x2] %v2059_v44  ;;  %v2068_v59 = vsel %vm6777_vm8, %v1846_v21, %v2067_v51  ;;  %v2071_v60 = vsel %vm6777_vm8, %v1853_v49, %v2070_v35  ;;  %v2074_v41 = vsel %vm6777_vm8, %v1860_v33, %v2073_v47  ;;  %v4690_v21 = vpop.f32.mrb[25].mxu1 }
 0x220   : > { %8143 = vst [vmem:[#allocation8_spill] sm:$0xff] %v6840_v38  ;;  %2063 = vst [vmem:[%s5787_s23 + $0x18] sm:$0x2] %v2062_v53  ;;  %v2077_v62 = vsel %vm6777_vm8, %v1867_v14, %v2076_v39  ;;  %v2080_v51 = vsel %vm6777_vm8, %v1874_v43, %v2079_v22  ;;  %v2083_v26 = vsel %vm6777_vm8, %v1881_v30, %v2082_v17  ;;  %v6866_v50 = vpop.f32.mrb[26].mxu1  ;;  %v6948_v38 = vpop.f32.mrb[28].mxu0 }
 0x221   : > { %2066 = vst [vmem:[%s5787_s23 + $0x1c] sm:$0x2] %v2065_v58  ;;  %2069 = vst [vmem:[%s5787_s23 + $0x20] sm:$0x2] %v2068_v59  ;;  %v2086_v49 = vsel %vm6777_vm8, %v1888_v13, %v2085_v57  ;;  %v2089_v47 = vsel %vm6777_vm8, %v1895_v0, %v2088_v8  ;;  %v2260_v4 = vcombine.high %v6742_v52, %v6742_v52  ;;  %v4693_v30 = vpop.f32.mrb[27].mxu1 }
 0x222   : > { %2072 = vst [vmem:[%s5787_s23 + $0x24] sm:$0x2] %v2071_v60  ;;  %2075 = vst [vmem:[%s5787_s23 + $0x28] sm:$0x2] %v2074_v41  ;;  %v2261_v22 = vcombine.high %v6745_v63, %v6745_v63  ;;  %v2268_v17 = vrot.slane %v6742_v52, %v6116_v1  ;;  %v2275_v45 = vrot.slane %v6745_v63, %v6116_v1 }
 0x223   : > { %2078 = vst [vmem:[%s5787_s23 + $0x2c] sm:$0x2] %v2077_v62  ;;  %2081 = vst [vmem:[%s5787_s23 + $0x30] sm:$0x2] %v2080_v51  ;;  %v8145_v13 = vpack.c.bf16 %v6725_v37, %v6720_v7  ;;  %v8146_v14 = vpack.c.bf16 %v6725_v37, %v6725_v37  ;;  %v2282_v29 = vrot.slane %v2260_v4, %v6116_v1 }
 0x224   : > { %2084 = vst [vmem:[%s5787_s23 + $0x34] sm:$0x2] %v2083_v26  ;;  %8144 = vst [vmem:[#allocation9_spill] sm:$0xff] %v6866_v50  ;;  %v2289_v52 = vrot.slane %v2261_v22, %v6116_v1  ;;  %v6890_v63 = vmul.f32 %v6733_v2, %v6669_v20  ;;  %v6894_v7 = vmul.f32 %v6739_v6, %v6676_v36  ;;  %v2344_v25 = vunpack.i.h.s16 %v2268_v17 }
 0x225   : > { %2087 = vst [vmem:[%s5787_s23 + $0x38] sm:$0x2] %v2086_v49  ;;  %2090 = vst [vmem:[%s5787_s23 + $0x3c] sm:$0x2] %v2089_v47  ;;  %v6878_v33 = vrot.slane %v8145_v13, %v6116_v1  ;;  %v6884_v43 = vrot.slane %v8146_v14, %v6116_v1  ;;  %v2290_v35 = vcombine.high %v2268_v17, %v2268_v17  ;;  %v2352_v24 = vunpack.i.h.s16 %v2275_v45 }
 0x226   : > { %v2291_v0 = vcombine.high %v2275_v45, %v2275_v45  ;;  %v2292_v37 = vcombine.high %v2282_v29, %v2282_v29  ;;  %v2293_v39 = vcombine.high %v2289_v52, %v2289_v52  ;;  %v2346_v42 = vunpack.i.h.s16 %v2282_v29 }
 0x227   : > { %v2354_v16 = vunpack.i.h.s16 %v2289_v52  ;;  %v2348_v48 = vunpack.i.h.s16 %v2290_v35  ;;  %v5426_v57 = vpack.i.b16 %v2268_v17, %v2268_v17  ;;  %v2376_v8 = vpack.i.b16 %v2344_v25, %v2344_v25  ;;  %v2665_v17 = vld [vmem:[%s5787_s23] sm:$0x2] }
 0x228   : > { %v2356_v44 = vunpack.i.h.s16 %v2291_v0  ;;  %v2350_v53 = vunpack.i.h.s16 %v2292_v37  ;;  %v2358_v58 = vunpack.i.h.s16 %v2293_v39  ;;  %v5427_v20 = vpack.i.b16 %v2282_v29, %v2282_v29 }
 0x229   : > { %v2378_v2 = vpack.i.b16 %v2346_v42, %v2346_v42  ;;  %v5428_v36 = vpack.i.b16 %v2290_v35, %v2290_v35  ;;  %v2380_v6 = vpack.i.b16 %v2348_v48, %v2348_v48  ;;  %v5429_v59 = vpack.i.b16 %v2292_v37, %v2292_v37  ;;  %v2674_v35 = vld [vmem:[%s5787_s23 + $0xc] sm:$0x2]  ;;  %v2680_v42 = vld [vmem:[%s5787_s23 + $0x14] sm:$0x2]  ;;  %v2686_v48 = vld [vmem:[%s5787_s23 + $0x1c] sm:$0x2] }
 0x22a   : > { %v5430_v60 = vpack.i.b16 %v2275_v45, %v2275_v45  ;;  %v2382_v41 = vpack.i.b16 %v2350_v53, %v2350_v53  ;;  %v2384_v62 = vpack.i.b16 %v2352_v24, %v2352_v24  ;;  %v5431_v51 = vpack.i.b16 %v2289_v52, %v2289_v52  ;;  %v2668_v45 = vld [vmem:[%s5787_s23 + $0x4] sm:$0x2]  ;;  %v2671_v52 = vld [vmem:[%s5787_s23 + $0x8] sm:$0x2] }
 0x22b   : > { %v2386_v26 = vpack.i.b16 %v2354_v16, %v2354_v16  ;;  %v5432_v21 = vpack.i.b16 %v2291_v0, %v2291_v0  ;;  %v6896_v49 = vpack.i.b16 %v2356_v44, %v2356_v44  ;;  %v5433_v47 = vpack.i.b16 %v2293_v39, %v2293_v39  ;;  %v2677_v0 = vld [vmem:[%s5787_s23 + $0x10] sm:$0x2]  ;;  %v2683_v16 = vld [vmem:[%s5787_s23 + $0x18] sm:$0x2] }
 0x22c   : > { %v6898_v4 = vpack.i.b16 %v2358_v58, %v2358_v58  ;;  %v2413_v13 = vrot.slane %v5426_v57, %v6118_v12  ;;  %v2420_v14 = vrot.slane %v2376_v8, %v6118_v12  ;;  %v2427_v30 = vrot.slane %v5427_v20, %v6118_v12  ;;  %v2689_v58 = vld [vmem:[%s5787_s23 + $0x20] sm:$0x2]  ;;  %v2692_v20 = vld [vmem:[%s5787_s23 + $0x24] sm:$0x2]  ;;  %v2710_v50 = vld [vmem:[%s5787_s23 + $0x3c] sm:$0x2] }
 0x22d   : > { %v2434_v29 = vrot.slane %v2378_v2, %v6118_v12  ;;  %v2441_v25 = vrot.slane %v5428_v36, %v6118_v12  ;;  %v2448_v24 = vrot.slane %v2380_v6, %v6118_v12  ;;  %v2455_v37 = vrot.slane %v5429_v59, %v6118_v12  ;;  %v2695_v2 = vld [vmem:[%s5787_s23 + $0x28] sm:$0x2] }
 0x22e   : > { %v2462_v39 = vrot.slane %v2382_v41, %v6118_v12  ;;  %v2469_v44 = vrot.slane %v5430_v60, %v6118_v12  ;;  %v2476_v57 = vrot.slane %v2384_v62, %v6118_v12  ;;  %v2483_v8 = vrot.slane %v5431_v51, %v6118_v12  ;;  %v2698_v41 = vld [vmem:[%s5787_s23 + $0x2c] sm:$0x2]  ;;  %v2701_v62 = vld [vmem:[%s5787_s23 + $0x30] sm:$0x2]  ;;  %v2704_v51 = vld [vmem:[%s5787_s23 + $0x34] sm:$0x2] }
 0x22f   : > { %v2490_v53 = vrot.slane %v2386_v26, %v6118_v12  ;;  %v2497_v36 = vrot.slane %v5432_v21, %v6118_v12  ;;  %v2504_v6 = vrot.slane %v6896_v49, %v6118_v12  ;;  %v2511_v59 = vrot.slane %v5433_v47, %v6118_v12 }
 0x230   : > { %v2518_v60 = vrot.slane %v6898_v4, %v6118_v12  ;;  %v2666_v26 = vsel %vm6902_vm10, %v2413_v13, %v2665_v17  ;;  %v2669_v21 = vsel %vm6902_vm10, %v2420_v14, %v2668_v45  ;;  %v2672_v49 = vsel %vm6902_vm10, %v2427_v30, %v2671_v52  ;;  %v2707_v4 = vld [vmem:[%s5787_s23 + $0x38] sm:$0x2]  ;;  %v4075_v30 = vpop.f32.mrb[29].mxu0 }
 0x231   : > { %v2675_v47 = vsel %vm6902_vm10, %v2434_v29, %v2674_v35  ;;  %2667 = vst [vmem:[%s5787_s23] sm:$0x2] %v2666_v26  ;;  %2670 = vst [vmem:[%s5787_s23 + $0x4] sm:$0x2] %v2669_v21  ;;  %v2678_v17 = vsel %vm6902_vm10, %v2441_v25, %v2677_v0  ;;  %v2681_v45 = vsel %vm6902_vm10, %v2448_v24, %v2680_v42  ;;  %v6974_v25 = vpop.f32.mrb[30].mxu0 }
 0x232   : > { %2673 = vst [vmem:[%s5787_s23 + $0x8] sm:$0x2] %v2672_v49  ;;  %2676 = vst [vmem:[%s5787_s23 + $0xc] sm:$0x2] %v2675_v47  ;;  %v2684_v13 = vsel %vm6902_vm10, %v2455_v37, %v2683_v16  ;;  %v2687_v14 = vsel %vm6902_vm10, %v2462_v39, %v2686_v48  ;;  %v2690_v29 = vsel %vm6902_vm10, %v2469_v44, %v2689_v58  ;;  %v4078_v16 = vpop.f32.mrb[31].mxu0 }
 0x233   : > { %2679 = vst [vmem:[%s5787_s23 + $0x10] sm:$0x2] %v2678_v17  ;;  %2682 = vst [vmem:[%s5787_s23 + $0x14] sm:$0x2] %v2681_v45  ;;  %v2693_v52 = vsel %vm6902_vm10, %v2476_v57, %v2692_v20  ;;  %v2696_v35 = vsel %vm6902_vm10, %v2483_v8, %v2695_v2  ;;  %v2699_v0 = vsel %vm6902_vm10, %v2490_v53, %v2698_v41  ;;  %v2091_v16 = vld [vmem:[%s5787_s23 + $0x40] sm:$0x2] }
 0x234   : > { %2685 = vst [vmem:[%s5787_s23 + $0x18] sm:$0x2] %v2684_v13  ;;  %2688 = vst [vmem:[%s5787_s23 + $0x1c] sm:$0x2] %v2687_v14  ;;  %v2702_v24 = vsel %vm6902_vm10, %v2497_v36, %v2701_v62  ;;  %v2705_v37 = vsel %vm6902_vm10, %v2504_v6, %v2704_v51  ;;  %v2708_v39 = vsel %vm6902_vm10, %v2511_v59, %v2707_v4 }
 0x235   : > { %2691 = vst [vmem:[%s5787_s23 + $0x20] sm:$0x2] %v2690_v29  ;;  %2694 = vst [vmem:[%s5787_s23 + $0x24] sm:$0x2] %v2693_v52  ;;  %v2711_v42 = vsel %vm6902_vm10, %v2518_v60, %v2710_v50  ;;  %v1686_v48 = vcombine.high %v6878_v33, %v6878_v33  ;;  %v1687_v44 = vcombine.high %v6884_v43, %v6884_v43 }
 0x236   : > { %2697 = vst [vmem:[%s5787_s23 + $0x28] sm:$0x2] %v2696_v35  ;;  %2700 = vst [vmem:[%s5787_s23 + $0x2c] sm:$0x2] %v2699_v0  ;;  %v1694_v57 = vrot.slane %v6878_v33, %v6116_v1  ;;  %v1701_v8 = vrot.slane %v6884_v43, %v6116_v1  ;;  %v2242_v50 = vpack.c.bf16 %v6890_v63, %v6728_v9 }
 0x237   : > { %2703 = vst [vmem:[%s5787_s23 + $0x30] sm:$0x2] %v2702_v24  ;;  %2706 = vst [vmem:[%s5787_s23 + $0x34] sm:$0x2] %v2705_v37  ;;  %v5425_v53 = vpack.c.bf16 %v6890_v63, %v6890_v63  ;;  %v7006_v58 = vmul.f32 %v6751_v32, %v6680_v23  ;;  %v7010_v20 = vmul.f32 %v6755_v55, %v6685_v31 }
 0x238   : > { %2709 = vst [vmem:[%s5787_s23 + $0x38] sm:$0x2] %v2708_v39  ;;  %2712 = vst [vmem:[%s5787_s23 + $0x3c] sm:$0x2] %v2711_v42  ;;  %v1708_v2 = vrot.slane %v1686_v48, %v6116_v1  ;;  %v1715_v33 = vrot.slane %v1687_v44, %v6116_v1  ;;  %v1716_v36 = vcombine.high %v1694_v57, %v1694_v57  ;;  %v1737_v6 = vunpack.i.h.s16 %v1694_v57  ;;  %v2094_v48 = vld [vmem:[%s5787_s23 + $0x44] sm:$0x2] }
 0x239   : > { %v1717_v43 = vcombine.high %v1701_v8, %v1701_v8  ;;  %v1745_v59 = vunpack.i.h.s16 %v1701_v8  ;;  %v5410_v60 = vpack.i.b16 %v1694_v57, %v1694_v57  ;;  %v5414_v41 = vpack.i.b16 %v1701_v8, %v1701_v8 }
 0x23a   : > { %v1718_v62 = vcombine.high %v1708_v2, %v1708_v2  ;;  %v1719_v51 = vcombine.high %v1715_v33, %v1715_v33  ;;  %v1739_v26 = vunpack.i.h.s16 %v1708_v2  ;;  %v1741_v21 = vunpack.i.h.s16 %v1716_v36 }
 0x23b   : > { %v1747_v23 = vunpack.i.h.s16 %v1715_v33  ;;  %v1749_v32 = vunpack.i.h.s16 %v1717_v43  ;;  %v1769_v49 = vpack.i.b16 %v1737_v6, %v1737_v6  ;;  %v5411_v47 = vpack.i.b16 %v1708_v2, %v1708_v2 }
 0x23c   : > { %v1743_v31 = vunpack.i.h.s16 %v1718_v62  ;;  %v1751_v55 = vunpack.i.h.s16 %v1719_v51  ;;  %v1771_v4 = vpack.i.b16 %v1739_v26, %v1739_v26  ;;  %v5412_v17 = vpack.i.b16 %v1716_v36, %v1716_v36  ;;  %v2100_v36 = vld [vmem:[%s5787_s23 + $0x4c] sm:$0x2]  ;;  %v2109_v26 = vld [vmem:[%s5787_s23 + $0x58] sm:$0x2] }
 0x23d   : > { %v1773_v45 = vpack.i.b16 %v1741_v21, %v1741_v21  ;;  %v5413_v13 = vpack.i.b16 %v1718_v62, %v1718_v62  ;;  %v1777_v14 = vpack.i.b16 %v1745_v59, %v1745_v59  ;;  %v5415_v30 = vpack.i.b16 %v1715_v33, %v1715_v33  ;;  %v2097_v33 = vld [vmem:[%s5787_s23 + $0x48] sm:$0x2]  ;;  %v2112_v21 = vld [vmem:[%s5787_s23 + $0x5c] sm:$0x2] }
 0x23e   : > { %v1775_v29 = vpack.i.b16 %v1743_v31, %v1743_v31  ;;  %v1779_v52 = vpack.i.b16 %v1747_v23, %v1747_v23  ;;  %v5416_v35 = vpack.i.b16 %v1717_v43, %v1717_v43  ;;  %v1781_v0 = vpack.i.b16 %v1749_v32, %v1749_v32  ;;  %v2103_v43 = vld [vmem:[%s5787_s23 + $0x50] sm:$0x2]  ;;  %v2115_v31 = vld [vmem:[%s5787_s23 + $0x60] sm:$0x2] }
 0x23f   : > { %v5417_v24 = vpack.i.b16 %v1719_v51, %v1719_v51  ;;  %v7014_v37 = vpack.i.b16 %v1751_v55, %v1751_v55  ;;  %v1902_v39 = vrot.slane %v5410_v60, %v6118_v12  ;;  %v1909_v42 = vrot.slane %v1769_v49, %v6118_v12  ;;  %v2106_v51 = vld [vmem:[%s5787_s23 + $0x54] sm:$0x2]  ;;  %v2121_v55 = vld [vmem:[%s5787_s23 + $0x68] sm:$0x2] }
 0x240   : > { %v1916_v44 = vrot.slane %v5411_v47, %v6118_v12  ;;  %v1923_v57 = vrot.slane %v1771_v4, %v6118_v12  ;;  %v1930_v8 = vrot.slane %v5412_v17, %v6118_v12  ;;  %v1937_v2 = vrot.slane %v1773_v45, %v6118_v12 }
 0x241   : > { %v1944_v6 = vrot.slane %v5413_v13, %v6118_v12  ;;  %v1951_v59 = vrot.slane %v1775_v29, %v6118_v12  ;;  %v1958_v60 = vrot.slane %v5414_v41, %v6118_v12  ;;  %v1965_v62 = vrot.slane %v1777_v14, %v6118_v12  ;;  %v2118_v41 = vld [vmem:[%s5787_s23 + $0x64] sm:$0x2]  ;;  %v2124_v14 = vld [vmem:[%s5787_s23 + $0x6c] sm:$0x2]  ;;  %v2130_v29 = vld [vmem:[%s5787_s23 + $0x74] sm:$0x2] }
 0x242   : > { %v1972_v23 = vrot.slane %v5415_v30, %v6118_v12  ;;  %v1979_v32 = vrot.slane %v1779_v52, %v6118_v12  ;;  %v1986_v49 = vrot.slane %v5416_v35, %v6118_v12  ;;  %v1993_v47 = vrot.slane %v1781_v0, %v6118_v12  ;;  %v2127_v30 = vld [vmem:[%s5787_s23 + $0x70] sm:$0x2] }
 0x243   : > { %v2000_v4 = vrot.slane %v5417_v24, %v6118_v12  ;;  %v2007_v17 = vrot.slane %v7014_v37, %v6118_v12  ;;  %v2092_v45 = vsel %vm6777_vm8, %v1902_v39, %v2091_v16  ;;  %v2095_v13 = vsel %vm6777_vm8, %v1909_v42, %v2094_v48  ;;  %v2133_v37 = vld [vmem:[%s5787_s23 + $0x78] sm:$0x2]  ;;  %v2136_v39 = vld [vmem:[%s5787_s23 + $0x7c] sm:$0x2] }
 0x244   : > { %2093 = vst [vmem:[%s5787_s23 + $0x40] sm:$0x2] %v2092_v45  ;;  %2096 = vst [vmem:[%s5787_s23 + $0x44] sm:$0x2] %v2095_v13  ;;  %v2098_v52 = vsel %vm6777_vm8, %v1916_v44, %v2097_v33  ;;  %v2101_v35 = vsel %vm6777_vm8, %v1923_v57, %v2100_v36  ;;  %v2104_v0 = vsel %vm6777_vm8, %v1930_v8, %v2103_v43 }
 0x245   : > { %v2107_v24 = vsel %vm6777_vm8, %v1937_v2, %v2106_v51  ;;  %2099 = vst [vmem:[%s5787_s23 + $0x48] sm:$0x2] %v2098_v52  ;;  %2102 = vst [vmem:[%s5787_s23 + $0x4c] sm:$0x2] %v2101_v35  ;;  %v2110_v42 = vsel %vm6777_vm8, %v1944_v6, %v2109_v26  ;;  %v2113_v16 = vsel %vm6777_vm8, %v1951_v59, %v2112_v21 }
 0x246   : > { %2105 = vst [vmem:[%s5787_s23 + $0x50] sm:$0x2] %v2104_v0  ;;  %2108 = vst [vmem:[%s5787_s23 + $0x54] sm:$0x2] %v2107_v24  ;;  %v2116_v48 = vsel %vm6777_vm8, %v1958_v60, %v2115_v31  ;;  %v2119_v44 = vsel %vm6777_vm8, %v1965_v62, %v2118_v41  ;;  %v2122_v57 = vsel %vm6777_vm8, %v1972_v23, %v2121_v55 }
 0x247   : > { %2111 = vst [vmem:[%s5787_s23 + $0x58] sm:$0x2] %v2110_v42  ;;  %2114 = vst [vmem:[%s5787_s23 + $0x5c] sm:$0x2] %v2113_v16  ;;  %v2125_v8 = vsel %vm6777_vm8, %v1979_v32, %v2124_v14  ;;  %v2128_v2 = vsel %vm6777_vm8, %v1986_v49, %v2127_v30  ;;  %v2131_v33 = vsel %vm6777_vm8, %v1993_v47, %v2130_v29 }
 0x248   : > { %2117 = vst [vmem:[%s5787_s23 + $0x60] sm:$0x2] %v2116_v48  ;;  %2120 = vst [vmem:[%s5787_s23 + $0x64] sm:$0x2] %v2119_v44  ;;  %v2134_v36 = vsel %vm6777_vm8, %v2000_v4, %v2133_v37  ;;  %v2137_v43 = vsel %vm6777_vm8, %v2007_v17, %v2136_v39  ;;  %v2301_v6 = vrot.slane %v2242_v50, %v6116_v1 }
 0x249   : > { %2123 = vst [vmem:[%s5787_s23 + $0x68] sm:$0x2] %v2122_v57  ;;  %2126 = vst [vmem:[%s5787_s23 + $0x6c] sm:$0x2] %v2125_v8  ;;  %v2308_v59 = vrot.slane %v5425_v53, %v6116_v1  ;;  %v2863_v60 = vpack.c.bf16 %v7006_v58, %v6894_v7  ;;  %v5448_v62 = vpack.c.bf16 %v7006_v58, %v7006_v58 }
 0x24a   : > { %2129 = vst [vmem:[%s5787_s23 + $0x70] sm:$0x2] %v2128_v2  ;;  %2132 = vst [vmem:[%s5787_s23 + $0x74] sm:$0x2] %v2131_v33  ;;  %v7111_v19 = vmul.f32 %v6757_v11, %v6690_v10  ;;  %v7115_v9 = vmul.f32 %v6759_v40, %v6695_v28  ;;  %v2309_v50 = vcombine.high %v2301_v6, %v2301_v6 }
 0x24b   : > { %2135 = vst [vmem:[%s5787_s23 + $0x78] sm:$0x2] %v2134_v36  ;;  %2138 = vst [vmem:[%s5787_s23 + $0x7c] sm:$0x2] %v2137_v43  ;;  %v2310_v51 = vcombine.high %v2308_v59, %v2308_v59  ;;  %v2317_v63 = vrot.slane %v2301_v6, %v6116_v1  ;;  %v2324_v53 = vrot.slane %v2308_v59, %v6116_v1  ;;  %v2713_v57 = vld [vmem:[%s5787_s23 + $0x40] sm:$0x2] }
 0x24c   : > { %v7120_v26 = vrot.slane %v2863_v60, %v6116_v1  ;;  %v7123_v7 = vrot.slane %v5448_v62, %v6116_v1  ;;  %v3486_v10 = vpack.c.bf16 %v7111_v19, %v7010_v20  ;;  %v5472_v11 = vpack.c.bf16 %v7111_v19, %v7111_v19  ;;  %v2716_v8 = vld [vmem:[%s5787_s23 + $0x44] sm:$0x2]  ;;  %v2719_v6 = vld [vmem:[%s5787_s23 + $0x48] sm:$0x2]  ;;  %v2722_v59 = vld [vmem:[%s5787_s23 + $0x4c] sm:$0x2] }
 0x24d   : > { %v2331_v28 = vrot.slane %v2309_v50, %v6116_v1  ;;  %v2338_v40 = vrot.slane %v2310_v51, %v6116_v1  ;;  %v2339_v58 = vcombine.high %v2317_v63, %v2317_v63  ;;  %v2340_v21 = vcombine.high %v2324_v53, %v2324_v53  ;;  %v2725_v60 = vld [vmem:[%s5787_s23 + $0x50] sm:$0x2]  ;;  %v7144_v62 = vpop.f32.mrb[28].mxu1 }
 0x24e   : > { %v2360_v23 = vunpack.i.h.s16 %v2317_v63  ;;  %v2368_v32 = vunpack.i.h.s16 %v2324_v53  ;;  %v5434_v49 = vpack.i.b16 %v2317_v63, %v2317_v63  ;;  %v5438_v47 = vpack.i.b16 %v2324_v53, %v2324_v53 }
 0x24f   : > { %v2341_v31 = vcombine.high %v2331_v28, %v2331_v28  ;;  %v2342_v41 = vcombine.high %v2338_v40, %v2338_v40  ;;  %v2362_v55 = vunpack.i.h.s16 %v2331_v28  ;;  %v2364_v4 = vunpack.i.h.s16 %v2339_v58 }
 0x250   : > { %v2370_v17 = vunpack.i.h.s16 %v2338_v40  ;;  %v2372_v45 = vunpack.i.h.s16 %v2340_v21  ;;  %v2392_v13 = vpack.i.b16 %v2360_v23, %v2360_v23  ;;  %v5435_v14 = vpack.i.b16 %v2331_v28, %v2331_v28  ;;  %v2728_v28 = vld [vmem:[%s5787_s23 + $0x54] sm:$0x2] }
 0x251   : > { %v2366_v30 = vunpack.i.h.s16 %v2341_v31  ;;  %v2374_v29 = vunpack.i.h.s16 %v2342_v41  ;;  %v2394_v52 = vpack.i.b16 %v2362_v55, %v2362_v55  ;;  %v5436_v35 = vpack.i.b16 %v2339_v58, %v2339_v58  ;;  %v4698_v58 = vpop.f32.mrb[29].mxu1 }
 0x252   : > { %v2396_v0 = vpack.i.b16 %v2364_v4, %v2364_v4  ;;  %v5437_v24 = vpack.i.b16 %v2341_v31, %v2341_v31  ;;  %v2400_v37 = vpack.i.b16 %v2368_v32, %v2368_v32  ;;  %v5439_v39 = vpack.i.b16 %v2338_v40, %v2338_v40  ;;  %v2731_v40 = vld [vmem:[%s5787_s23 + $0x58] sm:$0x2]  ;;  %v2734_v31 = vld [vmem:[%s5787_s23 + $0x5c] sm:$0x2]  ;;  %v7158_v55 = vpop.f32.mrb[30].mxu1 }
 0x253   : > { %v2398_v42 = vpack.i.b16 %v2366_v30, %v2366_v30  ;;  %v7131_v16 = vpack.i.b16 %v2370_v17, %v2370_v17  ;;  %v5440_v48 = vpack.i.b16 %v2340_v21, %v2340_v21  ;;  %v7133_v44 = vpack.i.b16 %v2372_v45, %v2372_v45  ;;  %v4701_v30 = vpop.f32.mrb[31].mxu1 }
 0x254   : > { %v5441_v2 = vpack.i.b16 %v2342_v41, %v2342_v41  ;;  %v7137_v33 = vpack.i.b16 %v2374_v29, %v2374_v29  ;;  %v2525_v36 = vrot.slane %v5434_v49, %v6118_v12  ;;  %v2532_v43 = vrot.slane %v2392_v13, %v6118_v12  ;;  %v2737_v41 = vld [vmem:[%s5787_s23 + $0x60] sm:$0x2]  ;;  %v2740_v13 = vld [vmem:[%s5787_s23 + $0x64] sm:$0x2] }
 0x255   : > { %v2539_v50 = vrot.slane %v5435_v14, %v6118_v12  ;;  %v2546_v51 = vrot.slane %v2394_v52, %v6118_v12  ;;  %v2553_v63 = vrot.slane %v5436_v35, %v6118_v12  ;;  %v2560_v53 = vrot.slane %v2396_v0, %v6118_v12  ;;  %v2743_v14 = vld [vmem:[%s5787_s23 + $0x68] sm:$0x2] }
 0x256   : > { %v2567_v21 = vrot.slane %v5437_v24, %v6118_v12  ;;  %v2574_v23 = vrot.slane %v2398_v42, %v6118_v12  ;;  %v2581_v32 = vrot.slane %v5438_v47, %v6118_v12  ;;  %v2588_v49 = vrot.slane %v2400_v37, %v6118_v12  ;;  %v2746_v24 = vld [vmem:[%s5787_s23 + $0x6c] sm:$0x2]  ;;  %v2749_v37 = vld [vmem:[%s5787_s23 + $0x70] sm:$0x2] }
 0x257   : > { %v2595_v4 = vrot.slane %v5439_v39, %v6118_v12  ;;  %v2602_v17 = vrot.slane %v7131_v16, %v6118_v12  ;;  %v2609_v45 = vrot.slane %v5440_v48, %v6118_v12  ;;  %v2616_v47 = vrot.slane %v7133_v44, %v6118_v12  ;;  %v2752_v39 = vld [vmem:[%s5787_s23 + $0x74] sm:$0x2] }
 0x258   : > { %v2623_v29 = vrot.slane %v5441_v2, %v6118_v12  ;;  %v2630_v52 = vrot.slane %v7137_v33, %v6118_v12  ;;  %v2714_v35 = vsel %vm6902_vm10, %v2525_v36, %v2713_v57  ;;  %v2717_v0 = vsel %vm6902_vm10, %v2532_v43, %v2716_v8  ;;  %v2755_v57 = vld [vmem:[%s5787_s23 + $0x78] sm:$0x2]  ;;  %v2758_v8 = vld [vmem:[%s5787_s23 + $0x7c] sm:$0x2] }
 0x259   : > { %2715 = vst [vmem:[%s5787_s23 + $0x40] sm:$0x2] %v2714_v35  ;;  %2718 = vst [vmem:[%s5787_s23 + $0x44] sm:$0x2] %v2717_v0  ;;  %v2720_v42 = vsel %vm6902_vm10, %v2539_v50, %v2719_v6  ;;  %v2723_v16 = vsel %vm6902_vm10, %v2546_v51, %v2722_v59  ;;  %v2726_v48 = vsel %vm6902_vm10, %v2553_v63, %v2725_v60 }
 0x25a   : > { %v2729_v44 = vsel %vm6902_vm10, %v2560_v53, %v2728_v28  ;;  %2721 = vst [vmem:[%s5787_s23 + $0x48] sm:$0x2] %v2720_v42  ;;  %2724 = vst [vmem:[%s5787_s23 + $0x4c] sm:$0x2] %v2723_v16  ;;  %v2732_v2 = vsel %vm6902_vm10, %v2567_v21, %v2731_v40  ;;  %v2735_v33 = vsel %vm6902_vm10, %v2574_v23, %v2734_v31 }
 0x25b   : > { %2727 = vst [vmem:[%s5787_s23 + $0x50] sm:$0x2] %v2726_v48  ;;  %2730 = vst [vmem:[%s5787_s23 + $0x54] sm:$0x2] %v2729_v44  ;;  %v2738_v36 = vsel %vm6902_vm10, %v2581_v32, %v2737_v41  ;;  %v2741_v43 = vsel %vm6902_vm10, %v2588_v49, %v2740_v13  ;;  %v2744_v6 = vsel %vm6902_vm10, %v2595_v4, %v2743_v14 }
 0x25c   : > { %2733 = vst [vmem:[%s5787_s23 + $0x58] sm:$0x2] %v2732_v2  ;;  %2736 = vst [vmem:[%s5787_s23 + $0x5c] sm:$0x2] %v2735_v33  ;;  %v2747_v59 = vsel %vm6902_vm10, %v2602_v17, %v2746_v24  ;;  %v2750_v60 = vsel %vm6902_vm10, %v2609_v45, %v2749_v37  ;;  %v2753_v50 = vsel %vm6902_vm10, %v2616_v47, %v2752_v39 }
 0x25d   : > { %2739 = vst [vmem:[%s5787_s23 + $0x60] sm:$0x2] %v2738_v36  ;;  %2742 = vst [vmem:[%s5787_s23 + $0x64] sm:$0x2] %v2741_v43  ;;  %v2756_v51 = vsel %vm6902_vm10, %v2623_v29, %v2755_v57  ;;  %v2759_v63 = vsel %vm6902_vm10, %v2630_v52, %v2758_v8  ;;  %v2882_v53 = vcombine.high %v7120_v26, %v7120_v26  ;;  %v3288_v57 = vld [vmem:[%s5787_s23] sm:$0x4] }
 0x25e   : > { %2745 = vst [vmem:[%s5787_s23 + $0x68] sm:$0x2] %v2744_v6  ;;  %2748 = vst [vmem:[%s5787_s23 + $0x6c] sm:$0x2] %v2747_v59  ;;  %v2883_v28 = vcombine.high %v7123_v7, %v7123_v7  ;;  %v2890_v40 = vrot.slane %v7120_v26, %v6116_v1  ;;  %v2897_v58 = vrot.slane %v7123_v7, %v6116_v1  ;;  %v7251_v7 = vadd.f32 1.0, %v6763_v34 }
 0x25f   : > { %2751 = vst [vmem:[%s5787_s23 + $0x70] sm:$0x2] %v2750_v60  ;;  %2754 = vst [vmem:[%s5787_s23 + $0x74] sm:$0x2] %v2753_v50  ;;  %v7236_v22 = vrot.slane %v3486_v10, %v6116_v1  ;;  %v7242_v21 = vrot.slane %v5472_v11, %v6116_v1  ;;  %v2904_v23 = vrot.slane %v2882_v53, %v6116_v1  ;;  %v3291_v8 = vld [vmem:[%s5787_s23 + $0x4] sm:$0x4] }
 0x260   : > { %2757 = vst [vmem:[%s5787_s23 + $0x78] sm:$0x2] %v2756_v51  ;;  %2760 = vst [vmem:[%s5787_s23 + $0x7c] sm:$0x2] %v2759_v63  ;;  %v2911_v32 = vrot.slane %v2883_v28, %v6116_v1  ;;  %v7248_v26 = vmul.f32 %v6761_v18, %v6700_v54  ;;  %v2912_v20 = vcombine.high %v2890_v40, %v2890_v40  ;;  %v2966_v49 = vunpack.i.h.s16 %v2890_v40  ;;  %v3294_v6 = vld [vmem:[%s5787_s23 + $0x8] sm:$0x4] }
 0x261   : > { %v2913_v10 = vcombine.high %v2897_v58, %v2897_v58  ;;  %v2974_v31 = vunpack.i.h.s16 %v2897_v58  ;;  %v2914_v41 = vcombine.high %v2904_v23, %v2904_v23  ;;  %v2968_v19 = vunpack.i.h.s16 %v2904_v23  ;;  %v3297_v59 = vld [vmem:[%s5787_s23 + $0xc] sm:$0x4]  ;;  %v3300_v60 = vld [vmem:[%s5787_s23 + $0x10] sm:$0x4] }
 0x262   : > { %v2915_v4 = vcombine.high %v2911_v32, %v2911_v32  ;;  %v2976_v11 = vunpack.i.h.s16 %v2911_v32  ;;  %v2970_v17 = vunpack.i.h.s16 %v2912_v20  ;;  %v5450_v47 = vpack.i.b16 %v2890_v40, %v2890_v40  ;;  %v3303_v40 = vld [vmem:[%s5787_s23 + $0x14] sm:$0x4] }
 0x263   : > { %v2978_v45 = vunpack.i.h.s16 %v2913_v10  ;;  %v2998_v13 = vpack.i.b16 %v2966_v49, %v2966_v49  ;;  %v2972_v14 = vunpack.i.h.s16 %v2914_v41  ;;  %v5451_v54 = vpack.i.b16 %v2904_v23, %v2904_v23  ;;  %v3309_v49 = vld [vmem:[%s5787_s23 + $0x1c] sm:$0x4] }
 0x264   : > { %v2980_v30 = vunpack.i.h.s16 %v2915_v4  ;;  %v3000_v18 = vpack.i.b16 %v2968_v19, %v2968_v19  ;;  %v5452_v34 = vpack.i.b16 %v2912_v20, %v2912_v20  ;;  %v3002_v29 = vpack.i.b16 %v2970_v17, %v2970_v17 }
 0x265   : > { %v5453_v52 = vpack.i.b16 %v2914_v41, %v2914_v41  ;;  %v5454_v35 = vpack.i.b16 %v2897_v58, %v2897_v58  ;;  %v3004_v0 = vpack.i.b16 %v2972_v14, %v2972_v14  ;;  %v3006_v24 = vpack.i.b16 %v2974_v31, %v2974_v31  ;;  %v3306_v58 = vld [vmem:[%s5787_s23 + $0x18] sm:$0x4]  ;;  %v3312_v31 = vld [vmem:[%s5787_s23 + $0x20] sm:$0x4]  ;;  %v3315_v41 = vld [vmem:[%s5787_s23 + $0x24] sm:$0x4] }
 0x266   : > { %v5455_v37 = vpack.i.b16 %v2911_v32, %v2911_v32  ;;  %v3008_v39 = vpack.i.b16 %v2976_v11, %v2976_v11  ;;  %v5456_v42 = vpack.i.b16 %v2913_v10, %v2913_v10  ;;  %v7253_v16 = vpack.i.b16 %v2978_v45, %v2978_v45  ;;  %v3318_v45 = vld [vmem:[%s5787_s23 + $0x28] sm:$0x4] }
 0x267   : > { %v5457_v48 = vpack.i.b16 %v2915_v4, %v2915_v4  ;;  %v7255_v44 = vpack.i.b16 %v2980_v30, %v2980_v30  ;;  %v3035_v2 = vrot.slane %v5450_v47, %v6118_v12  ;;  %v3042_v33 = vrot.slane %v2998_v13, %v6118_v12  ;;  %v3321_v47 = vld [vmem:[%s5787_s23 + $0x2c] sm:$0x4]  ;;  %v3324_v13 = vld [vmem:[%s5787_s23 + $0x30] sm:$0x4] }
 0x268   : > { %v3049_v36 = vrot.slane %v5451_v54, %v6118_v12  ;;  %v3056_v43 = vrot.slane %v3000_v18, %v6118_v12  ;;  %v3063_v50 = vrot.slane %v5452_v34, %v6118_v12  ;;  %v3070_v51 = vrot.slane %v3002_v29, %v6118_v12  ;;  %v3327_v34 = vld [vmem:[%s5787_s23 + $0x34] sm:$0x4]  ;;  %v3330_v29 = vld [vmem:[%s5787_s23 + $0x38] sm:$0x4] }
 0x269   : > { %v3077_v63 = vrot.slane %v5453_v52, %v6118_v12  ;;  %v3084_v53 = vrot.slane %v3004_v0, %v6118_v12  ;;  %v3091_v23 = vrot.slane %v5454_v35, %v6118_v12  ;;  %v3098_v32 = vrot.slane %v3006_v24, %v6118_v12  ;;  %v3333_v52 = vld [vmem:[%s5787_s23 + $0x3c] sm:$0x4] }
 0x26a   : > { %v3105_v20 = vrot.slane %v5455_v37, %v6118_v12  ;;  %v3112_v10 = vrot.slane %v3008_v39, %v6118_v12  ;;  %v3119_v4 = vrot.slane %v5456_v42, %v6118_v12  ;;  %v3126_v19 = vrot.slane %v7253_v16, %v6118_v12 }
 0x26b   : > { %v3133_v11 = vrot.slane %v5457_v48, %v6118_v12  ;;  %v3140_v17 = vrot.slane %v7255_v44, %v6118_v12  ;;  %v3289_v14 = vsel %vm7272_vm13, %v3035_v2, %v3288_v57  ;;  %v3292_v30 = vsel %vm7272_vm13, %v3042_v33, %v3291_v8 }
 0x26c   : > { %v3295_v54 = vsel %vm7272_vm13, %v3049_v36, %v3294_v6  ;;  %v3298_v18 = vsel %vm7272_vm13, %v3056_v43, %v3297_v59  ;;  %3290 = vst [vmem:[%s5787_s23] sm:$0x4] %v3289_v14  ;;  %3293 = vst [vmem:[%s5787_s23 + $0x4] sm:$0x4] %v3292_v30  ;;  %v3301_v35 = vsel %vm7272_vm13, %v3063_v50, %v3300_v60  ;;  %5672 = vrcp.f32 %v7251_v7 }
 0x26d   : > { %3296 = vst [vmem:[%s5787_s23 + $0x8] sm:$0x4] %v3295_v54  ;;  %3299 = vst [vmem:[%s5787_s23 + $0xc] sm:$0x4] %v3298_v18  ;;  %v3304_v0 = vsel %vm7272_vm13, %v3070_v51, %v3303_v40  ;;  %v3307_v24 = vsel %vm7272_vm13, %v3077_v63, %v3306_v58  ;;  %v3310_v37 = vsel %vm7272_vm13, %v3084_v53, %v3309_v49  ;;  %v7359_v50 = vadd.f32 1.0, %v6769_v46 }
 0x26e   : > { %3302 = vst [vmem:[%s5787_s23 + $0x10] sm:$0x4] %v3301_v35  ;;  %3305 = vst [vmem:[%s5787_s23 + $0x14] sm:$0x4] %v3304_v0  ;;  %v3313_v39 = vsel %vm7272_vm13, %v3091_v23, %v3312_v31  ;;  %v3316_v42 = vsel %vm7272_vm13, %v3098_v32, %v3315_v41  ;;  %v3319_v16 = vsel %vm7272_vm13, %v3105_v20, %v3318_v45 }
 0x26f   : > { %3308 = vst [vmem:[%s5787_s23 + $0x18] sm:$0x4] %v3307_v24  ;;  %3311 = vst [vmem:[%s5787_s23 + $0x1c] sm:$0x4] %v3310_v37  ;;  %v3322_v48 = vsel %vm7272_vm13, %v3112_v10, %v3321_v47  ;;  %v3325_v44 = vsel %vm7272_vm13, %v3119_v4, %v3324_v13  ;;  %v3328_v57 = vsel %vm7272_vm13, %v3126_v19, %v3327_v34  ;;  %5674 = vrcp.f32 %v7359_v50 }
 0x270   : > { %3314 = vst [vmem:[%s5787_s23 + $0x20] sm:$0x4] %v3313_v39  ;;  %3317 = vst [vmem:[%s5787_s23 + $0x24] sm:$0x4] %v3316_v42  ;;  %v3331_v8 = vsel %vm7272_vm13, %v3133_v11, %v3330_v29  ;;  %v3334_v2 = vsel %vm7272_vm13, %v3140_v17, %v3333_v52  ;;  %v3505_v33 = vcombine.high %v7236_v22, %v7236_v22 }
 0x271   : > { %3320 = vst [vmem:[%s5787_s23 + $0x28] sm:$0x4] %v3319_v16  ;;  %3323 = vst [vmem:[%s5787_s23 + $0x2c] sm:$0x4] %v3322_v48  ;;  %v3506_v36 = vcombine.high %v7242_v21, %v7242_v21  ;;  %v3513_v43 = vrot.slane %v7236_v22, %v6116_v1  ;;  %v3520_v6 = vrot.slane %v7242_v21, %v6116_v1 }
 0x272   : > { %3326 = vst [vmem:[%s5787_s23 + $0x30] sm:$0x4] %v3325_v44  ;;  %3329 = vst [vmem:[%s5787_s23 + $0x34] sm:$0x4] %v3328_v57  ;;  %v2864_v59 = vpack.c.bf16 %v7248_v26, %v7115_v9  ;;  %v5449_v60 = vpack.c.bf16 %v7248_v26, %v7248_v26  ;;  %v3527_v51 = vrot.slane %v3505_v33, %v6116_v1 }
 0x273   : > { %3332 = vst [vmem:[%s5787_s23 + $0x38] sm:$0x4] %v3331_v8  ;;  %3335 = vst [vmem:[%s5787_s23 + $0x3c] sm:$0x4] %v3334_v2  ;;  %v3534_v63 = vrot.slane %v3506_v36, %v6116_v1  ;;  %v3535_v53 = vcombine.high %v3513_v43, %v3513_v43  ;;  %v3536_v22 = vcombine.high %v3520_v6, %v3520_v6  ;;  %v3589_v40 = vunpack.i.h.s16 %v3513_v43  ;;  %v3910_v37 = vld [vmem:[%s5787_s23] sm:$0x4] }
 0x274   : > { %v3597_v58 = vunpack.i.h.s16 %v3520_v6  ;;  %v5474_v21 = vpack.i.b16 %v3513_v43, %v3513_v43  ;;  %v5478_v23 = vpack.i.b16 %v3520_v6, %v3520_v6  ;;  %v3537_v32 = vcombine.high %v3527_v51, %v3527_v51  ;;  %v3913_v39 = vld [vmem:[%s5787_s23 + $0x4] sm:$0x4]  ;;  %v3916_v57 = vld [vmem:[%s5787_s23 + $0x8] sm:$0x4]  ;;  %v3919_v8 = vld [vmem:[%s5787_s23 + $0xc] sm:$0x4] }
 0x275   : > { %v3538_v20 = vcombine.high %v3534_v63, %v3534_v63  ;;  %v3591_v10 = vunpack.i.h.s16 %v3527_v51  ;;  %v3593_v49 = vunpack.i.h.s16 %v3535_v53  ;;  %v3599_v31 = vunpack.i.h.s16 %v3534_v63  ;;  %v3922_v2 = vld [vmem:[%s5787_s23 + $0x10] sm:$0x4] }
 0x276   : > { %v3601_v41 = vunpack.i.h.s16 %v3536_v22  ;;  %v3621_v7 = vpack.i.b16 %v3589_v40, %v3589_v40  ;;  %v5475_v4 = vpack.i.b16 %v3527_v51, %v3527_v51  ;;  %v3595_v46 = vunpack.i.h.s16 %v3537_v32  ;;  %v5673_v33 = vpop.eup %5672 }
 0x277   : > { %v3603_v19 = vunpack.i.h.s16 %v3538_v20  ;;  %v3623_v11 = vpack.i.b16 %v3591_v10, %v3591_v10  ;;  %v5476_v17 = vpack.i.b16 %v3535_v53, %v3535_v53  ;;  %v3625_v45 = vpack.i.b16 %v3593_v49, %v3593_v49  ;;  %v3928_v53 = vld [vmem:[%s5787_s23 + $0x18] sm:$0x4] }
 0x278   : > { %v5477_v47 = vpack.i.b16 %v3537_v32, %v3537_v32  ;;  %v3629_v13 = vpack.i.b16 %v3597_v58, %v3597_v58  ;;  %v5479_v14 = vpack.i.b16 %v3534_v63, %v3534_v63  ;;  %v3627_v30 = vpack.i.b16 %v3595_v46, %v3595_v46  ;;  %v3925_v63 = vld [vmem:[%s5787_s23 + $0x14] sm:$0x4]  ;;  %v3940_v10 = vld [vmem:[%s5787_s23 + $0x28] sm:$0x4] }
 0x279   : > { %v3631_v54 = vpack.i.b16 %v3599_v31, %v3599_v31  ;;  %v5480_v18 = vpack.i.b16 %v3536_v22, %v3536_v22  ;;  %v3633_v34 = vpack.i.b16 %v3601_v41, %v3601_v41  ;;  %v5481_v29 = vpack.i.b16 %v3538_v20, %v3538_v20  ;;  %v3931_v22 = vld [vmem:[%s5787_s23 + $0x1c] sm:$0x4]  ;;  %v3934_v20 = vld [vmem:[%s5787_s23 + $0x20] sm:$0x4]  ;;  %v3946_v46 = vld [vmem:[%s5787_s23 + $0x30] sm:$0x4] }
 0x27a   : > { %v7363_v52 = vpack.i.b16 %v3603_v19, %v3603_v19  ;;  %v3658_v35 = vrot.slane %v5474_v21, %v6118_v12  ;;  %v3665_v0 = vrot.slane %v3621_v7, %v6118_v12  ;;  %v3672_v42 = vrot.slane %v5475_v4, %v6118_v12  ;;  %v3943_v4 = vld [vmem:[%s5787_s23 + $0x2c] sm:$0x4]  ;;  %v3949_v19 = vld [vmem:[%s5787_s23 + $0x34] sm:$0x4] }
 0x27b   : > { %v3679_v16 = vrot.slane %v3623_v11, %v6118_v12  ;;  %v3686_v48 = vrot.slane %v5476_v17, %v6118_v12  ;;  %v3693_v44 = vrot.slane %v3625_v45, %v6118_v12  ;;  %v3700_v36 = vrot.slane %v5477_v47, %v6118_v12 }
 0x27c   : > { %v3707_v43 = vrot.slane %v3627_v30, %v6118_v12  ;;  %v3714_v6 = vrot.slane %v5478_v23, %v6118_v12  ;;  %v3721_v51 = vrot.slane %v3629_v13, %v6118_v12  ;;  %v3728_v40 = vrot.slane %v5479_v14, %v6118_v12  ;;  %v3937_v23 = vld [vmem:[%s5787_s23 + $0x24] sm:$0x4]  ;;  %v3952_v13 = vld [vmem:[%s5787_s23 + $0x38] sm:$0x4]  ;;  %v3955_v14 = vld [vmem:[%s5787_s23 + $0x3c] sm:$0x4] }
 0x27d   : > { %v3735_v58 = vrot.slane %v3631_v54, %v6118_v12  ;;  %v3742_v21 = vrot.slane %v5480_v18, %v6118_v12  ;;  %v3749_v32 = vrot.slane %v3633_v34, %v6118_v12  ;;  %v3756_v49 = vrot.slane %v5481_v29, %v6118_v12 }
 0x27e   : > { %v3763_v31 = vrot.slane %v7363_v52, %v6118_v12  ;;  %v3911_v41 = vsel %vm7369_vm15, %v3658_v35, %v3910_v37  ;;  %v3914_v7 = vsel %vm7369_vm15, %v3665_v0, %v3913_v39  ;;  %v3917_v11 = vsel %vm7369_vm15, %v3672_v42, %v3916_v57 }
 0x27f   : > { %3912 = vst [vmem:[%s5787_s23] sm:$0x4] %v3911_v41  ;;  %3915 = vst [vmem:[%s5787_s23 + $0x4] sm:$0x4] %v3914_v7  ;;  %v3920_v17 = vsel %vm7369_vm15, %v3679_v16, %v3919_v8  ;;  %v3923_v45 = vsel %vm7369_vm15, %v3686_v48, %v3922_v2  ;;  %v3926_v47 = vsel %vm7369_vm15, %v3693_v44, %v3925_v63  ;;  %v5492_v48 = vmul.f32 -1.442695, %v6731_v15 }
 0x280   : > { %3918 = vst [vmem:[%s5787_s23 + $0x8] sm:$0x4] %v3917_v11  ;;  %3921 = vst [vmem:[%s5787_s23 + $0xc] sm:$0x4] %v3920_v17  ;;  %v3929_v30 = vsel %vm7369_vm15, %v3700_v36, %v3928_v53  ;;  %v3932_v54 = vsel %vm7369_vm15, %v3707_v43, %v3931_v22  ;;  %v3935_v18 = vsel %vm7369_vm15, %v3714_v6, %v3934_v20  ;;  %v7473_v17 = vpop.eup %5674 }
 0x281   : > { %3924 = vst [vmem:[%s5787_s23 + $0x10] sm:$0x4] %v3923_v45  ;;  %3927 = vst [vmem:[%s5787_s23 + $0x14] sm:$0x4] %v3926_v47  ;;  %v3938_v34 = vsel %vm7369_vm15, %v3721_v51, %v3937_v23  ;;  %v3941_v29 = vsel %vm7369_vm15, %v3728_v40, %v3940_v10  ;;  %v3944_v52 = vsel %vm7369_vm15, %v3735_v58, %v3943_v4  ;;  %5676 = vpow2.f32 %v5492_v48 }
 0x282   : > { %3930 = vst [vmem:[%s5787_s23 + $0x18] sm:$0x4] %v3929_v30  ;;  %3933 = vst [vmem:[%s5787_s23 + $0x1c] sm:$0x4] %v3932_v54  ;;  %v3947_v35 = vsel %vm7369_vm15, %v3742_v21, %v3946_v46  ;;  %v3950_v0 = vsel %vm7369_vm15, %v3749_v32, %v3949_v19  ;;  %v3953_v37 = vsel %vm7369_vm15, %v3756_v49, %v3952_v13  ;;  %v3336_v30 = vld [vmem:[%s5787_s23 + $0x40] sm:$0x4] }
 0x283   : > { %3936 = vst [vmem:[%s5787_s23 + $0x20] sm:$0x4] %v3935_v18  ;;  %3939 = vst [vmem:[%s5787_s23 + $0x24] sm:$0x4] %v3938_v34  ;;  %v3956_v39 = vsel %vm7369_vm15, %v3763_v31, %v3955_v14  ;;  %v2923_v42 = vrot.slane %v2864_v59, %v6116_v1  ;;  %v2930_v16 = vrot.slane %v5449_v60, %v6116_v1 }
 0x284   : > { %3942 = vst [vmem:[%s5787_s23 + $0x28] sm:$0x4] %v3941_v29  ;;  %3945 = vst [vmem:[%s5787_s23 + $0x2c] sm:$0x4] %v3944_v52  ;;  %v7465_v9 = vmul.f32 %v5673_v33, %v6707_v56  ;;  %v7469_v26 = vadd.f32 %v6737_v27, %v6076_v5  ;;  %v3339_v52 = vld [vmem:[%s5787_s23 + $0x44] sm:$0x4] }
 0x285   : > { %3948 = vst [vmem:[%s5787_s23 + $0x30] sm:$0x4] %v3947_v35  ;;  %3951 = vst [vmem:[%s5787_s23 + $0x34] sm:$0x4] %v3950_v0  ;;  %v2931_v44 = vcombine.high %v2923_v42, %v2923_v42  ;;  %v2932_v57 = vcombine.high %v2930_v16, %v2930_v16  ;;  %v2939_v8 = vrot.slane %v2923_v42, %v6116_v1  ;;  %v3342_v35 = vld [vmem:[%s5787_s23 + $0x48] sm:$0x4] }
 0x286   : > { %3954 = vst [vmem:[%s5787_s23 + $0x38] sm:$0x4] %v3953_v37  ;;  %3957 = vst [vmem:[%s5787_s23 + $0x3c] sm:$0x4] %v3956_v39  ;;  %v2946_v2 = vrot.slane %v2930_v16, %v6116_v1  ;;  %v3348_v0 = vld [vmem:[%s5787_s23 + $0x50] sm:$0x4] }
 0x287   : > { %v2953_v59 = vrot.slane %v2931_v44, %v6116_v1  ;;  %v2960_v60 = vrot.slane %v2932_v57, %v6116_v1  ;;  %v2961_v50 = vcombine.high %v2939_v8, %v2939_v8  ;;  %v2982_v43 = vunpack.i.h.s16 %v2939_v8  ;;  %v3360_v37 = vld [vmem:[%s5787_s23 + $0x60] sm:$0x4]  ;;  %v3345_v57 = vld [vmem:[%s5787_s23 + $0x4c] sm:$0x4] }
 0x288   : > { %v2962_v36 = vcombine.high %v2946_v2, %v2946_v2  ;;  %v2990_v6 = vunpack.i.h.s16 %v2946_v2  ;;  %v5458_v51 = vpack.i.b16 %v2939_v8, %v2939_v8  ;;  %v5462_v63 = vpack.i.b16 %v2946_v2, %v2946_v2  ;;  %v3351_v8 = vld [vmem:[%s5787_s23 + $0x54] sm:$0x4]  ;;  %v3354_v2 = vld [vmem:[%s5787_s23 + $0x58] sm:$0x4] }
 0x289   : > { %v2963_v53 = vcombine.high %v2953_v59, %v2953_v59  ;;  %v2964_v22 = vcombine.high %v2960_v60, %v2960_v60  ;;  %v2984_v40 = vunpack.i.h.s16 %v2953_v59  ;;  %v2986_v56 = vunpack.i.h.s16 %v2961_v50 }
 0x28a   : > { %v2992_v33 = vunpack.i.h.s16 %v2960_v60  ;;  %v2994_v58 = vunpack.i.h.s16 %v2962_v36  ;;  %v3014_v21 = vpack.i.b16 %v2982_v43, %v2982_v43  ;;  %v5459_v32 = vpack.i.b16 %v2953_v59, %v2953_v59  ;;  %v3357_v43 = vld [vmem:[%s5787_s23 + $0x5c] sm:$0x4] }
 0x28b   : > { %v2988_v27 = vunpack.i.h.s16 %v2963_v53  ;;  %v2996_v20 = vunpack.i.h.s16 %v2964_v22  ;;  %v3016_v23 = vpack.i.b16 %v2984_v40, %v2984_v40  ;;  %v5460_v10 = vpack.i.b16 %v2961_v50, %v2961_v50  ;;  %v7488_v39 = vpop.eup %5676 }
 0x28c   : > { %v3018_v49 = vpack.i.b16 %v2986_v56, %v2986_v56  ;;  %v5461_v31 = vpack.i.b16 %v2963_v53, %v2963_v53  ;;  %v3022_v41 = vpack.i.b16 %v2990_v6, %v2990_v6  ;;  %v5463_v7 = vpack.i.b16 %v2960_v60, %v2960_v60  ;;  %v3363_v6 = vld [vmem:[%s5787_s23 + $0x64] sm:$0x4]  ;;  %v3369_v56 = vld [vmem:[%s5787_s23 + $0x6c] sm:$0x4] }
 0x28d   : > { %v3020_v4 = vpack.i.b16 %v2988_v27, %v2988_v27  ;;  %v3024_v46 = vpack.i.b16 %v2992_v33, %v2992_v33  ;;  %v5464_v19 = vpack.i.b16 %v2962_v36, %v2962_v36  ;;  %v3026_v11 = vpack.i.b16 %v2994_v58, %v2994_v58  ;;  %v3372_v33 = vld [vmem:[%s5787_s23 + $0x70] sm:$0x4]  ;;  %v3375_v58 = vld [vmem:[%s5787_s23 + $0x74] sm:$0x4] }
 0x28e   : > { %v5465_v45 = vpack.i.b16 %v2964_v22, %v2964_v22  ;;  %v7475_v47 = vpack.i.b16 %v2996_v20, %v2996_v20  ;;  %v3147_v13 = vrot.slane %v5458_v51, %v6118_v12  ;;  %v3154_v14 = vrot.slane %v3014_v21, %v6118_v12  ;;  %v3366_v51 = vld [vmem:[%s5787_s23 + $0x68] sm:$0x4] }
 0x28f   : > { %v3161_v54 = vrot.slane %v5459_v32, %v6118_v12  ;;  %v3168_v18 = vrot.slane %v3016_v23, %v6118_v12  ;;  %v3175_v34 = vrot.slane %v5460_v10, %v6118_v12  ;;  %v3182_v29 = vrot.slane %v3018_v49, %v6118_v12  ;;  %v3378_v23 = vld [vmem:[%s5787_s23 + $0x78] sm:$0x4]  ;;  %v3381_v10 = vld [vmem:[%s5787_s23 + $0x7c] sm:$0x4] }
 0x290   : > { %v3189_v42 = vrot.slane %v5461_v31, %v6118_v12  ;;  %v3196_v16 = vrot.slane %v3020_v4, %v6118_v12  ;;  %v3203_v48 = vrot.slane %v5462_v63, %v6118_v12  ;;  %v3210_v44 = vrot.slane %v3022_v41, %v6118_v12 }
 0x291   : > { %v3217_v59 = vrot.slane %v5463_v7, %v6118_v12  ;;  %v3224_v60 = vrot.slane %v3024_v46, %v6118_v12  ;;  %v3231_v50 = vrot.slane %v5464_v19, %v6118_v12  ;;  %v3238_v36 = vrot.slane %v3026_v11, %v6118_v12 }
 0x292   : > { %v3245_v63 = vrot.slane %v5465_v45, %v6118_v12  ;;  %v3252_v53 = vrot.slane %v7475_v47, %v6118_v12  ;;  %v3337_v22 = vsel %vm7272_vm13, %v3147_v13, %v3336_v30  ;;  %v3340_v40 = vsel %vm7272_vm13, %v3154_v14, %v3339_v52  ;;  %v8153_v30 = vld [vmem:[#allocation8_spill] sm:$0xff] }
 0x293   : > { %3338 = vst [vmem:[%s5787_s23 + $0x40] sm:$0x4] %v3337_v22  ;;  %3341 = vst [vmem:[%s5787_s23 + $0x44] sm:$0x4] %v3340_v40  ;;  %v3343_v21 = vsel %vm7272_vm13, %v3161_v54, %v3342_v35  ;;  %v3346_v32 = vsel %vm7272_vm13, %v3168_v18, %v3345_v57  ;;  %v3349_v27 = vsel %vm7272_vm13, %v3175_v34, %v3348_v0  ;;  %v5493_v14 = vmul.f32 -1.442695, %v7469_v26 }
 0x294   : > { %v3352_v20 = vsel %vm7272_vm13, %v3182_v29, %v3351_v8  ;;  %3344 = vst [vmem:[%s5787_s23 + $0x48] sm:$0x4] %v3343_v21  ;;  %3347 = vst [vmem:[%s5787_s23 + $0x4c] sm:$0x4] %v3346_v32  ;;  %v3355_v49 = vsel %vm7272_vm13, %v3189_v42, %v3354_v2  ;;  %v3358_v31 = vsel %vm7272_vm13, %v3196_v16, %v3357_v43  ;;  %v8154_v18 = vld [vmem:[#allocation9_spill] sm:$0xff] }
 0x295   : > { %3350 = vst [vmem:[%s5787_s23 + $0x50] sm:$0x4] %v3349_v27  ;;  %3353 = vst [vmem:[%s5787_s23 + $0x54] sm:$0x4] %v3352_v20  ;;  %v3361_v41 = vsel %vm7272_vm13, %v3203_v48, %v3360_v37  ;;  %v3364_v7 = vsel %vm7272_vm13, %v3210_v44, %v3363_v6  ;;  %v3367_v4 = vsel %vm7272_vm13, %v3217_v59, %v3366_v51  ;;  %5678 = vpow2.f32 %v5493_v14 }
 0x296   : > { %3356 = vst [vmem:[%s5787_s23 + $0x58] sm:$0x4] %v3355_v49  ;;  %3359 = vst [vmem:[%s5787_s23 + $0x5c] sm:$0x4] %v3358_v31  ;;  %v3370_v46 = vsel %vm7272_vm13, %v3224_v60, %v3369_v56  ;;  %v3373_v19 = vsel %vm7272_vm13, %v3231_v50, %v3372_v33  ;;  %v3376_v11 = vsel %vm7272_vm13, %v3238_v36, %v3375_v58  ;;  %v7581_v37 = vadd.f32 1.0, %v7488_v39 }
 0x297   : > { %3362 = vst [vmem:[%s5787_s23 + $0x60] sm:$0x4] %v3361_v41  ;;  %3365 = vst [vmem:[%s5787_s23 + $0x64] sm:$0x4] %v3364_v7  ;;  %v3379_v45 = vsel %vm7272_vm13, %v3245_v63, %v3378_v23  ;;  %v3382_v47 = vsel %vm7272_vm13, %v3252_v53, %v3381_v10  ;;  %v3485_v13 = vmul.f32 %v7473_v17, %v6711_v61  ;;  %v8155_v61 = vld [vmem:[#allocation6_spill] sm:$0xff] }
 0x298   : > { %3368 = vst [vmem:[%s5787_s23 + $0x68] sm:$0x4] %v3367_v4  ;;  %3371 = vst [vmem:[%s5787_s23 + $0x6c] sm:$0x4] %v3370_v46  ;;  %v7565_v54 = vadd.f32 %v8153_v30, %v6074_v3  ;;  %v7569_v34 = vadd.f32 %v8154_v18, %v6076_v5  ;;  %v7576_v17 = vadd.f32 %v6948_v38, %v8155_v61  ;;  %v8156_v5 = vld [vmem:[#allocation7_spill] sm:$0xff] }
 0x299   : > { %3374 = vst [vmem:[%s5787_s23 + $0x70] sm:$0x4] %v3373_v19  ;;  %3377 = vst [vmem:[%s5787_s23 + $0x74] sm:$0x4] %v3376_v11  ;;  %v3487_v29 = vpack.c.bf16 %v3485_v13, %v7465_v9  ;;  %v5473_v52 = vpack.c.bf16 %v3485_v13, %v3485_v13  ;;  %v7585_v9 = vadd.f32 %v6974_v25, %v8156_v5 }
 0x29a   : > { %3380 = vst [vmem:[%s5787_s23 + $0x78] sm:$0x4] %v3379_v45  ;;  %3383 = vst [vmem:[%s5787_s23 + $0x7c] sm:$0x4] %v3382_v47  ;;  %v5516_v28 = vmul.f32 -1.442695, %v7565_v54  ;;  %v7594_v57 = vadd.f32 %v7144_v62, %v8155_v61  ;;  %v7598_v39 = vadd.f32 %v7158_v55, %v8156_v5 }
 0x29b   : > { %v5517_v35 = vmul.f32 -1.442695, %v7569_v34  ;;  %v3546_v0 = vrot.slane %v3487_v29, %v6116_v1  ;;  %v3553_v3 = vrot.slane %v5473_v52, %v6116_v1  ;;  %v7590_v44 = vmul.f32 -1.442695, %v7576_v17  ;;  %v3958_v47 = vld [vmem:[%s5787_s23 + $0x40] sm:$0x4] }
 0x29c   : > { %5680 = vpow2.f32 %v5516_v28  ;;  %v3961_v13 = vld [vmem:[%s5787_s23 + $0x44] sm:$0x4]  ;;  %v3964_v52 = vld [vmem:[%s5787_s23 + $0x48] sm:$0x4]  ;;  %v3967_v28 = vld [vmem:[%s5787_s23 + $0x4c] sm:$0x4] }
 0x29d   : > { %v3554_v42 = vcombine.high %v3546_v0, %v3546_v0  ;;  %v3555_v16 = vcombine.high %v3553_v3, %v3553_v3  ;;  %v3562_v48 = vrot.slane %v3546_v0, %v6116_v1  ;;  %v3569_v38 = vrot.slane %v3553_v3, %v6116_v1 }
 0x29e   : > { %5682 = vpow2.f32 %v5517_v35  ;;  %v3970_v35 = vld [vmem:[%s5787_s23 + $0x50] sm:$0x4]  ;;  %v5519_v24 = vmul.f32 -1.442695, %v7598_v39 }
 0x29f   : > { %v3576_v25 = vrot.slane %v3554_v42, %v6116_v1  ;;  %v3583_v8 = vrot.slane %v3555_v16, %v6116_v1  ;;  %v3584_v2 = vcombine.high %v3562_v48, %v3562_v48  ;;  %v3585_v59 = vcombine.high %v3569_v38, %v3569_v38  ;;  %v7602_v10 = vpop.eup %5678  ;;  %v3973_v16 = vld [vmem:[%s5787_s23 + $0x54] sm:$0x4] }
 0x2a0   : > { %v3605_v60 = vunpack.i.h.s16 %v3562_v48  ;;  %v3613_v50 = vunpack.i.h.s16 %v3569_v38  ;;  %v5482_v36 = vpack.i.b16 %v3562_v48, %v3562_v48  ;;  %v5486_v43 = vpack.i.b16 %v3569_v38, %v3569_v38  ;;  %v3976_v48 = vld [vmem:[%s5787_s23 + $0x58] sm:$0x4]  ;;  %v3979_v38 = vld [vmem:[%s5787_s23 + $0x5c] sm:$0x4] }
 0x2a1   : > { %v3586_v6 = vcombine.high %v3576_v25, %v3576_v25  ;;  %v3587_v51 = vcombine.high %v3583_v8, %v3583_v8  ;;  %v3607_v63 = vunpack.i.h.s16 %v3576_v25  ;;  %v3609_v53 = vunpack.i.h.s16 %v3584_v2 }
 0x2a2   : > { %v3615_v62 = vunpack.i.h.s16 %v3583_v8  ;;  %v3617_v22 = vunpack.i.h.s16 %v3585_v59  ;;  %v3637_v40 = vpack.i.b16 %v3605_v60, %v3605_v60  ;;  %v5483_v56 = vpack.i.b16 %v3576_v25, %v3576_v25  ;;  %v3982_v60 = vld [vmem:[%s5787_s23 + $0x60] sm:$0x4] }
 0x2a3   : > { %v3611_v55 = vunpack.i.h.s16 %v3586_v6  ;;  %v3619_v33 = vunpack.i.h.s16 %v3587_v51  ;;  %v3639_v58 = vpack.i.b16 %v3607_v63, %v3607_v63  ;;  %v5484_v21 = vpack.i.b16 %v3584_v2, %v3584_v2 }
 0x2a4   : > { %v3641_v32 = vpack.i.b16 %v3609_v53, %v3609_v53  ;;  %v5485_v27 = vpack.i.b16 %v3586_v6, %v3586_v6  ;;  %v3645_v20 = vpack.i.b16 %v3613_v50, %v3613_v50  ;;  %v5487_v23 = vpack.i.b16 %v3583_v8, %v3583_v8  ;;  %v3985_v50 = vld [vmem:[%s5787_s23 + $0x64] sm:$0x4]  ;;  %v3991_v53 = vld [vmem:[%s5787_s23 + $0x6c] sm:$0x4] }
 0x2a5   : > { %v3643_v49 = vpack.i.b16 %v3611_v55, %v3611_v55  ;;  %v3647_v31 = vpack.i.b16 %v3615_v62, %v3615_v62  ;;  %v5488_v41 = vpack.i.b16 %v3585_v59, %v3585_v59  ;;  %v3649_v7 = vpack.i.b16 %v3617_v22, %v3617_v22  ;;  %v3994_v62 = vld [vmem:[%s5787_s23 + $0x70] sm:$0x4]  ;;  %v3997_v22 = vld [vmem:[%s5787_s23 + $0x74] sm:$0x4] }
 0x2a6   : > { %v7604_v4 = vpop.eup %5680  ;;  %v5489_v46 = vpack.i.b16 %v3587_v51, %v3587_v51  ;;  %v7606_v19 = vpack.i.b16 %v3619_v33, %v3619_v33  ;;  %v3770_v11 = vrot.slane %v5482_v36, %v6118_v12  ;;  %v3777_v45 = vrot.slane %v3637_v40, %v6118_v12  ;;  %v3988_v36 = vld [vmem:[%s5787_s23 + $0x68] sm:$0x4] }
 0x2a7   : > { %v3784_v14 = vrot.slane %v5483_v56, %v6118_v12  ;;  %v3791_v30 = vrot.slane %v3639_v58, %v6118_v12  ;;  %v3798_v18 = vrot.slane %v5484_v21, %v6118_v12  ;;  %v3805_v29 = vrot.slane %v3641_v32, %v6118_v12  ;;  %v4000_v58 = vld [vmem:[%s5787_s23 + $0x78] sm:$0x4]  ;;  %v4003_v21 = vld [vmem:[%s5787_s23 + $0x7c] sm:$0x4] }
 0x2a8   : > { %v5683_v61 = vpop.eup %5682  ;;  %v3812_v0 = vrot.slane %v5485_v27, %v6118_v12  ;;  %v3819_v3 = vrot.slane %v3643_v49, %v6118_v12  ;;  %v3826_v5 = vrot.slane %v5486_v43, %v6118_v12  ;;  %v3833_v42 = vrot.slane %v3645_v20, %v6118_v12 }
 0x2a9   : > { %v3840_v25 = vrot.slane %v5487_v23, %v6118_v12  ;;  %v3847_v8 = vrot.slane %v3647_v31, %v6118_v12  ;;  %v3854_v2 = vrot.slane %v5488_v41, %v6118_v12  ;;  %v3861_v59 = vrot.slane %v3649_v7, %v6118_v12 }
 0x2aa   : > { %v3868_v43 = vrot.slane %v5489_v46, %v6118_v12  ;;  %v3875_v6 = vrot.slane %v7606_v19, %v6118_v12  ;;  %v3959_v51 = vsel %vm7369_vm15, %v3770_v11, %v3958_v47  ;;  %v3962_v63 = vsel %vm7369_vm15, %v3777_v45, %v3961_v13 }
 0x2ab   : > { %3960 = vst [vmem:[%s5787_s23 + $0x40] sm:$0x4] %v3959_v51  ;;  %3963 = vst [vmem:[%s5787_s23 + $0x44] sm:$0x4] %v3962_v63  ;;  %v3965_v40 = vsel %vm7369_vm15, %v3784_v14, %v3964_v52  ;;  %v3968_v56 = vsel %vm7369_vm15, %v3791_v30, %v3967_v28  ;;  %v3971_v55 = vsel %vm7369_vm15, %v3798_v18, %v3970_v35  ;;  %5684 = vrcp.f32 %v7581_v37 }
 0x2ac   : > { %v3974_v33 = vsel %vm7369_vm15, %v3805_v29, %v3973_v16  ;;  %3966 = vst [vmem:[%s5787_s23 + $0x48] sm:$0x4] %v3965_v40  ;;  %3969 = vst [vmem:[%s5787_s23 + $0x4c] sm:$0x4] %v3968_v56  ;;  %v3977_v32 = vsel %vm7369_vm15, %v3812_v0, %v3976_v48  ;;  %v3980_v27 = vsel %vm7369_vm15, %v3819_v3, %v3979_v38  ;;  %v4093_v11 = vadd.f32 1.0, %v7602_v10 }
 0x2ad   : > { %3972 = vst [vmem:[%s5787_s23 + $0x50] sm:$0x4] %v3971_v55  ;;  %3975 = vst [vmem:[%s5787_s23 + $0x54] sm:$0x4] %v3974_v33  ;;  %v3983_v20 = vsel %vm7369_vm15, %v3826_v5, %v3982_v60  ;;  %v3986_v23 = vsel %vm7369_vm15, %v3833_v42, %v3985_v50  ;;  %v3989_v49 = vsel %vm7369_vm15, %v3840_v25, %v3988_v36  ;;  %v4715_v45 = vadd.f32 1.0, %v7604_v4 }
 0x2ae   : > { %3978 = vst [vmem:[%s5787_s23 + $0x58] sm:$0x4] %v3977_v32  ;;  %3981 = vst [vmem:[%s5787_s23 + $0x5c] sm:$0x4] %v3980_v27  ;;  %v3992_v31 = vsel %vm7369_vm15, %v3847_v8, %v3991_v53  ;;  %v3995_v41 = vsel %vm7369_vm15, %v3854_v2, %v3994_v62  ;;  %v3998_v7 = vsel %vm7369_vm15, %v3861_v59, %v3997_v22  ;;  %v4716_v47 = vadd.f32 1.0, %v5683_v61 }
 0x2af   : > { %3984 = vst [vmem:[%s5787_s23 + $0x60] sm:$0x4] %v3983_v20  ;;  %3987 = vst [vmem:[%s5787_s23 + $0x64] sm:$0x4] %v3986_v23  ;;  %v4001_v46 = vsel %vm7369_vm15, %v3868_v43, %v4000_v58  ;;  %v4004_v19 = vsel %vm7369_vm15, %v3875_v6, %v4003_v21  ;;  %5686 = vpow2.f32 %v7590_v44  ;;  %v5495_v13 = vmul.f32 -1.442695, %v7585_v9 }
 0x2b0   : > { %3990 = vst [vmem:[%s5787_s23 + $0x68] sm:$0x4] %v3989_v49  ;;  %3993 = vst [vmem:[%s5787_s23 + $0x6c] sm:$0x4] %v3992_v31  ;;  %5688 = vrcp.f32 %v4093_v11  ;;  %v5518_v14 = vmul.f32 -1.442695, %v7594_v57 }
 0x2b1   : > { %3996 = vst [vmem:[%s5787_s23 + $0x70] sm:$0x4] %v3995_v41  ;;  %3999 = vst [vmem:[%s5787_s23 + $0x74] sm:$0x4] %v3998_v7  ;;  %5690 = vrcp.f32 %v4715_v45 }
 0x2b2   : > { %4002 = vst [vmem:[%s5787_s23 + $0x78] sm:$0x4] %v4001_v46  ;;  %4005 = vst [vmem:[%s5787_s23 + $0x7c] sm:$0x4] %v4004_v19  ;;  %5692 = vrcp.f32 %v4716_v47 }
 0x2b3   : > { %5694 = vpow2.f32 %v5495_v13 }
 0x2b4   : > { %5696 = vpow2.f32 %v5518_v14 }
 0x2b5   : > { %5698 = vpow2.f32 %v5519_v24  ;;  %v5685_v37 = vpop.eup %5684 }
 0x2b6   : > { %v4104_v29 = vmul.f32 %v5685_v37, %v6731_v15 }
 0x2b9   : > { %v5687_v10 = vpop.eup %5686 }
 0x2ba   : > { %v5689_v30 = vpop.eup %5688  ;;  %v4094_v18 = vadd.f32 1.0, %v5687_v10 }
 0x2bb   : > { %v5691_v4 = vpop.eup %5690  ;;  %v4105_v44 = vmul.f32 %v5689_v30, %v7469_v26 }
 0x2bc   : > { %v5693_v52 = vpop.eup %5692  ;;  %v4727_v0 = vmul.f32 %v5691_v4, %v7565_v54  ;;  %5700 = vrcp.f32 %v4094_v18  ;;  %v4533_v4 = vld [vmem:[%s5787_s23] sm:$0x8] }
 0x2bd   : > { %v5695_v28 = vpop.eup %5694  ;;  %v4108_v35 = vpack.c.bf16 %v4105_v44, %v4104_v29  ;;  %v5496_v61 = vpack.c.bf16 %v4105_v44, %v4105_v44  ;;  %v4728_v3 = vmul.f32 %v5693_v52, %v7569_v34  ;;  %v4536_v29 = vld [vmem:[%s5787_s23 + $0x4] sm:$0x8] }
 0x2be   : > { %v5697_v5 = vpop.eup %5696  ;;  %v4095_v42 = vadd.f32 1.0, %v5695_v28 }
 0x2bf   : > { %v5699_v16 = vpop.eup %5698  ;;  %v4119_v48 = vrot.slane %v4108_v35, %v6116_v1  ;;  %v4126_v38 = vrot.slane %v5496_v61, %v6116_v1  ;;  %v4731_v25 = vpack.c.bf16 %v4728_v3, %v4727_v0  ;;  %v5520_v15 = vpack.c.bf16 %v4728_v3, %v4728_v3  ;;  %v4539_v0 = vld [vmem:[%s5787_s23 + $0x8] sm:$0x8]  ;;  %v4545_v3 = vld [vmem:[%s5787_s23 + $0x10] sm:$0x8] }
 0x2c0   : > { %5702 = vrcp.f32 %v4095_v42  ;;  %v7710_v60 = vadd.f32 1.0, %v5697_v5  ;;  %v7712_v50 = vadd.f32 1.0, %v5699_v16  ;;  %v4557_v5 = vld [vmem:[%s5787_s23 + $0x20] sm:$0x8] }
 0x2c1   : > { %v4127_v26 = vcombine.high %v4119_v48, %v4119_v48  ;;  %v4128_v8 = vcombine.high %v4126_v38, %v4126_v38  ;;  %v4135_v2 = vrot.slane %v4119_v48, %v6116_v1  ;;  %v4142_v54 = vrot.slane %v4126_v38, %v6116_v1 }
 0x2c2   : > { %v7705_v34 = vrot.slane %v4731_v25, %v6116_v1  ;;  %v7708_v59 = vrot.slane %v5520_v15, %v6116_v1  ;;  %v4542_v25 = vld [vmem:[%s5787_s23 + $0xc] sm:$0x8]  ;;  %v4548_v15 = vld [vmem:[%s5787_s23 + $0x14] sm:$0x8]  ;;  %5704 = vrcp.f32 %v7710_v60 }
 0x2c3   : > { %v4149_v36 = vrot.slane %v4127_v26, %v6116_v1  ;;  %v4156_v43 = vrot.slane %v4128_v8, %v6116_v1  ;;  %v4157_v6 = vcombine.high %v4135_v2, %v4135_v2  ;;  %v4158_v51 = vcombine.high %v4142_v54, %v4142_v54  ;;  %v4551_v26 = vld [vmem:[%s5787_s23 + $0x18] sm:$0x8] }
 0x2c4   : > { %v4211_v63 = vunpack.i.h.s16 %v4135_v2  ;;  %v4219_v53 = vunpack.i.h.s16 %v4142_v54  ;;  %v5498_v62 = vpack.i.b16 %v4135_v2, %v4135_v2  ;;  %v5502_v22 = vpack.i.b16 %v4142_v54, %v4142_v54 }
 0x2c5   : > { %v4159_v40 = vcombine.high %v4149_v36, %v4149_v36  ;;  %v4160_v56 = vcombine.high %v4156_v43, %v4156_v43  ;;  %v4213_v55 = vunpack.i.h.s16 %v4149_v36  ;;  %v4215_v33 = vunpack.i.h.s16 %v4157_v6 }
 0x2c6   : > { %v4221_v58 = vunpack.i.h.s16 %v4156_v43  ;;  %v4223_v21 = vunpack.i.h.s16 %v4158_v51  ;;  %v4243_v32 = vpack.i.b16 %v4211_v63, %v4211_v63  ;;  %v5499_v27 = vpack.i.b16 %v4149_v36, %v4149_v36  ;;  %v7716_v41 = vpop.eup %5700 }
 0x2c7   : > { %v4217_v20 = vunpack.i.h.s16 %v4159_v40  ;;  %v4225_v23 = vunpack.i.h.s16 %v4160_v56  ;;  %v4245_v49 = vpack.i.b16 %v4213_v55, %v4213_v55  ;;  %v5500_v31 = vpack.i.b16 %v4157_v6, %v4157_v6  ;;  %v4560_v6 = vld [vmem:[%s5787_s23 + $0x24] sm:$0x8]  ;;  %v4572_v55 = vld [vmem:[%s5787_s23 + $0x34] sm:$0x8] }
 0x2c8   : > { %v4247_v7 = vpack.i.b16 %v4215_v33, %v4215_v33  ;;  %v5501_v46 = vpack.i.b16 %v4159_v40, %v4159_v40  ;;  %v4251_v19 = vpack.i.b16 %v4219_v53, %v4219_v53  ;;  %v5503_v11 = vpack.i.b16 %v4156_v43, %v4156_v43  ;;  %v4554_v43 = vld [vmem:[%s5787_s23 + $0x1c] sm:$0x8]  ;;  %v4566_v40 = vld [vmem:[%s5787_s23 + $0x2c] sm:$0x8] }
 0x2c9   : > { %v4249_v45 = vpack.i.b16 %v4217_v20, %v4217_v20  ;;  %v7718_v47 = vpack.i.b16 %v4221_v58, %v4221_v58  ;;  %v5504_v13 = vpack.i.b16 %v4158_v51, %v4158_v51  ;;  %v7720_v14 = vpack.i.b16 %v4223_v21, %v4223_v21  ;;  %v4563_v51 = vld [vmem:[%s5787_s23 + $0x28] sm:$0x8]  ;;  %v4578_v20 = vld [vmem:[%s5787_s23 + $0x3c] sm:$0x8] }
 0x2ca   : > { %v7722_v24 = vpop.eup %5702  ;;  %v5505_v37 = vpack.i.b16 %v4160_v56, %v4160_v56  ;;  %v7724_v10 = vpack.i.b16 %v4225_v23, %v4225_v23  ;;  %v4280_v30 = vrot.slane %v5498_v62, %v6118_v12  ;;  %v4287_v18 = vrot.slane %v4243_v32, %v6118_v12  ;;  %v4569_v56 = vld [vmem:[%s5787_s23 + $0x30] sm:$0x8] }
 0x2cb   : > { %v4294_v44 = vrot.slane %v5499_v27, %v6118_v12  ;;  %v4301_v52 = vrot.slane %v4245_v49, %v6118_v12  ;;  %v4308_v28 = vrot.slane %v5500_v31, %v6118_v12  ;;  %v4315_v35 = vrot.slane %v4247_v7, %v6118_v12  ;;  %v4575_v27 = vld [vmem:[%s5787_s23 + $0x38] sm:$0x8] }
 0x2cc   : > { %v4322_v42 = vrot.slane %v5501_v46, %v6118_v12  ;;  %v4329_v16 = vrot.slane %v4249_v45, %v6118_v12  ;;  %v4336_v48 = vrot.slane %v5502_v22, %v6118_v12  ;;  %v4343_v38 = vrot.slane %v4251_v19, %v6118_v12 }
 0x2cd   : > { %v4350_v8 = vrot.slane %v5503_v11, %v6118_v12  ;;  %v4357_v2 = vrot.slane %v7718_v47, %v6118_v12  ;;  %v4364_v54 = vrot.slane %v5504_v13, %v6118_v12  ;;  %v4371_v36 = vrot.slane %v7720_v14, %v6118_v12 }
 0x2ce   : > { %v4378_v63 = vrot.slane %v5505_v37, %v6118_v12  ;;  %v4385_v53 = vrot.slane %v7724_v10, %v6118_v12  ;;  %v4534_v62 = vsel %vm7736_vm2, %v4280_v30, %v4533_v4  ;;  %v4537_v22 = vsel %vm7736_vm2, %v4287_v18, %v4536_v29 }
 0x2cf   : > { %4535 = vst [vmem:[%s5787_s23] sm:$0x8] %v4534_v62  ;;  %4538 = vst [vmem:[%s5787_s23 + $0x4] sm:$0x8] %v4537_v22  ;;  %v4540_v33 = vsel %vm7736_vm2, %v4294_v44, %v4539_v0  ;;  %v4543_v58 = vsel %vm7736_vm2, %v4301_v52, %v4542_v25  ;;  %v4546_v21 = vsel %vm7736_vm2, %v4308_v28, %v4545_v3  ;;  %5706 = vrcp.f32 %v7712_v50 }
 0x2d0   : > { %v4549_v32 = vsel %vm7736_vm2, %v4315_v35, %v4548_v15  ;;  %4541 = vst [vmem:[%s5787_s23 + $0x8] sm:$0x8] %v4540_v33  ;;  %4544 = vst [vmem:[%s5787_s23 + $0xc] sm:$0x8] %v4543_v58  ;;  %v4552_v23 = vsel %vm7736_vm2, %v4322_v42, %v4551_v26  ;;  %v4555_v49 = vsel %vm7736_vm2, %v4329_v16, %v4554_v43 }
 0x2d1   : > { %4547 = vst [vmem:[%s5787_s23 + $0x10] sm:$0x8] %v4546_v21  ;;  %4550 = vst [vmem:[%s5787_s23 + $0x14] sm:$0x8] %v4549_v32  ;;  %v4558_v31 = vsel %vm7736_vm2, %v4336_v48, %v4557_v5  ;;  %v4561_v7 = vsel %vm7736_vm2, %v4343_v38, %v4560_v6  ;;  %v4564_v46 = vsel %vm7736_vm2, %v4350_v8, %v4563_v51  ;;  %v5705_v21 = vpop.eup %5704 }
 0x2d2   : > { %4553 = vst [vmem:[%s5787_s23 + $0x18] sm:$0x8] %v4552_v23  ;;  %4556 = vst [vmem:[%s5787_s23 + $0x1c] sm:$0x8] %v4555_v49  ;;  %v4567_v19 = vsel %vm7736_vm2, %v4357_v2, %v4566_v40  ;;  %v4570_v11 = vsel %vm7736_vm2, %v4364_v54, %v4569_v56  ;;  %v4573_v45 = vsel %vm7736_vm2, %v4371_v36, %v4572_v55 }
 0x2d3   : > { %4559 = vst [vmem:[%s5787_s23 + $0x20] sm:$0x8] %v4558_v31  ;;  %4562 = vst [vmem:[%s5787_s23 + $0x24] sm:$0x8] %v4561_v7  ;;  %v4576_v47 = vsel %vm7736_vm2, %v4378_v63, %v4575_v27  ;;  %v4579_v13 = vsel %vm7736_vm2, %v4385_v53, %v4578_v20  ;;  %v4750_v14 = vcombine.high %v7705_v34, %v7705_v34 }
 0x2d4   : > { %4565 = vst [vmem:[%s5787_s23 + $0x28] sm:$0x8] %v4564_v46  ;;  %4568 = vst [vmem:[%s5787_s23 + $0x2c] sm:$0x8] %v4567_v19  ;;  %v4751_v37 = vcombine.high %v7708_v59, %v7708_v59  ;;  %v4758_v10 = vrot.slane %v7705_v34, %v6116_v1  ;;  %v4765_v30 = vrot.slane %v7708_v59, %v6116_v1 }
 0x2d5   : > { %4571 = vst [vmem:[%s5787_s23 + $0x30] sm:$0x8] %v4570_v11  ;;  %4574 = vst [vmem:[%s5787_s23 + $0x34] sm:$0x8] %v4573_v45  ;;  %v7825_v18 = vmul.f32 %v7716_v41, %v7576_v17  ;;  %v4772_v4 = vrot.slane %v4750_v14, %v6116_v1  ;;  %v7832_v44 = vmul.f32 %v7722_v24, %v7585_v9 }
 0x2d6   : > { %4577 = vst [vmem:[%s5787_s23 + $0x38] sm:$0x8] %v4576_v47  ;;  %4580 = vst [vmem:[%s5787_s23 + $0x3c] sm:$0x8] %v4579_v13  ;;  %v4779_v29 = vrot.slane %v4751_v37, %v6116_v1  ;;  %v4780_v34 = vcombine.high %v4758_v10, %v4758_v10  ;;  %v4781_v52 = vcombine.high %v4765_v30, %v4765_v30  ;;  %v4834_v28 = vunpack.i.h.s16 %v4758_v10  ;;  %v5155_v53 = vld [vmem:[%s5787_s23] sm:$0x8] }
 0x2d7   : > { %v4842_v59 = vunpack.i.h.s16 %v4765_v30  ;;  %v4782_v35 = vcombine.high %v4772_v4, %v4772_v4  ;;  %v4836_v17 = vunpack.i.h.s16 %v4772_v4  ;;  %v5522_v5 = vpack.i.b16 %v4758_v10, %v4758_v10  ;;  %v5158_v55 = vld [vmem:[%s5787_s23 + $0x4] sm:$0x8]  ;;  %v5161_v33 = vld [vmem:[%s5787_s23 + $0x8] sm:$0x8]  ;;  %v5164_v58 = vld [vmem:[%s5787_s23 + $0xc] sm:$0x8] }
 0x2d8   : > { %v4783_v0 = vcombine.high %v4779_v29, %v4779_v29  ;;  %v4844_v41 = vunpack.i.h.s16 %v4779_v29  ;;  %v4838_v3 = vunpack.i.h.s16 %v4780_v34  ;;  %v4846_v60 = vunpack.i.h.s16 %v4781_v52  ;;  %v5167_v49 = vld [vmem:[%s5787_s23 + $0x10] sm:$0x8]  ;;  %v5170_v31 = vld [vmem:[%s5787_s23 + $0x14] sm:$0x8] }
 0x2d9   : > { %v4866_v42 = vpack.i.b16 %v4834_v28, %v4834_v28  ;;  %v4840_v16 = vunpack.i.h.s16 %v4782_v35  ;;  %v5523_v38 = vpack.i.b16 %v4772_v4, %v4772_v4  ;;  %v4868_v9 = vpack.i.b16 %v4836_v17, %v4836_v17  ;;  %v5173_v7 = vld [vmem:[%s5787_s23 + $0x18] sm:$0x8]  ;;  %v5707_v46 = vpop.eup %5706  ;;  %v5176_v13 = vld [vmem:[%s5787_s23 + $0x1c] sm:$0x8] }
 0x2da   : > { %v4848_v48 = vunpack.i.h.s16 %v4783_v0  ;;  %v5524_v24 = vpack.i.b16 %v4780_v34, %v4780_v34  ;;  %v4870_v25 = vpack.i.b16 %v4838_v3, %v4838_v3  ;;  %v5525_v50 = vpack.i.b16 %v4782_v35, %v4782_v35  ;;  %v5179_v14 = vld [vmem:[%s5787_s23 + $0x20] sm:$0x8]  ;;  %v5182_v37 = vld [vmem:[%s5787_s23 + $0x24] sm:$0x8] }
 0x2db   : > { %v5526_v15 = vpack.i.b16 %v4765_v30, %v4765_v30  ;;  %v4872_v26 = vpack.i.b16 %v4840_v16, %v4840_v16  ;;  %v4874_v8 = vpack.i.b16 %v4842_v59, %v4842_v59  ;;  %v5527_v2 = vpack.i.b16 %v4779_v29, %v4779_v29  ;;  %v5185_v34 = vld [vmem:[%s5787_s23 + $0x28] sm:$0x8] }
 0x2dc   : > { %v4876_v54 = vpack.i.b16 %v4844_v41, %v4844_v41  ;;  %v5528_v36 = vpack.i.b16 %v4781_v52, %v4781_v52  ;;  %v7835_v43 = vpack.i.b16 %v4846_v60, %v4846_v60  ;;  %v5529_v6 = vpack.i.b16 %v4783_v0, %v4783_v0  ;;  %v5188_v52 = vld [vmem:[%s5787_s23 + $0x2c] sm:$0x8]  ;;  %v5191_v28 = vld [vmem:[%s5787_s23 + $0x30] sm:$0x8]  ;;  %v5194_v41 = vld [vmem:[%s5787_s23 + $0x34] sm:$0x8] }
 0x2dd   : > { %v7837_v51 = vpack.i.b16 %v4848_v48, %v4848_v48  ;;  %v4903_v62 = vrot.slane %v5522_v5, %v6118_v12  ;;  %v4910_v22 = vrot.slane %v4866_v42, %v6118_v12  ;;  %v4917_v40 = vrot.slane %v5523_v38, %v6118_v12  ;;  %v5197_v3 = vld [vmem:[%s5787_s23 + $0x38] sm:$0x8]  ;;  %v5200_v60 = vld [vmem:[%s5787_s23 + $0x3c] sm:$0x8] }
 0x2de   : > { %v4924_v56 = vrot.slane %v4868_v9, %v6118_v12  ;;  %v4931_v32 = vrot.slane %v5524_v24, %v6118_v12  ;;  %v4938_v27 = vrot.slane %v4870_v25, %v6118_v12  ;;  %v4945_v20 = vrot.slane %v5525_v50, %v6118_v12 }
 0x2df   : > { %v4952_v23 = vrot.slane %v4872_v26, %v6118_v12  ;;  %v4959_v19 = vrot.slane %v5526_v15, %v6118_v12  ;;  %v4966_v11 = vrot.slane %v4874_v8, %v6118_v12  ;;  %v4973_v45 = vrot.slane %v5527_v2, %v6118_v12 }
 0x2e0   : > { %v4980_v47 = vrot.slane %v4876_v54, %v6118_v12  ;;  %v4987_v10 = vrot.slane %v5528_v36, %v6118_v12  ;;  %v4994_v30 = vrot.slane %v7835_v43, %v6118_v12  ;;  %v5001_v4 = vrot.slane %v5529_v6, %v6118_v12 }
 0x2e1   : > { %v5008_v29 = vrot.slane %v7837_v51, %v6118_v12  ;;  %v5156_v59 = vsel %vm7841_vm4, %v4903_v62, %v5155_v53  ;;  %v5159_v35 = vsel %vm7841_vm4, %v4910_v22, %v5158_v55  ;;  %v5162_v0 = vsel %vm7841_vm4, %v4917_v40, %v5161_v33 }
 0x2e2   : > { %v5165_v17 = vsel %vm7841_vm4, %v4924_v56, %v5164_v58  ;;  %5157 = vst [vmem:[%s5787_s23] sm:$0x8] %v5156_v59  ;;  %5160 = vst [vmem:[%s5787_s23 + $0x4] sm:$0x8] %v5159_v35  ;;  %v5168_v5 = vsel %vm7841_vm4, %v4931_v32, %v5167_v49  ;;  %v5171_v42 = vsel %vm7841_vm4, %v4938_v27, %v5170_v31 }
 0x2e3   : > { %5163 = vst [vmem:[%s5787_s23 + $0x8] sm:$0x8] %v5162_v0  ;;  %5166 = vst [vmem:[%s5787_s23 + $0xc] sm:$0x8] %v5165_v17  ;;  %v5174_v16 = vsel %vm7841_vm4, %v4945_v20, %v5173_v7  ;;  %v5177_v48 = vsel %vm7841_vm4, %v4952_v23, %v5176_v13  ;;  %v5180_v38 = vsel %vm7841_vm4, %v4959_v19, %v5179_v14 }
 0x2e4   : > { %5169 = vst [vmem:[%s5787_s23 + $0x10] sm:$0x8] %v5168_v5  ;;  %5172 = vst [vmem:[%s5787_s23 + $0x14] sm:$0x8] %v5171_v42  ;;  %v5183_v9 = vsel %vm7841_vm4, %v4966_v11, %v5182_v37  ;;  %v5186_v24 = vsel %vm7841_vm4, %v4973_v45, %v5185_v34  ;;  %v5189_v25 = vsel %vm7841_vm4, %v4980_v47, %v5188_v52 }
 0x2e5   : > { %5175 = vst [vmem:[%s5787_s23 + $0x18] sm:$0x8] %v5174_v16  ;;  %5178 = vst [vmem:[%s5787_s23 + $0x1c] sm:$0x8] %v5177_v48  ;;  %v5192_v50 = vsel %vm7841_vm4, %v4987_v10, %v5191_v28  ;;  %v5195_v15 = vsel %vm7841_vm4, %v4994_v30, %v5194_v41  ;;  %v5198_v26 = vsel %vm7841_vm4, %v5001_v4, %v5197_v3  ;;  %v4581_v3 = vld [vmem:[%s5787_s23 + $0x40] sm:$0x8] }
 0x2e6   : > { %5181 = vst [vmem:[%s5787_s23 + $0x20] sm:$0x8] %v5180_v38  ;;  %5184 = vst [vmem:[%s5787_s23 + $0x24] sm:$0x8] %v5183_v9  ;;  %v5201_v8 = vsel %vm7841_vm4, %v5008_v29, %v5200_v60  ;;  %v4109_v2 = vpack.c.bf16 %v7832_v44, %v7825_v18  ;;  %v5497_v54 = vpack.c.bf16 %v7832_v44, %v7832_v44  ;;  %v4584_v48 = vld [vmem:[%s5787_s23 + $0x44] sm:$0x8] }
 0x2e7   : > { %5187 = vst [vmem:[%s5787_s23 + $0x28] sm:$0x8] %v5186_v24  ;;  %5190 = vst [vmem:[%s5787_s23 + $0x2c] sm:$0x8] %v5189_v25  ;;  %v4729_v36 = vmul.f32 %v5705_v21, %v7594_v57  ;;  %v4730_v43 = vmul.f32 %v5707_v46, %v7598_v39  ;;  %v4587_v38 = vld [vmem:[%s5787_s23 + $0x48] sm:$0x8] }
 0x2e8   : > { %5193 = vst [vmem:[%s5787_s23 + $0x30] sm:$0x8] %v5192_v50  ;;  %5196 = vst [vmem:[%s5787_s23 + $0x34] sm:$0x8] %v5195_v15  ;;  %v4168_v6 = vrot.slane %v4109_v2, %v6116_v1  ;;  %v4175_v51 = vrot.slane %v5497_v54, %v6116_v1  ;;  %v4593_v9 = vld [vmem:[%s5787_s23 + $0x50] sm:$0x8] }
 0x2e9   : > { %5199 = vst [vmem:[%s5787_s23 + $0x38] sm:$0x8] %v5198_v26  ;;  %5202 = vst [vmem:[%s5787_s23 + $0x3c] sm:$0x8] %v5201_v8  ;;  %v4732_v53 = vpack.c.bf16 %v4730_v43, %v4729_v36  ;;  %v5521_v62 = vpack.c.bf16 %v4730_v43, %v4730_v43  ;;  %v4605_v24 = vld [vmem:[%s5787_s23 + $0x60] sm:$0x8] }
 0x2ea   : > { %v4176_v22 = vcombine.high %v4168_v6, %v4168_v6  ;;  %v4177_v40 = vcombine.high %v4175_v51, %v4175_v51  ;;  %v4184_v56 = vrot.slane %v4168_v6, %v6116_v1  ;;  %v4191_v55 = vrot.slane %v4175_v51, %v6116_v1  ;;  %v4590_v8 = vld [vmem:[%s5787_s23 + $0x4c] sm:$0x8]  ;;  %v4596_v2 = vld [vmem:[%s5787_s23 + $0x54] sm:$0x8]  ;;  %v4599_v54 = vld [vmem:[%s5787_s23 + $0x58] sm:$0x8] }
 0x2eb   : > { %v7938_v18 = vrot.slane %v4732_v53, %v6116_v1  ;;  %v7941_v44 = vrot.slane %v5521_v62, %v6116_v1  ;;  %v4602_v53 = vld [vmem:[%s5787_s23 + $0x5c] sm:$0x8]  ;;  %v4608_v62 = vld [vmem:[%s5787_s23 + $0x64] sm:$0x8] }
 0x2ec   : > { %v4198_v57 = vrot.slane %v4176_v22, %v6116_v1  ;;  %v4205_v39 = vrot.slane %v4177_v40, %v6116_v1  ;;  %v4206_v33 = vcombine.high %v4184_v56, %v4184_v56  ;;  %v4207_v58 = vcombine.high %v4191_v55, %v4191_v55  ;;  %v4611_v22 = vld [vmem:[%s5787_s23 + $0x68] sm:$0x8] }
 0x2ed   : > { %v4227_v21 = vunpack.i.h.s16 %v4184_v56  ;;  %v4235_v32 = vunpack.i.h.s16 %v4191_v55  ;;  %v5506_v27 = vpack.i.b16 %v4184_v56, %v4184_v56  ;;  %v5510_v20 = vpack.i.b16 %v4191_v55, %v4191_v55 }
 0x2ee   : > { %v4208_v23 = vcombine.high %v4198_v57, %v4198_v57  ;;  %v4209_v49 = vcombine.high %v4205_v39, %v4205_v39  ;;  %v4229_v31 = vunpack.i.h.s16 %v4198_v57  ;;  %v4231_v7 = vunpack.i.h.s16 %v4206_v33 }
 0x2ef   : > { %v4237_v46 = vunpack.i.h.s16 %v4205_v39  ;;  %v4239_v19 = vunpack.i.h.s16 %v4207_v58  ;;  %v4259_v11 = vpack.i.b16 %v4227_v21, %v4227_v21  ;;  %v5507_v45 = vpack.i.b16 %v4198_v57, %v4198_v57 }
 0x2f0   : > { %v4233_v47 = vunpack.i.h.s16 %v4208_v23  ;;  %v4241_v13 = vunpack.i.h.s16 %v4209_v49  ;;  %v4261_v14 = vpack.i.b16 %v4229_v31, %v4229_v31  ;;  %v5508_v37 = vpack.i.b16 %v4206_v33, %v4206_v33  ;;  %v4617_v33 = vld [vmem:[%s5787_s23 + $0x70] sm:$0x8] }
 0x2f1   : > { %v4263_v10 = vpack.i.b16 %v4231_v7, %v4231_v7  ;;  %v5509_v30 = vpack.i.b16 %v4208_v23, %v4208_v23  ;;  %v4267_v4 = vpack.i.b16 %v4235_v32, %v4235_v32  ;;  %v5511_v29 = vpack.i.b16 %v4205_v39, %v4205_v39  ;;  %v4614_v39 = vld [vmem:[%s5787_s23 + $0x6c] sm:$0x8]  ;;  %v4623_v23 = vld [vmem:[%s5787_s23 + $0x78] sm:$0x8] }
 0x2f2   : > { %v4265_v34 = vpack.i.b16 %v4233_v47, %v4233_v47  ;;  %v4269_v52 = vpack.i.b16 %v4237_v46, %v4237_v46  ;;  %v5512_v28 = vpack.i.b16 %v4207_v58, %v4207_v58  ;;  %v4271_v59 = vpack.i.b16 %v4239_v19, %v4239_v19  ;;  %v4620_v58 = vld [vmem:[%s5787_s23 + $0x74] sm:$0x8] }
 0x2f3   : > { %v5513_v35 = vpack.i.b16 %v4209_v49, %v4209_v49  ;;  %v7945_v0 = vpack.i.b16 %v4241_v13, %v4241_v13  ;;  %v4392_v17 = vrot.slane %v5506_v27, %v6118_v12  ;;  %v4399_v41 = vrot.slane %v4259_v11, %v6118_v12  ;;  %v4626_v49 = vld [vmem:[%s5787_s23 + $0x7c] sm:$0x8] }
 0x2f4   : > { %v4406_v60 = vrot.slane %v5507_v45, %v6118_v12  ;;  %v4413_v5 = vrot.slane %v4261_v14, %v6118_v12  ;;  %v4420_v42 = vrot.slane %v5508_v37, %v6118_v12  ;;  %v4427_v16 = vrot.slane %v4263_v10, %v6118_v12 }
 0x2f5   : > { %v4434_v25 = vrot.slane %v5509_v30, %v6118_v12  ;;  %v4441_v50 = vrot.slane %v4265_v34, %v6118_v12  ;;  %v4448_v15 = vrot.slane %v5510_v20, %v6118_v12  ;;  %v4455_v26 = vrot.slane %v4267_v4, %v6118_v12 }
 0x2f6   : > { %v4462_v36 = vrot.slane %v5511_v29, %v6118_v12  ;;  %v4469_v43 = vrot.slane %v4269_v52, %v6118_v12  ;;  %v4476_v6 = vrot.slane %v5512_v28, %v6118_v12  ;;  %v4483_v51 = vrot.slane %v4271_v59, %v6118_v12 }
 0x2f7   : > { %v4490_v40 = vrot.slane %v5513_v35, %v6118_v12  ;;  %v4497_v56 = vrot.slane %v7945_v0, %v6118_v12  ;;  %v4582_v55 = vsel %vm7736_vm2, %v4392_v17, %v4581_v3  ;;  %v4585_v57 = vsel %vm7736_vm2, %v4399_v41, %v4584_v48 }
 0x2f8   : > { %4583 = vst [vmem:[%s5787_s23 + $0x40] sm:$0x8] %v4582_v55  ;;  %4586 = vst [vmem:[%s5787_s23 + $0x44] sm:$0x8] %v4585_v57  ;;  %v4588_v21 = vsel %vm7736_vm2, %v4406_v60, %v4587_v38  ;;  %v4591_v32 = vsel %vm7736_vm2, %v4413_v5, %v4590_v8  ;;  %v4594_v27 = vsel %vm7736_vm2, %v4420_v42, %v4593_v9 }
 0x2f9   : > { %v4597_v20 = vsel %vm7736_vm2, %v4427_v16, %v4596_v2  ;;  %4589 = vst [vmem:[%s5787_s23 + $0x48] sm:$0x8] %v4588_v21  ;;  %4592 = vst [vmem:[%s5787_s23 + $0x4c] sm:$0x8] %v4591_v32  ;;  %v4600_v31 = vsel %vm7736_vm2, %v4434_v25, %v4599_v54  ;;  %v4603_v7 = vsel %vm7736_vm2, %v4441_v50, %v4602_v53 }
 0x2fa   : > { %4595 = vst [vmem:[%s5787_s23 + $0x50] sm:$0x8] %v4594_v27  ;;  %4598 = vst [vmem:[%s5787_s23 + $0x54] sm:$0x8] %v4597_v20  ;;  %v4606_v46 = vsel %vm7736_vm2, %v4448_v15, %v4605_v24  ;;  %v4609_v19 = vsel %vm7736_vm2, %v4455_v26, %v4608_v62  ;;  %v4612_v11 = vsel %vm7736_vm2, %v4462_v36, %v4611_v22 }
 0x2fb   : > { %4601 = vst [vmem:[%s5787_s23 + $0x58] sm:$0x8] %v4600_v31  ;;  %4604 = vst [vmem:[%s5787_s23 + $0x5c] sm:$0x8] %v4603_v7  ;;  %v4615_v45 = vsel %vm7736_vm2, %v4469_v43, %v4614_v39  ;;  %v4618_v47 = vsel %vm7736_vm2, %v4476_v6, %v4617_v33  ;;  %v4621_v13 = vsel %vm7736_vm2, %v4483_v51, %v4620_v58 }
 0x2fc   : > { %4607 = vst [vmem:[%s5787_s23 + $0x60] sm:$0x8] %v4606_v46  ;;  %4610 = vst [vmem:[%s5787_s23 + $0x64] sm:$0x8] %v4609_v19  ;;  %v4624_v14 = vsel %vm7736_vm2, %v4490_v40, %v4623_v23  ;;  %v4627_v37 = vsel %vm7736_vm2, %v4497_v56, %v4626_v49  ;;  %v4799_v10 = vcombine.high %v7938_v18, %v7938_v18 }
 0x2fd   : > { %4613 = vst [vmem:[%s5787_s23 + $0x68] sm:$0x8] %v4612_v11  ;;  %4616 = vst [vmem:[%s5787_s23 + $0x6c] sm:$0x8] %v4615_v45  ;;  %v4800_v30 = vcombine.high %v7941_v44, %v7941_v44  ;;  %v4807_v4 = vrot.slane %v7938_v18, %v6116_v1  ;;  %v4814_v29 = vrot.slane %v7941_v44, %v6116_v1 }
 0x2fe   : > { %4619 = vst [vmem:[%s5787_s23 + $0x70] sm:$0x8] %v4618_v47  ;;  %4622 = vst [vmem:[%s5787_s23 + $0x74] sm:$0x8] %v4621_v13  ;;  %v4821_v34 = vrot.slane %v4799_v10, %v6116_v1 }
 0x2ff   : > { %4625 = vst [vmem:[%s5787_s23 + $0x78] sm:$0x8] %v4624_v14  ;;  %4628 = vst [vmem:[%s5787_s23 + $0x7c] sm:$0x8] %v4627_v37  ;;  %v4828_v52 = vrot.slane %v4800_v30, %v6116_v1  ;;  %v4829_v61 = vcombine.high %v4807_v4, %v4807_v4  ;;  %v4830_v28 = vcombine.high %v4814_v29, %v4814_v29  ;;  %v4850_v59 = vunpack.i.h.s16 %v4807_v4  ;;  %v5203_v6 = vld [vmem:[%s5787_s23 + $0x40] sm:$0x8] }
 0x300   : > { %v4858_v35 = vunpack.i.h.s16 %v4814_v29  ;;  %v4831_v0 = vcombine.high %v4821_v34, %v4821_v34  ;;  %v4852_v41 = vunpack.i.h.s16 %v4821_v34  ;;  %v5530_v42 = vpack.i.b16 %v4807_v4, %v4807_v4  ;;  %v5206_v40 = vld [vmem:[%s5787_s23 + $0x44] sm:$0x8]  ;;  %v5209_v56 = vld [vmem:[%s5787_s23 + $0x48] sm:$0x8]  ;;  %v5212_v55 = vld [vmem:[%s5787_s23 + $0x4c] sm:$0x8] }
 0x301   : > { %v4832_v17 = vcombine.high %v4828_v52, %v4828_v52  ;;  %v4860_v3 = vunpack.i.h.s16 %v4828_v52  ;;  %v4854_v60 = vunpack.i.h.s16 %v4829_v61  ;;  %v4862_v5 = vunpack.i.h.s16 %v4830_v28  ;;  %v5215_v21 = vld [vmem:[%s5787_s23 + $0x50] sm:$0x8]  ;;  %v5218_v32 = vld [vmem:[%s5787_s23 + $0x54] sm:$0x8] }
 0x302   : > { %v4882_v16 = vpack.i.b16 %v4850_v59, %v4850_v59  ;;  %v4856_v18 = vunpack.i.h.s16 %v4831_v0  ;;  %v5531_v44 = vpack.i.b16 %v4821_v34, %v4821_v34  ;;  %v4884_v38 = vpack.i.b16 %v4852_v41, %v4852_v41  ;;  %v5221_v27 = vld [vmem:[%s5787_s23 + $0x58] sm:$0x8]  ;;  %v5224_v7 = vld [vmem:[%s5787_s23 + $0x5c] sm:$0x8] }
 0x303   : > { %v4864_v48 = vunpack.i.h.s16 %v4832_v17  ;;  %v5532_v9 = vpack.i.b16 %v4829_v61, %v4829_v61  ;;  %v4886_v24 = vpack.i.b16 %v4854_v60, %v4854_v60  ;;  %v5533_v1 = vpack.i.b16 %v4831_v0, %v4831_v0  ;;  %v5227_v46 = vld [vmem:[%s5787_s23 + $0x60] sm:$0x8]  ;;  %v5230_v19 = vld [vmem:[%s5787_s23 + $0x64] sm:$0x8] }
 0x304   : > { %v5534_v25 = vpack.i.b16 %v4814_v29, %v4814_v29  ;;  %v4888_v50 = vpack.i.b16 %v4856_v18, %v4856_v18  ;;  %v4890_v15 = vpack.i.b16 %v4858_v35, %v4858_v35  ;;  %v5535_v26 = vpack.i.b16 %v4828_v52, %v4828_v52  ;;  %v5233_v14 = vld [vmem:[%s5787_s23 + $0x68] sm:$0x8]  ;;  %v5236_v37 = vld [vmem:[%s5787_s23 + $0x6c] sm:$0x8] }
 0x305   : > { %v4892_v8 = vpack.i.b16 %v4860_v3, %v4860_v3  ;;  %v5536_v2 = vpack.i.b16 %v4830_v28, %v4830_v28  ;;  %v4894_v54 = vpack.i.b16 %v4862_v5, %v4862_v5  ;;  %v5537_v36 = vpack.i.b16 %v4832_v17, %v4832_v17  ;;  %v5239_v10 = vld [vmem:[%s5787_s23 + $0x70] sm:$0x8] }
 0x306   : > { %v4896_v43 = vpack.i.b16 %v4864_v48, %v4864_v48  ;;  %v5015_v51 = vrot.slane %v5530_v42, %v6118_v12  ;;  %v5022_v53 = vrot.slane %v4882_v16, %v6118_v12  ;;  %v5029_v62 = vrot.slane %v5531_v44, %v6118_v12  ;;  %v5245_v52 = vld [vmem:[%s5787_s23 + $0x78] sm:$0x8]  ;;  %v5248_v61 = vld [vmem:[%s5787_s23 + $0x7c] sm:$0x8] }
 0x307   : > { %v5036_v22 = vrot.slane %v4884_v38, %v6118_v12  ;;  %v5043_v57 = vrot.slane %v5532_v9, %v6118_v12  ;;  %v5050_v39 = vrot.slane %v4886_v24, %v6118_v12  ;;  %v5057_v33 = vrot.slane %v5533_v1, %v6118_v12 }
 0x308   : > { %v5064_v58 = vrot.slane %v4888_v50, %v6118_v12  ;;  %v5071_v20 = vrot.slane %v5534_v25, %v6118_v12  ;;  %v5078_v23 = vrot.slane %v4890_v15, %v6118_v12  ;;  %v5085_v49 = vrot.slane %v5535_v26, %v6118_v12 }
 0x309   : > { %v5092_v31 = vrot.slane %v4892_v8, %v6118_v12  ;;  %v5099_v11 = vrot.slane %v5536_v2, %v6118_v12  ;;  %v5106_v45 = vrot.slane %v4894_v54, %v6118_v12  ;;  %v5113_v47 = vrot.slane %v5537_v36, %v6118_v12 }
 0x30a   : > { %v5120_v13 = vrot.slane %v4896_v43, %v6118_v12  ;;  %v5204_v30 = vsel %vm7841_vm4, %v5015_v51, %v5203_v6  ;;  %v5207_v4 = vsel %vm7841_vm4, %v5022_v53, %v5206_v40  ;;  %v5210_v29 = vsel %vm7841_vm4, %v5029_v62, %v5209_v56  ;;  %v5242_v12 = vld [vmem:[%s5787_s23 + $0x74] sm:$0x8] }
 0x30b   : > { %v5213_v34 = vsel %vm7841_vm4, %v5036_v22, %v5212_v55  ;;  %5205 = vst [vmem:[%s5787_s23 + $0x40] sm:$0x8] %v5204_v30  ;;  %5208 = vst [vmem:[%s5787_s23 + $0x44] sm:$0x8] %v5207_v4  ;;  %v5216_v28 = vsel %vm7841_vm4, %v5043_v57, %v5215_v21  ;;  %v5219_v59 = vsel %vm7841_vm4, %v5050_v39, %v5218_v32 }
 0x30c   : > { %5211 = vst [vmem:[%s5787_s23 + $0x48] sm:$0x8] %v5210_v29  ;;  %5214 = vst [vmem:[%s5787_s23 + $0x4c] sm:$0x8] %v5213_v34  ;;  %v5222_v35 = vsel %vm7841_vm4, %v5057_v33, %v5221_v27  ;;  %v5225_v0 = vsel %vm7841_vm4, %v5064_v58, %v5224_v7  ;;  %v5228_v17 = vsel %vm7841_vm4, %v5071_v20, %v5227_v46 }
 0x30d   : > { %5217 = vst [vmem:[%s5787_s23 + $0x50] sm:$0x8] %v5216_v28  ;;  %5220 = vst [vmem:[%s5787_s23 + $0x54] sm:$0x8] %v5219_v59  ;;  %v5231_v41 = vsel %vm7841_vm4, %v5078_v23, %v5230_v19  ;;  %v5234_v3 = vsel %vm7841_vm4, %v5085_v49, %v5233_v14  ;;  %v5237_v60 = vsel %vm7841_vm4, %v5092_v31, %v5236_v37 }
 0x30e   : > { %5223 = vst [vmem:[%s5787_s23 + $0x58] sm:$0x8] %v5222_v35  ;;  %5226 = vst [vmem:[%s5787_s23 + $0x5c] sm:$0x8] %v5225_v0  ;;  %v5240_v5 = vsel %vm7841_vm4, %v5099_v11, %v5239_v10  ;;  %v5243_v42 = vsel %vm7841_vm4, %v5106_v45, %v5242_v12  ;;  %v5246_v16 = vsel %vm7841_vm4, %v5113_v47, %v5245_v52 }
 0x30f   : > { %5229 = vst [vmem:[%s5787_s23 + $0x60] sm:$0x8] %v5228_v17  ;;  %5232 = vst [vmem:[%s5787_s23 + $0x64] sm:$0x8] %v5231_v41  ;;  %v5249_v18 = vsel %vm7841_vm4, %v5120_v13, %v5248_v61 }
 0x310   : > { %5235 = vst [vmem:[%s5787_s23 + $0x68] sm:$0x8] %v5234_v3  ;;  %5238 = vst [vmem:[%s5787_s23 + $0x6c] sm:$0x8] %v5237_v60 }
 0x311   : > { %5241 = vst [vmem:[%s5787_s23 + $0x70] sm:$0x8] %v5240_v5  ;;  %5244 = vst [vmem:[%s5787_s23 + $0x74] sm:$0x8] %v5243_v42 }
 0x312   : > { %5247 = vst [vmem:[%s5787_s23 + $0x78] sm:$0x8] %v5246_v16  ;;  %5250 = vst [vmem:[%s5787_s23 + $0x7c] sm:$0x8] %v5249_v18 }
 0x313 PF: > { %s13_s14 = sadd.s32 1, %s5732_s14   ;;  %s8161_s12 = smov %s5728_s13 }
 0x314   : > { %p10_p5 = scmp.ge.s32.totalorder %s13_s14, 4   ;;  %s8162_s13 = smov %s8164_s15 }
 0x316   :  { %12 = sbr.rel (!%p10_p5) target bundleno = 2 (0x2), region = 107 }
 0x31d   :  { %5278 = vsyncmov [#allocation3] }
 0x320   :  { %s5279_s18 = vpop.sfrf %5278 }
 0x321   :  { %p5540_p6 = scmp.ne.s32.totalorder %s5279_s18, 0 }
 0x323   :  { %5283 = shalt.err (%p5540_p6)  }

</bundles_post_ra>
